<compile_context>
chip_gen: v7x
topology: tpu7x:2x2x1
jax: 0.10.0
libtpu: 0.0.40
codegen_flags: <defaults>
</compile_context>

<pallas_src>
import functools

import numpy as np
import jax
import jax.numpy as jnp
from jax.experimental import pallas as pl
from jax.experimental.pallas import tpu as pltpu


def _round_up(x, m):
    return ((x + m - 1) // m) * m


# ----------------------------------------------------------------------------
# Pallas kernel: fused upsample-reconstruction + gating + bottleneck
# ----------------------------------------------------------------------------
def _contextual_kernel(n_mat, n_const, approx_recip,
                       interp_ref, f_ref, g_ref, gc_ref,
                       wn_ref, bn_ref, wb_ref, bb_ref, o_ref):
    # interp_ref : (TILE_P, Kpad)        bilinear weights (matmul scales only)
    # f_ref      : (1, TILE_P, C)        input features (compute dtype)
    # g_ref      : (1, Kpad, 2*nM*C)     per-batch packed small grids; scale j:
    #                cols [2jC:(2j+1)C]   = pooled+1x1 grid
    #                cols [(2j+1)C:(2j+2)C] = same grid pre-multiplied by Wn
    # gc_ref     : (1, 1, 2*nC*C) f32    size-1 scales: per-batch [m_j | m_j@Wn]
    # wn_ref     : (C, C)   weight_net 1x1 conv, stored (C_in, C_out)
    # bn_ref     : (1, C)   weight_net bias (f32)
    # wb_ref     : (2C, O)  bottleneck 1x1 conv, stored (C_in, C_out)
    # bb_ref     : (1, O)   bottleneck bias (f32)
    # o_ref      : (1, TILE_P, O)        output (compute dtype)
    f = f_ref[0]                                            # (TILE_P, C)
    tile_p, C = f.shape

    # weight_net applied to the features once (bias folded here):
    #   sigmoid(Wn(f - ms) + bn) == sigmoid((f@Wn + bn) - ms@Wn)
    fw = (jnp.dot(f, wn_ref[...], preferred_element_type=jnp.float32)
          + bn_ref[...])                                    # (TILE_P, C) f32

    def gate(x):
        # sigmoid(x) = 0.5*tanh(0.5*x) + 0.5 : one EUP op instead of exp+recip
        return 0.5 * jnp.tanh(0.5 * x) + 0.5

    num = jnp.zeros((tile_p, C), jnp.float32)
    den = jnp.zeros((tile_p, C), jnp.float32)

    # --- size-1 scales: bilinear upsample of a 1x1 grid is a constant map ----
    gc = gc_ref[0]                                          # (1, 2*nC*C) f32
    for j in range(n_const):                                # static unroll
        m_j = gc[:, 2 * j * C:(2 * j + 1) * C]              # (1, C)
        mw_j = gc[:, (2 * j + 1) * C:(2 * j + 2) * C]       # (1, C)
        w = gate(fw - mw_j)
        num += m_j * w
        den += w

    # --- larger scales: one (TILE_P,Kpad)@(Kpad,2C) MXU matmul per scale -----
    # (accumulate inside the loop so only (TILE_P, 2C) f32 is live at a time)
    interp = interp_ref[...]
    for j in range(n_mat):                                  # static unroll
        both = jnp.dot(interp, g_ref[0, :, 2 * j * C:(2 * j + 2) * C],
                       preferred_element_type=jnp.float32)  # (TILE_P, 2C)
        m_j = both[:, :C]                                   # ms_j
        mw_j = both[:, C:]                                  # ms_j @ Wn
        w = gate(fw - mw_j)
        num += m_j * w
        den += w

    # Reference divides directly; clamp is pure robustness (den > 0 normally).
    den = jnp.maximum(den, 1e-12)
    # Exact reciprocal on the f32 check path; approx (EUP slot) in production.
    overall = num * pl.reciprocal(den, approx=approx_recip)

    # bottleneck 1x1 conv on cat([overall, f], channel) + ReLU
    wb = wb_ref[...]                                        # (2C, O)
    out = (jnp.dot(overall.astype(f.dtype), wb[:C],
                   preferred_element_type=jnp.float32)
           + jnp.dot(f, wb[C:], preferred_element_type=jnp.float32)
           + bb_ref[...])
    o_ref[0] = jnp.maximum(out, 0.0).astype(o_ref.dtype)


# ----------------------------------------------------------------------------
# Generation-aware VMEM budgets & tile selection
# ----------------------------------------------------------------------------
def _vmem_budgets():
    """Returns (tile-selection budget, scoped vmem_limit_bytes), derived from
    the chip's physical VMEM so v7x (64 MiB/TC) keeps Mosaic-scratch headroom
    while v5e/v6e (128 MiB) are not artificially capped."""
    mib = 1024 * 1024
    try:
        cap = int(pltpu.get_tpu_info().vmem_capacity_bytes)
    except Exception:
        cap = 0
    if cap <= 0:
        return 40 * mib, 56 * mib                    # unknown chip: safe everywhere
    limit = min(max(cap - 24 * mib, cap * 3 // 4), 112 * mib)
    budget = max(limit - 8 * mib, limit * 3 // 4)
    return budget, limit


def _choose_tile_p(P, C, O, kpad, n_mat, n_const, itemsize, out_itemsize,
                   budget):
    """Largest pixel tile whose double-buffered streams + weights + in-kernel
    f32 temporaries fit the generation-aware VMEM budget."""
    p_ceil = _round_up(P, 128)
    g_width = max(2 * n_mat * C, C)
    gc_width = max(2 * n_const * C, C)
    for tile in (2048, 1024, 512, 256, 128):
        if tile > p_ceil:
            continue
        stream = 2 * tile * (kpad + C) * itemsize            # interp + feats (dbl buf)
        stream += 2 * tile * O * out_itemsize                # output (dbl buf)
        stream += 2 * kpad * g_width * itemsize + 2 * gc_width * 4
        fixed = 2 * itemsize * (C * C + 2 * C * O) + 8 * (C + O)
        temps = 4 * tile * (6 * C + O + kpad)                # live f32 temporaries
        if stream + fixed + temps <= budget:
            return tile
    return 128


# ----------------------------------------------------------------------------
# pallas_call wrapper
# ----------------------------------------------------------------------------
def _fused_pallas(interp, feats_flat, grids, grids_const, wn_t, bn, wb_t, bb,
                  *, tile_p, n_mat, n_const, approx_recip, out_dtype,
                  vmem_limit):
    N, P_pad, C = feats_flat.shape
    kpad = interp.shape[1]
    O = wb_t.shape[1]
    g_width = grids.shape[2]
    gc_width = grids_const.shape[2]
    assert P_pad % tile_p == 0
    grid = (P_pad // tile_p, N)        # batch innermost -> interp stays resident
    n_steps = grid[0] * grid[1]

    itemsize = jnp.dtype(feats_flat.dtype).itemsize
    out_itemsize = jnp.dtype(out_dtype).itemsize
    matmul_flops = 2 * N * P_pad * (kpad * 2 * n_mat * C + C * C + 2 * C * O)
    flops = matmul_flops + N * P_pad * C * (6 * (n_mat + n_const) + 6)
    transcendentals = N * P_pad * C * (n_mat + n_const + 1)
    bytes_accessed = (interp.size * itemsize                  # fetched once in total
                      + feats_flat.size * itemsize
                      + n_steps * (kpad * g_width * itemsize + gc_width * 4)
                      + (wn_t.size + wb_t.size) * itemsize
                      + (bn.size + bb.size) * 4
                      + N * P_pad * O * out_itemsize)

    kernel = functools.partial(_contextual_kernel, n_mat, n_const, approx_recip)
    return pl.pallas_call(
        kernel,
        out_shape=jax.ShapeDtypeStruct((N, P_pad, O), out_dtype),
        grid_spec=pltpu.PrefetchScalarGridSpec(
            num_scalar_prefetch=0,
            grid=grid,
            in_specs=[
                # interp's block index depends only on the pixel tile; with the
                # batch axis innermost it is DMAed once per tile, not per (tile,batch).
                pl.BlockSpec((tile_p, kpad), lambda p, n: (p, 0)),
                pl.BlockSpec((1, tile_p, C), lambda p, n: (n, p, 0)),
                pl.BlockSpec((1, kpad, g_width), lambda p, n: (n, 0, 0)),
                pl.BlockSpec((1, 1, gc_width), lambda p, n: (n, 0, 0)),
                # Weights/biases: constant index maps -> fetched once, tiny.
                # (Deliberately left at default buffering; single-buffered
                #  BlockSpecs would only reclaim ~2 MB at production C=512.)
                pl.BlockSpec((C, C), lambda p, n: (0, 0)),
                pl.BlockSpec((1, C), lambda p, n: (0, 0)),
                pl.BlockSpec((2 * C, O), lambda p, n: (0, 0)),
                pl.BlockSpec((1, O), lambda p, n: (0, 0)),
            ],
            out_specs=pl.BlockSpec((1, tile_p, O), lambda p, n: (n, p, 0)),
        ),
        compiler_params=pltpu.CompilerParams(
            dimension_semantics=("parallel", "parallel"),
            vmem_limit_bytes=vmem_limit),
        cost_estimate=pl.CostEstimate(
            flops=int(flops), transcendentals=int(transcendentals),
            bytes_accessed=int(bytes_accessed)),
    )(interp, feats_flat, grids, grids_const, wn_t,
      bn.reshape(1, C), wb_t, bb.reshape(1, O))


# ----------------------------------------------------------------------------
# Tiny glue (plain JAX / host numpy)
# ----------------------------------------------------------------------------
def _adaptive_avg_pool_nhwc(x, s):
    # matches torch.nn.AdaptiveAvgPool2d((s, s))
    N, H, W, C = x.shape
    rows = []
    for i in range(s):
        h0 = (i * H) // s
        h1 = -((-(i + 1) * H) // s)
        cols = []
        for j in range(s):
            w0 = (j * W) // s
            w1 = -((-(j + 1) * W) // s)
            cols.append(jnp.mean(x[:, h0:h1, w0:w1, :], axis=(1, 2)))
        rows.append(jnp.stack(cols, axis=1))
    return jnp.stack(rows, axis=1)                           # (N, s, s, C)


def _bilinear_matrix_np(out_size, in_size, align_corners=False):
    # F.upsample(mode='bilinear') on modern torch == align_corners=False.
    o = np.arange(out_size, dtype=np.float64)
    if align_corners:
        src = np.zeros_like(o) if out_size == 1 else o * (in_size - 1) / (out_size - 1)
    else:
        src = np.maximum((o + 0.5) * (in_size / out_size) - 0.5, 0.0)
    i0 = np.minimum(np.floor(src).astype(np.int64), in_size - 1)
    i1 = np.minimum(i0 + 1, in_size - 1)
    lam = src - i0
    U = np.zeros((out_size, in_size), np.float32)
    U[np.arange(out_size), i0] += (1.0 - lam).astype(np.float32)
    U[np.arange(out_size), i1] += lam.astype(np.float32)
    return U


@functools.lru_cache(maxsize=32)
def _interp_device(H, W, mat_sizes, kpad, P_pad, align_corners, dtype_name):
    """(P_pad, Kpad) bilinear-weight matrix: row p holds the weights of pixel p
    against every matmul-scale's (s x s) grid, concatenated and zero-padded.
    Cached (host einsum + device upload happen once per configuration)."""
    blocks = []
    for s in mat_sizes:
        Uh = _bilinear_matrix_np(H, s, align_corners)        # (H, s)
        Uw = _bilinear_matrix_np(W, s, align_corners)        # (W, s)
        blocks.append(np.einsum('ha,wb->hwab', Uh, Uw).reshape(H * W, s * s))
    if blocks:
        interp = np.concatenate(blocks, axis=1).astype(np.float32)
    else:
        interp = np.zeros((H * W, 0), np.float32)
    ktot = interp.shape[1]
    interp = np.pad(interp, ((0, P_pad - H * W), (0, kpad - ktot)))
    return jnp.asarray(interp, jnp.dtype(dtype_name))


def _small_grids(feats_nhwc, params, kpad, mat_idx, const_idx):
    """Pack each pooled+1x1-conv grid AND its weight_net projection.

    Numerics note (intentional): ms@Wn is folded here in f32 and later cast to
    the compute dtype, which rounds slightly differently from the reference's
    explicit (f - ms) @ Wn; it stays well within bf16 tolerance.
    """
    N, H, W, C = feats_nhwc.shape
    sizes = params["sizes"]
    wn_t = params["wn"].T                                    # (C_in, C_out)
    n_mat, n_const = len(mat_idx), len(const_idx)

    g = jnp.zeros((N, kpad, max(2 * n_mat * C, C)), jnp.float32)
    off = 0
    for j, i in enumerate(mat_idx):
        s = sizes[i]
        pooled = _adaptive_avg_pool_nhwc(feats_nhwc, s)      # (N, s, s, C)
        conv = jnp.einsum('nabc,dc->nabd', pooled, params["scale_w"][i])
        gi = conv.reshape(N, s * s, C)
        gwi = jnp.einsum('nkc,cd->nkd', gi, wn_t)            # fold weight_net
        g = g.at[:, off:off + s * s, 2 * j * C:(2 * j + 1) * C].set(gi)
        g = g.at[:, off:off + s * s, (2 * j + 1) * C:(2 * j + 2) * C].set(gwi)
        off += s * s

    gc = jnp.zeros((N, 1, max(2 * n_const * C, C)), jnp.float32)
    for j, i in enumerate(const_idx):
        pooled = jnp.mean(feats_nhwc, axis=(1, 2))           # AdaptiveAvgPool2d((1,1))
        conv = jnp.einsum('nc,dc->nd', pooled, params["scale_w"][i])
        convw = jnp.einsum('nc,cd->nd', conv, wn_t)
        gc = gc.at[:, 0, 2 * j * C:(2 * j + 1) * C].set(conv)
        gc = gc.at[:, 0, (2 * j + 1) * C:(2 * j + 2) * C].set(convw)
    return g, gc


# ----------------------------------------------------------------------------
# Parameter init (mirrors _initialize_weights: normal std=0.01, biases zero)
# ----------------------------------------------------------------------------
def init_params(key, features, out_features, sizes=(1, 2, 3, 6)):
    keys = jax.random.split(key, len(sizes) + 2)
    return {
        "scale_w": [0.01 * jax.random.normal(keys[i], (features, features),
                                             jnp.float32)
                    for i in range(len(sizes))],             # (C_out, C_in)
        "wn": 0.01 * jax.random.normal(keys[-2], (features, features),
                                       jnp.float32),         # (C_out, C_in)
        "bn": jnp.zeros((features,), jnp.float32),
        "wb": 0.01 * jax.random.normal(keys[-1],
                                       (out_features, 2 * features),
                                       jnp.float32),         # (O, 2C)
        "bb": jnp.zeros((out_features,), jnp.float32),
        "sizes": tuple(sizes),
        "align_corners": False,   # modern F.upsample/interpolate default
    }


# ----------------------------------------------------------------------------
# Forward passes
# ----------------------------------------------------------------------------
def contextual_module_forward_nhwc(feats_nhwc, params,
                                   *, compute_dtype=jnp.bfloat16):
    """Pallas-backed forward on NHWC data (preferred: no layout round trips).
    Output dtype == compute_dtype (halves the dominant HBM stream in bf16)."""
    N, H, W, C = feats_nhwc.shape
    sizes = tuple(params["sizes"])
    O = params["wb"].shape[0]
    align_corners = bool(params.get("align_corners", False))
    compute_dtype = jnp.dtype(compute_dtype)
    out_dtype = compute_dtype

    const_idx = tuple(i for i, s in enumerate(sizes) if s == 1)  # constant maps
    mat_idx = tuple(i for i, s in enumerate(sizes) if s != 1)    # need interp matmul
    n_const, n_mat = len(const_idx), len(mat_idx)
    mat_sizes = tuple(sizes[i] for i in mat_idx)

    ktot = sum(s * s for s in mat_sizes)
    kpad = max(_round_up(ktot, 128), 128)          # lane-dense interp / grids

    grids, grids_const = _small_grids(feats_nhwc, params, kpad, mat_idx, const_idx)

    P = H * W
    budget, vmem_limit = _vmem_budgets()
    tile_p = _choose_tile_p(P, C, O, kpad, n_mat, n_const,
                            compute_dtype.itemsize, jnp.dtype(out_dtype).itemsize,
                            budget)
    P_pad = _round_up(P, tile_p)

    interp = _interp_device(H, W, mat_sizes, kpad, P_pad, align_corners,
                            compute_dtype.name)

    feats_flat = feats_nhwc.reshape(N, P, C)
    if P_pad != P:   # padded rows are safe: den > 0 there, rows sliced off below
        feats_flat = jnp.pad(feats_flat, ((0, 0), (0, P_pad - P), (0, 0)))

    approx_recip = compute_dtype != jnp.dtype(jnp.float32)
    out_flat = _fused_pallas(
        interp,
        feats_flat.astype(compute_dtype),
        grids.astype(compute_dtype),
        grids_const,                                  # tiny, kept f32
        params["wn"].T.astype(compute_dtype),
        params["bn"].astype(jnp.float32),
        params["wb"].T.astype(compute_dtype),
        params["bb"].astype(jnp.float32),
        tile_p=tile_p, n_mat=n_mat, n_const=n_const,
        approx_recip=approx_recip, out_dtype=out_dtype, vmem_limit=vmem_limit)
    return out_flat[:, :P, :].reshape(N, H, W, O)


def contextual_module_forward(x_nchw, params, *, compute_dtype=jnp.bfloat16):
    """PyTorch-layout (NCHW) wrapper.  Prefer the NHWC entry point end-to-end
    to avoid the two full-activation HBM transposes below."""
    feats = jnp.transpose(x_nchw, (0, 2, 3, 1))              # NHWC
    out = contextual_module_forward_nhwc(feats, params, compute_dtype=compute_dtype)
    return jnp.transpose(out, (0, 3, 1, 2))                  # NCHW


def _upsample_bilinear(grid_nhwc, H, W, align_corners=False):
    N, s, _, C = grid_nhwc.shape
    Uh = jnp.asarray(_bilinear_matrix_np(H, s, align_corners))
    Uw = jnp.asarray(_bilinear_matrix_np(W, s, align_corners))
    return jnp.einsum('Ha,Wb,nabc->nHWc', Uh, Uw, grid_nhwc)


def reference_forward(x_nchw, params):
    """Pure-JAX reference mirroring the PyTorch forward exactly (f32)."""
    N, C, H, W = x_nchw.shape
    feats = jnp.transpose(x_nchw, (0, 2, 3, 1))              # NHWC
    ac = params.get("align_corners", False)
    ms = []
    for wgt, s in zip(params["scale_w"], params["sizes"]):
        pooled = _adaptive_avg_pool_nhwc(feats, s)
        conv = jnp.einsum('nabc,dc->nabd', pooled, wgt)
        ms.append(_upsample_bilinear(conv, H, W, ac))
    weights = [jax.nn.sigmoid(
        jnp.einsum('nhwc,dc->nhwd', feats - m, params["wn"]) + params["bn"])
        for m in ms]
    num = sum(m * w for m, w in zip(ms, weights))
    den = sum(weights)
    overall = num / den
    cat = jnp.concatenate([overall, feats], axis=-1)         # (N,H,W,2C)
    out = jnp.einsum('nhwc,dc->nhwd', cat, params["wb"]) + params["bb"]
    out = jnp.maximum(out, 0.0)
    return jnp.transpose(out, (0, 3, 1, 2))                  # NCHW


# ----------------------------------------------------------------------------
if __name__ == "__main__":
    key = jax.random.PRNGKey(0)
    kx, kp = jax.random.split(key)

    # Small but lane-friendly demo shapes (production CAN uses C=512, OUT=512).
    N, C, H, W = 2, 32, 16, 16
    OUT = 128

    x = jax.random.normal(kx, (N, C, H, W), jnp.float32)
    params = init_params(kp, C, OUT, sizes=(1, 2, 3, 6))

    ref = jax.block_until_ready(reference_forward(x, params))

    # f32 compute path: tight check against the pure-JAX reference
    # (exact reciprocal is used on this path).
    out_f32 = jax.block_until_ready(
        contextual_module_forward(x, params, compute_dtype=jnp.float32))
    assert out_f32.shape == (N, OUT, H, W)
    assert jnp.allclose(out_f32, ref, rtol=1e-3, atol=1e-3), (
        "f32 Pallas kernel output does not match pure-JAX reference")

    # bf16 MXU path (production config): bf16 compute, bf16 output writeback.
    out_bf16 = jax.block_until_ready(
        contextual_module_forward(x, params, compute_dtype=jnp.bfloat16))
    assert out_bf16.shape == (N, OUT, H, W)
    assert jnp.allclose(out_bf16.astype(jnp.float32), ref,
                        rtol=2e-2, atol=2e-2), (
        "bf16 Pallas kernel output drifted beyond bf16 tolerance")

    print("KERNEL_OK")
</pallas_src>

<mosaic_0001>
module attributes {stable_mosaic.version = 11 : i64} {
  func.func @_contextual_kernel(%arg0: i32, %arg1: i32, %arg2: memref<256x128xf32, #tpu.memory_space<vmem>>, %arg3: memref<1x256x32xf32, #tpu.memory_space<vmem>>, %arg4: memref<1x128x192xf32, #tpu.memory_space<vmem>>, %arg5: memref<1x1x64xf32, #tpu.memory_space<vmem>>, %arg6: memref<32x32xf32, #tpu.memory_space<vmem>>, %arg7: memref<1x32xf32, #tpu.memory_space<vmem>>, %arg8: memref<64x128xf32, #tpu.memory_space<vmem>>, %arg9: memref<1x128xf32, #tpu.memory_space<vmem>>, %arg10: memref<1x256x128xf32, #tpu.memory_space<vmem>>) attributes {dimension_semantics = [#tpu.dimension_semantics<parallel>, #tpu.dimension_semantics<parallel>], iteration_bounds = array<i64: 1, 2>, scalar_prefetch = 0 : i64, scratch_operands = 0 : i64, tpu.core_type = #tpu.core_type<tc>, window_params = [{transform_indices = @transform_0, window_bounds = array<i64: 256, 128>}, {transform_indices = @transform_1, window_bounds = array<i64: 1, 256, 32>}, {transform_indices = @transform_2, window_bounds = array<i64: 1, 128, 192>}, {transform_indices = @transform_3, window_bounds = array<i64: 1, 1, 64>}, {pipeline_mode = #tpu.pipeline_mode<synchronous>, transform_indices = @transform_4, window_bounds = array<i64: 32, 32>}, {pipeline_mode = #tpu.pipeline_mode<synchronous>, transform_indices = @transform_5, window_bounds = array<i64: 1, 32>}, {pipeline_mode = #tpu.pipeline_mode<synchronous>, transform_indices = @transform_6, window_bounds = array<i64: 64, 128>}, {pipeline_mode = #tpu.pipeline_mode<synchronous>, transform_indices = @transform_7, window_bounds = array<i64: 1, 128>}, {transform_indices = @transform_8, window_bounds = array<i64: 1, 256, 128>}]} {
    %c0 = arith.constant 0 : index
    %c0_0 = arith.constant 0 : index
    %c0_1 = arith.constant 0 : index
    %0 = vector.load %arg3[%c0, %c0_0, %c0_1] : memref<1x256x32xf32, #tpu.memory_space<vmem>>, vector<1x256x32xf32>
    %1 = vector.shape_cast %0 : vector<1x256x32xf32> to vector<256x32xf32>
    %c0_2 = arith.constant 0 : index
    %c0_3 = arith.constant 0 : index
    %2 = vector.load %arg6[%c0_2, %c0_3] : memref<32x32xf32, #tpu.memory_space<vmem>>, vector<32x32xf32>
    %cst = arith.constant dense<0.000000e+00> : vector<256x32xf32>
    %3 = tpu.matmul %1, %2, %cst {dimension_numbers = #tpu.dot_dimension_numbers<[1], [0], [0], [1], [0, 0, 1, 1], [], []>} : vector<256x32xf32>, vector<32x32xf32>, vector<256x32xf32> -> vector<256x32xf32>
    %c0_4 = arith.constant 0 : index
    %c0_5 = arith.constant 0 : index
    %4 = vector.load %arg7[%c0_4, %c0_5] : memref<1x32xf32, #tpu.memory_space<vmem>>, vector<1x32xf32>
    %5 = vector.broadcast %4 : vector<1x32xf32> to vector<256x32xf32>
    %6 = arith.addf %3, %5 : vector<256x32xf32>
    %cst_6 = arith.constant 0.000000e+00 : f32
    %7 = vector.broadcast %cst_6 : f32 to vector<256x32xf32>
    %cst_7 = arith.constant 0.000000e+00 : f32
    %8 = vector.broadcast %cst_7 : f32 to vector<256x32xf32>
    %c0_8 = arith.constant 0 : index
    %c0_9 = arith.constant 0 : index
    %c0_10 = arith.constant 0 : index
    %9 = vector.load %arg5[%c0_8, %c0_9, %c0_10] : memref<1x1x64xf32, #tpu.memory_space<vmem>>, vector<1x1x64xf32>
    %10 = vector.shape_cast %9 : vector<1x1x64xf32> to vector<1x64xf32>
    %11 = vector.extract_strided_slice %10 {offsets = [0, 0], sizes = [1, 32], strides = [1, 1]} : vector<1x64xf32> to vector<1x32xf32>
    %12 = vector.extract_strided_slice %10 {offsets = [0, 32], sizes = [1, 32], strides = [1, 1]} : vector<1x64xf32> to vector<1x32xf32>
    %13 = vector.broadcast %12 : vector<1x32xf32> to vector<256x32xf32>
    %14 = arith.subf %6, %13 : vector<256x32xf32>
    %cst_11 = arith.constant 5.000000e-01 : f32
    %15 = vector.broadcast %cst_11 : f32 to vector<256x32xf32>
    %16 = arith.mulf %15, %14 : vector<256x32xf32>
    %17 = math.tanh %16 : vector<256x32xf32>
    %cst_12 = arith.constant 5.000000e-01 : f32
    %18 = vector.broadcast %cst_12 : f32 to vector<256x32xf32>
    %19 = arith.mulf %18, %17 : vector<256x32xf32>
    %cst_13 = arith.constant 5.000000e-01 : f32
    %20 = vector.broadcast %cst_13 : f32 to vector<256x32xf32>
    %21 = arith.addf %19, %20 : vector<256x32xf32>
    %22 = vector.broadcast %11 : vector<1x32xf32> to vector<256x32xf32>
    %23 = arith.mulf %22, %21 : vector<256x32xf32>
    %24 = arith.addf %7, %23 : vector<256x32xf32>
    %25 = arith.addf %8, %21 : vector<256x32xf32>
    %c0_14 = arith.constant 0 : index
    %c0_15 = arith.constant 0 : index
    %26 = vector.load %arg2[%c0_14, %c0_15] : memref<256x128xf32, #tpu.memory_space<vmem>>, vector<256x128xf32>
    %c0_16 = arith.constant 0 : index
    %c0_17 = arith.constant 0 : index
    %c0_18 = arith.constant 0 : index
    %27 = vector.load %arg4[%c0_16, %c0_17, %c0_18] : memref<1x128x192xf32, #tpu.memory_space<vmem>>, vector<1x128x64xf32>
    %28 = vector.shape_cast %27 : vector<1x128x64xf32> to vector<128x64xf32>
    %cst_19 = arith.constant dense<0.000000e+00> : vector<256x64xf32>
    %29 = tpu.matmul %26, %28, %cst_19 {dimension_numbers = #tpu.dot_dimension_numbers<[1], [0], [0], [1], [0, 0, 1, 1], [], []>} : vector<256x128xf32>, vector<128x64xf32>, vector<256x64xf32> -> vector<256x64xf32>
    %30 = vector.extract_strided_slice %29 {offsets = [0, 0], sizes = [256, 32], strides = [1, 1]} : vector<256x64xf32> to vector<256x32xf32>
    %31 = vector.extract_strided_slice %29 {offsets = [0, 32], sizes = [256, 32], strides = [1, 1]} : vector<256x64xf32> to vector<256x32xf32>
    %32 = arith.subf %6, %31 : vector<256x32xf32>
    %cst_20 = arith.constant 5.000000e-01 : f32
    %33 = vector.broadcast %cst_20 : f32 to vector<256x32xf32>
    %34 = arith.mulf %33, %32 : vector<256x32xf32>
    %35 = math.tanh %34 : vector<256x32xf32>
    %cst_21 = arith.constant 5.000000e-01 : f32
    %36 = vector.broadcast %cst_21 : f32 to vector<256x32xf32>
    %37 = arith.mulf %36, %35 : vector<256x32xf32>
    %cst_22 = arith.constant 5.000000e-01 : f32
    %38 = vector.broadcast %cst_22 : f32 to vector<256x32xf32>
    %39 = arith.addf %37, %38 : vector<256x32xf32>
    %40 = arith.mulf %30, %39 : vector<256x32xf32>
    %41 = arith.addf %24, %40 : vector<256x32xf32>
    %42 = arith.addf %25, %39 : vector<256x32xf32>
    %c0_23 = arith.constant 0 : index
    %c0_24 = arith.constant 0 : index
    %c64 = arith.constant 64 : index
    %43 = vector.load %arg4[%c0_23, %c0_24, %c64] : memref<1x128x192xf32, #tpu.memory_space<vmem>>, vector<1x128x64xf32>
    %44 = vector.shape_cast %43 : vector<1x128x64xf32> to vector<128x64xf32>
    %cst_25 = arith.constant dense<0.000000e+00> : vector<256x64xf32>
    %45 = tpu.matmul %26, %44, %cst_25 {dimension_numbers = #tpu.dot_dimension_numbers<[1], [0], [0], [1], [0, 0, 1, 1], [], []>} : vector<256x128xf32>, vector<128x64xf32>, vector<256x64xf32> -> vector<256x64xf32>
    %46 = vector.extract_strided_slice %45 {offsets = [0, 0], sizes = [256, 32], strides = [1, 1]} : vector<256x64xf32> to vector<256x32xf32>
    %47 = vector.extract_strided_slice %45 {offsets = [0, 32], sizes = [256, 32], strides = [1, 1]} : vector<256x64xf32> to vector<256x32xf32>
    %48 = arith.subf %6, %47 : vector<256x32xf32>
    %cst_26 = arith.constant 5.000000e-01 : f32
    %49 = vector.broadcast %cst_26 : f32 to vector<256x32xf32>
    %50 = arith.mulf %49, %48 : vector<256x32xf32>
    %51 = math.tanh %50 : vector<256x32xf32>
    %cst_27 = arith.constant 5.000000e-01 : f32
    %52 = vector.broadcast %cst_27 : f32 to vector<256x32xf32>
    %53 = arith.mulf %52, %51 : vector<256x32xf32>
    %cst_28 = arith.constant 5.000000e-01 : f32
    %54 = vector.broadcast %cst_28 : f32 to vector<256x32xf32>
    %55 = arith.addf %53, %54 : vector<256x32xf32>
    %56 = arith.mulf %46, %55 : vector<256x32xf32>
    %57 = arith.addf %41, %56 : vector<256x32xf32>
    %58 = arith.addf %42, %55 : vector<256x32xf32>
    %c0_29 = arith.constant 0 : index
    %c0_30 = arith.constant 0 : index
    %c128 = arith.constant 128 : index
    %59 = vector.load %arg4[%c0_29, %c0_30, %c128] : memref<1x128x192xf32, #tpu.memory_space<vmem>>, vector<1x128x64xf32>
    %60 = vector.shape_cast %59 : vector<1x128x64xf32> to vector<128x64xf32>
    %cst_31 = arith.constant dense<0.000000e+00> : vector<256x64xf32>
    %61 = tpu.matmul %26, %60, %cst_31 {dimension_numbers = #tpu.dot_dimension_numbers<[1], [0], [0], [1], [0, 0, 1, 1], [], []>} : vector<256x128xf32>, vector<128x64xf32>, vector<256x64xf32> -> vector<256x64xf32>
    %62 = vector.extract_strided_slice %61 {offsets = [0, 0], sizes = [256, 32], strides = [1, 1]} : vector<256x64xf32> to vector<256x32xf32>
    %63 = vector.extract_strided_slice %61 {offsets = [0, 32], sizes = [256, 32], strides = [1, 1]} : vector<256x64xf32> to vector<256x32xf32>
    %64 = arith.subf %6, %63 : vector<256x32xf32>
    %cst_32 = arith.constant 5.000000e-01 : f32
    %65 = vector.broadcast %cst_32 : f32 to vector<256x32xf32>
    %66 = arith.mulf %65, %64 : vector<256x32xf32>
    %67 = math.tanh %66 : vector<256x32xf32>
    %cst_33 = arith.constant 5.000000e-01 : f32
    %68 = vector.broadcast %cst_33 : f32 to vector<256x32xf32>
    %69 = arith.mulf %68, %67 : vector<256x32xf32>
    %cst_34 = arith.constant 5.000000e-01 : f32
    %70 = vector.broadcast %cst_34 : f32 to vector<256x32xf32>
    %71 = arith.addf %69, %70 : vector<256x32xf32>
    %72 = arith.mulf %62, %71 : vector<256x32xf32>
    %73 = arith.addf %57, %72 : vector<256x32xf32>
    %74 = arith.addf %58, %71 : vector<256x32xf32>
    %cst_35 = arith.constant 9.99999996E-13 : f32
    %75 = vector.broadcast %cst_35 : f32 to vector<256x32xf32>
    %76 = arith.maximumf %74, %75 : vector<256x32xf32>
    %77 = tpu.reciprocal %76 : vector<256x32xf32> -> vector<256x32xf32>
    %78 = arith.mulf %73, %77 : vector<256x32xf32>
    %c0_36 = arith.constant 0 : index
    %c0_37 = arith.constant 0 : index
    %79 = vector.load %arg8[%c0_36, %c0_37] : memref<64x128xf32, #tpu.memory_space<vmem>>, vector<64x128xf32>
    %80 = vector.extract_strided_slice %79 {offsets = [0, 0], sizes = [32, 128], strides = [1, 1]} : vector<64x128xf32> to vector<32x128xf32>
    %cst_38 = arith.constant dense<0.000000e+00> : vector<256x128xf32>
    %81 = tpu.matmul %78, %80, %cst_38 {dimension_numbers = #tpu.dot_dimension_numbers<[1], [0], [0], [1], [0, 0, 1, 1], [], []>} : vector<256x32xf32>, vector<32x128xf32>, vector<256x128xf32> -> vector<256x128xf32>
    %82 = vector.extract_strided_slice %79 {offsets = [32, 0], sizes = [32, 128], strides = [1, 1]} : vector<64x128xf32> to vector<32x128xf32>
    %cst_39 = arith.constant dense<0.000000e+00> : vector<256x128xf32>
    %83 = tpu.matmul %1, %82, %cst_39 {dimension_numbers = #tpu.dot_dimension_numbers<[1], [0], [0], [1], [0, 0, 1, 1], [], []>} : vector<256x32xf32>, vector<32x128xf32>, vector<256x128xf32> -> vector<256x128xf32>
    %84 = arith.addf %81, %83 : vector<256x128xf32>
    %c0_40 = arith.constant 0 : index
    %c0_41 = arith.constant 0 : index
    %85 = vector.load %arg9[%c0_40, %c0_41] : memref<1x128xf32, #tpu.memory_space<vmem>>, vector<1x128xf32>
    %86 = vector.broadcast %85 : vector<1x128xf32> to vector<256x128xf32>
    %87 = arith.addf %84, %86 : vector<256x128xf32>
    %cst_42 = arith.constant 0.000000e+00 : f32
    %88 = vector.broadcast %cst_42 : f32 to vector<256x128xf32>
    %89 = arith.maximumf %87, %88 : vector<256x128xf32>
    %c0_43 = arith.constant 0 : index
    %c0_44 = arith.constant 0 : index
    %c0_45 = arith.constant 0 : index
    %90 = vector.load %arg10[%c0_43, %c0_44, %c0_45] : memref<1x256x128xf32, #tpu.memory_space<vmem>>, vector<1x256x128xf32>
    %91 = vector.shape_cast %90 : vector<1x256x128xf32> to vector<256x128xf32>
    %92 = vector.shape_cast %89 : vector<256x128xf32> to vector<1x256x128xf32>
    tpu.vector_store %arg10[%c0_43, %c0_44, %c0_45], %92 {strides = array<i32>} : memref<1x256x128xf32, #tpu.memory_space<vmem>>, vector<1x256x128xf32>,
    return
  }
  func.func @transform_0(%arg0: i32, %arg1: i32) -> (i32, i32) {
    %c0_i32 = arith.constant 0 : i32
    %c0_i32_0 = arith.constant 0 : i32
    return %arg0, %c0_i32 : i32, i32
  }
  func.func @transform_1(%arg0: i32, %arg1: i32) -> (i32, i32, i32) {
    %c0_i32 = arith.constant 0 : i32
    %c0_i32_0 = arith.constant 0 : i32
    return %arg1, %arg0, %c0_i32 : i32, i32, i32
  }
  func.func @transform_2(%arg0: i32, %arg1: i32) -> (i32, i32, i32) {
    %c0_i32 = arith.constant 0 : i32
    %c0_i32_0 = arith.constant 0 : i32
    %c0_i32_1 = arith.constant 0 : i32
    return %arg1, %c0_i32, %c0_i32_0 : i32, i32, i32
  }
  func.func @transform_3(%arg0: i32, %arg1: i32) -> (i32, i32, i32) {
    %c0_i32 = arith.constant 0 : i32
    %c0_i32_0 = arith.constant 0 : i32
    %c0_i32_1 = arith.constant 0 : i32
    return %arg1, %c0_i32, %c0_i32_0 : i32, i32, i32
  }
  func.func @transform_4(%arg0: i32, %arg1: i32) -> (i32, i32) {
    %c0_i32 = arith.constant 0 : i32
    %c0_i32_0 = arith.constant 0 : i32
    %c0_i32_1 = arith.constant 0 : i32
    return %c0_i32, %c0_i32_0 : i32, i32
  }
  func.func @transform_5(%arg0: i32, %arg1: i32) -> (i32, i32) {
    %c0_i32 = arith.constant 0 : i32
    %c0_i32_0 = arith.constant 0 : i32
    %c0_i32_1 = arith.constant 0 : i32
    return %c0_i32, %c0_i32_0 : i32, i32
  }
  func.func @transform_6(%arg0: i32, %arg1: i32) -> (i32, i32) {
    %c0_i32 = arith.constant 0 : i32
    %c0_i32_0 = arith.constant 0 : i32
    %c0_i32_1 = arith.constant 0 : i32
    return %c0_i32, %c0_i32_0 : i32, i32
  }
  func.func @transform_7(%arg0: i32, %arg1: i32) -> (i32, i32) {
    %c0_i32 = arith.constant 0 : i32
    %c0_i32_0 = arith.constant 0 : i32
    %c0_i32_1 = arith.constant 0 : i32
    return %c0_i32, %c0_i32_0 : i32, i32
  }
  func.func @transform_8(%arg0: i32, %arg1: i32) -> (i32, i32, i32) {
    %c0_i32 = arith.constant 0 : i32
    %c0_i32_0 = arith.constant 0 : i32
    return %arg1, %arg0, %c0_i32 : i32, i32, i32
  }
}

</mosaic_0001>

<bundles_post_ra>
// kernel: tpu_custom_call.1
= control target key start
LH: loop header
LB: loop body
LE: loop exit
PB: predicated region body
PF: predicated region fallthrough
CT: control target
= control target key end

     0   :  { %13 = vsyncpa [#allocation3], 0  ;;  %s7321_s0 = inlined_call_operand.vmem [shape: f32[256,128], index: 0, kind: input, shape index: {}]   ;;  %s7322_s1 = inlined_call_operand.vmem [shape: f32[2,256,32], index: 1, kind: input, shape index: {}]   ;;  %s7323_s2 = inlined_call_operand.vmem [shape: f32[2,128,192], index: 2, kind: input, shape index: {}]   ;;  %s7324_s3 = inlined_call_operand.vmem [shape: f32[2,1,64], index: 3, kind: input, shape index: {}]   ;;  %s7325_s4 = inlined_call_operand.vmem [shape: f32[32,32], index: 4, kind: input, shape index: {}]   ;;  %s7326_s5 = inlined_call_operand.vmem [shape: f32[1,32], index: 5, kind: input, shape index: {}]   ;;  %s7327_s6 = inlined_call_operand.vmem [shape: f32[64,128], index: 6, kind: input, shape index: {}]   ;;  %s7328_s7 = inlined_call_operand.vmem [shape: f32[1,128], index: 7, kind: input, shape index: {}]   ;;  %s7329_s8 = inlined_call_operand.hbm [shape: f32[2,256,128], index: 8, kind: output, shape index: {}]  }
   0x1   :  { %15 = vsyncpa [#allocation3 + $0x1], 0  ;;  %s5389_s27 = smov 0   ;;  %s5391_s28 = smov 0  }
   0x2   :  { %s5393_s29 = smov 0   ;;  %s5395_s30 = smov 0  }
   0x3   :  { %s5397_s9 = smov 0   ;;  %s5399_s10 = smov 0  }
   0x4 LB: > { %s3861_s11 = sadd.s32 4294967295, %s5337_s10   ;;  %s3862_s12 = sadd.s32 4294967294, %s5337_s10   ;;  %s5337_s10 = sphi %s5399_s10, %s21_s10   ;;  %s5333_s9 = sphi %s5397_s9, %s7858_s9   ;;  %s5329_s30 = sphi %s5395_s30, %s7857_s30   ;;  %s5325_s29 = sphi %s5393_s29, %s7856_s29   ;;  %s5321_s28 = sphi %s5391_s28, %s7855_s28   ;;  %s5317_s27 = sphi %s5389_s27, %s7854_s27  }
   0x5   : > { %s30_s13 = sadd.s32 1, %s5333_s9  ;;  %s232_s14 = sadd.s32 1, %s5325_s29 }
   0x6   : > { %p31_p0 = scmp.ge.s32.totalorder %s30_s13, 2  ;;  %p242_p1 = scmp.ne.s32.totalorder %s5325_s29, %s5321_s28 }
   0x7   : > { %p243_p2 = scmp.eq.s32.totalorder %s3861_s11, 1  ;;  %p248_p3 = scmp.ne.s32.totalorder %s5321_s28, %s5317_s27 }
   0x8   : > { %s7860_s13 = smov (%p31_p0, %s30_s13), 0  ;;  %p249_p5 = scmp.eq.s32.totalorder %s3862_s12, 1 }
   0x9   : > { %p5429_p4 = por %p243_p2, %p242_p1  ;;  %s227_s16 = ssub.s32 %s5333_s9, %s7860_s13 }
   0xa   : > { %p3866_p6 = scmp.ge.s32.totalorder %s5337_s10, 1  ;;  %p230_p7 = scmp.eq.s32.totalorder %s227_s16, 0 }
   0xb   : > { %p5436_p8 = por %p249_p5, %p248_p3  ;;  %p315_p9 = scmp.lt.s32.totalorder %s5337_s10, 3 }
   0xc   : > { %s5442_s18 = scalar_select %p230_p7, %s5325_s29, %s232_s14  }
   0xd   : > { %p316_p10 = pnand %p3866_p6, %p315_p9 }
   0xf   : > { %319 = sbr.rel (%p316_p10) target bundleno = 962 (0x3c2), region = 52 }
  0x16   : > { %p373_p11 = scmp.lt.s32.totalorder %s5329_s30, 1  ;;  %v5448_v0 = vld [vmem:[%s7321_s0] sm:$0xff]  ;;  %v424_v2 = vld [vmem:[%s7325_s4 + $0x8] sm:$0xff]  ;;  %s5339_s16 = smov 64   ;;  %v425_v17 = vld [vmem:[%s7325_s4 + $0x10] sm:$0xff]  ;;  %vm434_vm0 = vcmask 261120  }
  0x17   : > { %4319 = vmatprep.mubr.f32.mxu1 %v5448_v0  ;;  %v423_v1 = vld [vmem:[%s7325_s4] sm:$0xff]  ;;  %v426_v24 = vld [vmem:[%s7325_s4 + $0x18] sm:$0xff]  ;;  %v5531_v52 = vld [vmem:[%s7321_s0 + $0x8] sm:$0xff]  ;;  %s5340_s26 = smov 96   ;;  %s3978_s24 = sshll.u32 %s5329_s30, 12 }
  0x18   : > { %s5452_s21 = scalar_select %p373_p11, %s5329_s30, 1  ;;  %v4639_v6 = vpack.c.bf16 %v424_v2, %v423_v1  ;;  %v4643_v25 = vpack.c.bf16 %v426_v24, %v425_v17  ;;  %v5536_v53 = vld [vmem:[%s7321_s0 + $0x10] sm:$0xff]  ;;  %v5547_v56 = vld [vmem:[%s7321_s0 + $0x18] sm:$0xff]  ;;  %v5552_v57 = vld [vmem:[%s7321_s0 + $0x20] sm:$0xff] }
  0x19   : > { %v5563_v60 = vld [vmem:[%s7321_s0 + $0x28] sm:$0xff]  ;;  %v5568_v61 = vld [vmem:[%s7321_s0 + $0x30] sm:$0xff]  ;;  %v5579_v1 = vld [vmem:[%s7321_s0 + $0x38] sm:$0xff]  ;;  %s7267_s19 = scalar_lea.hbm %s7329_s8, %s3978_s24  ;;  %s5341_s20 = smov [#allocation2]  }
  0x1a   : > { %s3976_s22 = sshll.u32 %s5452_s21, 8  ;;  %4640 = vmatprep.subr.bf16.mxu0 %v4639_v6  ;;  %v5584_v2 = vld [vmem:[%s7321_s0 + $0x40] sm:$0xff] }
  0x1b   : > { %s5461_s11 = scalar_lea.vmem %s7323_s2, %s3976_s22  ;;  %s5481_s25 = scalar_lea.vmem %s7322_s1, %s3976_s22  ;;  %4642 = vmatpush3.bf16.msra.mxu0 %v4639_v6  ;;  %v5600_v6 = vld [vmem:[%s7321_s0 + $0x50] sm:$0xff] }
  0x1c   : > { %v1054_v3 = vld [vmem:[%s5461_s11] sm:$0xff]  ;;  %v1055_v4 = vld [vmem:[%s5461_s11 + $0x10] sm:$0xff]  ;;  %4644 = vmatprep.subr.bf16.mxu0 %v4643_v25  ;;  %v392_v34 = vld [vmem:[%s5481_s25 + $0x8] sm:$0xff]  ;;  %s5625_s22 = scalar_lea.vmem %s7324_s3, %s5452_s21 }
  0x1d   : > { %v1056_v5 = vld [vmem:[%s5461_s11 + $0x20] sm:$0xff]  ;;  %v4866_v7 = vpack.i.bf16 %v1055_v4, %v1054_v3  ;;  %v4647_v8 = vpack.c.bf16 %v1055_v4, %v1054_v3  ;;  %v1057_v9 = vld [vmem:[%s5461_s11 + $0x30] sm:$0xff]  ;;  %v394_v39 = vld [vmem:[%s5481_s25 + $0x18] sm:$0xff] }
  0x1e   : > { %v1058_v10 = vld [vmem:[%s5461_s11 + $0x40] sm:$0xff]  ;;  %v1059_v11 = vld [vmem:[%s5461_s11 + $0x50] sm:$0xff]  ;;  %v4651_v12 = vpack.c.bf16 %v1057_v9, %v1056_v5  ;;  %v4871_v16 = vpack.i.bf16 %v1057_v9, %v1056_v5  ;;  %v396_v42 = vld [vmem:[%s5481_s25 + $0x28] sm:$0xff] }
  0x1f   : > { %v4876_v13 = vpack.i.bf16 %v1059_v11, %v1058_v10  ;;  %v1060_v14 = vld [vmem:[%s5461_s11 + $0x60] sm:$0xff]  ;;  %v1061_v15 = vld [vmem:[%s5461_s11 + $0x70] sm:$0xff]  ;;  %4867 = vrot.lane.b32.xlu0 %v4866_v7, %s5339_s16  ;;  %4648 = vmatprep.subr.bf16.mxu1 %v4647_v8  ;;  %v4655_v21 = vpack.c.bf16 %v1059_v11, %v1058_v10  ;;  %v398_v45 = vld [vmem:[%s5481_s25 + $0x38] sm:$0xff] }
  0x20   : > { %4650 = vmatpush3.bf16.msra.mxu1 %v4647_v8  ;;  %v4881_v18 = vpack.i.bf16 %v1061_v15, %v1060_v14  ;;  %v1062_v19 = vld [vmem:[%s5461_s11 + $0x80] sm:$0xff]  ;;  %v1063_v20 = vld [vmem:[%s5461_s11 + $0x90] sm:$0xff]  ;;  %v4659_v31 = vpack.c.bf16 %v1061_v15, %v1060_v14  ;;  %4646 = vmatpush3.bf16.msra.mxu0 %v4643_v25  ;;  %v400_v48 = vld [vmem:[%s5481_s25 + $0x48] sm:$0xff] }
  0x21   : > { %4877 = vrot.lane.b32.xlu1 %v4876_v13, %s5339_s16  ;;  %4652 = vmatprep.subr.bf16.mxu1 %v4651_v12  ;;  %v1064_v22 = vld [vmem:[%s5461_s11 + $0xa0] sm:$0xff]  ;;  %v1065_v23 = vld [vmem:[%s5461_s11 + $0xb0] sm:$0xff]  ;;  %v4886_v27 = vpack.i.bf16 %v1063_v20, %v1062_v19  ;;  %v4663_v38 = vpack.c.bf16 %v1063_v20, %v1062_v19  ;;  %v402_v50 = vld [vmem:[%s5481_s25 + $0x58] sm:$0xff] }
  0x22   : > { %v5492_v26 = vld [vmem:[%s5481_s25] sm:$0xff]  ;;  %v4891_v28 = vpack.i.bf16 %v1065_v23, %v1064_v22  ;;  %v1067_v30 = vld [vmem:[%s5461_s11 + $0xd0] sm:$0xff]  ;;  %v4667_v41 = vpack.c.bf16 %v1065_v23, %v1064_v22  ;;  %v404_v54 = vld [vmem:[%s5481_s25 + $0x68] sm:$0xff] }
  0x23   : > { %4872 = vrot.lane.b32.xlu0 %v4871_v16, %s5339_s16  ;;  %4239 = vmatprep.mubr.msk.f32.mxu0 %vm434_vm0, %v5492_v26  ;;  %v1066_v29 = vld [vmem:[%s5461_s11 + $0xc0] sm:$0xff]  ;;  %v1069_v33 = vld [vmem:[%s5461_s11 + $0xf0] sm:$0xff]  ;;  %v406_v58 = vld [vmem:[%s5481_s25 + $0x78] sm:$0xff] }
  0x24   : > { %4654 = vmatpush3.bf16.msra.mxu1 %v4651_v12  ;;  %v1068_v32 = vld [vmem:[%s5461_s11 + $0xe0] sm:$0xff]  ;;  %v4896_v35 = vpack.i.bf16 %v1067_v30, %v1066_v29  ;;  %v393_v36 = vld [vmem:[%s5481_s25 + $0x10] sm:$0xff]  ;;  %4240 = vmatmul.mubr.msk.f32.vlgmr.msra.gmra.mrb[0].mxu0 %vm434_vm0, %v392_v34  ;;  %v4671_v44 = vpack.c.bf16 %v1067_v30, %v1066_v29  ;;  %v408_v62 = vld [vmem:[%s5481_s25 + $0x88] sm:$0xff] }
  0x25   : > { %4882 = vrot.lane.b32.xlu1 %v4881_v18, %s5339_s16  ;;  %4656 = vmatprep.subr.bf16.mxu1 %v4655_v21  ;;  %v4901_v37 = vpack.i.bf16 %v1069_v33, %v1068_v32  ;;  %v395_v40 = vld [vmem:[%s5481_s25 + $0x20] sm:$0xff]  ;;  %v397_v43 = vld [vmem:[%s5481_s25 + $0x30] sm:$0xff]  ;;  %v4675_v47 = vpack.c.bf16 %v1069_v33, %v1068_v32  ;;  %v410_v3 = vld [vmem:[%s5481_s25 + $0x98] sm:$0xff] }
  0x26   : > { %4242 = vmatprep.mubr.msk.f32.mxu0 %vm434_vm0, %v393_v36  ;;  %v399_v46 = vld [vmem:[%s5481_s25 + $0x40] sm:$0xff]  ;;  %v401_v49 = vld [vmem:[%s5481_s25 + $0x50] sm:$0xff]  ;;  %v5595_v5 = vld [vmem:[%s7321_s0 + $0x48] sm:$0xff] }
  0x27   : > { %4887 = vrot.lane.b32.xlu0 %v4886_v27, %s5339_s16  ;;  %v403_v51 = vld [vmem:[%s5481_s25 + $0x60] sm:$0xff]  ;;  %v405_v55 = vld [vmem:[%s5481_s25 + $0x70] sm:$0xff]  ;;  %v412_v7 = vld [vmem:[%s5481_s25 + $0xa8] sm:$0xff] }
  0x28   : > { %4658 = vmatpush3.bf16.msra.mxu1 %v4655_v21  ;;  %4243 = vmatmul.mubr.msk.f32.gmra.mrb[2].mxu0 %vm434_vm0, %v394_v39  ;;  %v407_v59 = vld [vmem:[%s5481_s25 + $0x80] sm:$0xff]  ;;  %v409_v63 = vld [vmem:[%s5481_s25 + $0x90] sm:$0xff]  ;;  %v5611_v9 = vld [vmem:[%s7321_s0 + $0x58] sm:$0xff] }
  0x29   : > { %4892 = vrot.lane.b32.xlu1 %v4891_v28, %s5339_s16  ;;  %4660 = vmatprep.subr.bf16.mxu1 %v4659_v31  ;;  %v411_v4 = vld [vmem:[%s5481_s25 + $0xa0] sm:$0xff]  ;;  %v413_v8 = vld [vmem:[%s5481_s25 + $0xb0] sm:$0xff]  ;;  %v414_v11 = vld [vmem:[%s5481_s25 + $0xb8] sm:$0xff] }
  0x2a   : > { %4245 = vmatprep.mubr.msk.f32.mxu0 %vm434_vm0, %v395_v40  ;;  %v5616_v10 = vld [vmem:[%s7321_s0 + $0x60] sm:$0xff]  ;;  %v5633_v13 = vld [vmem:[%s7321_s0 + $0x68] sm:$0xff]  ;;  %v5638_v14 = vld [vmem:[%s7321_s0 + $0x70] sm:$0xff] }
  0x2b   : > { %4897 = vrot.lane.b32.xlu0 %v4896_v35, %s5339_s16  ;;  %v415_v12 = vld [vmem:[%s5481_s25 + $0xc0] sm:$0xff]  ;;  %v416_v16 = vld [vmem:[%s5481_s25 + $0xc8] sm:$0xff]  ;;  %v417_v17 = vld [vmem:[%s5481_s25 + $0xd0] sm:$0xff] }
  0x2c   : > { %4662 = vmatpush3.bf16.msra.mxu1 %v4659_v31  ;;  %4246 = vmatmul.mubr.msk.f32.gmra.mrb[4].mxu0 %vm434_vm0, %v396_v42  ;;  %v5642_v15 = vld [vmem:[%s5625_s22] ss:$0 sm:$0xff]  ;;  %v5652_v18 = vld [vmem:[%s7321_s0 + $0x78] sm:$0xff]  ;;  %v5670_v22 = vld [vmem:[%s7321_s0 + $0x88] sm:$0xff] }
  0x2d   : > { %4902 = vrot.lane.b32.xlu1 %v4901_v37, %s5339_s16  ;;  %4664 = vmatprep.subr.bf16.mxu1 %v4663_v38  ;;  %v5657_v19 = vld [vmem:[%s7321_s0 + $0x80] sm:$0xff]  ;;  %v418_v20 = vld [vmem:[%s5481_s25 + $0xd8] sm:$0xff]  ;;  %v5675_v23 = vld [vmem:[%s7321_s0 + $0x90] sm:$0xff] }
  0x2e   : > { %4248 = vmatprep.mubr.msk.f32.mxu0 %vm434_vm0, %v397_v43  ;;  %v419_v21 = vld [vmem:[%s5481_s25 + $0xe0] sm:$0xff]  ;;  %v420_v24 = vld [vmem:[%s5481_s25 + $0xe8] sm:$0xff]  ;;  %v421_v25 = vld [vmem:[%s5481_s25 + $0xf0] sm:$0xff] }
  0x2f   : > { %762 = vrot.lane.b32.xlu0 %v5642_v15, %s5340_s26  ;;  %v5686_v27 = vld [vmem:[%s7321_s0 + $0x98] sm:$0xff]  ;;  %v5691_v28 = vld [vmem:[%s7321_s0 + $0xa0] sm:$0xff]  ;;  %v5701_v30 = vld [vmem:[%s7321_s0 + $0xa8] sm:$0xff] }
  0x30   : > { %4666 = vmatpush3.bf16.msra.mxu1 %v4663_v38  ;;  %4249 = vmatmul.mubr.msk.f32.gmra.mrb[6].mxu0 %vm434_vm0, %v398_v45  ;;  %v422_v29 = vld [vmem:[%s5481_s25 + $0xf8] sm:$0xff]  ;;  %v5706_v31 = vld [vmem:[%s7321_s0 + $0xb0] sm:$0xff]  ;;  %v5720_v33 = vld [vmem:[%s7321_s0 + $0xc0] sm:$0xff] }
  0x31   : > { %4668 = vmatprep.subr.bf16.mxu1 %v4667_v41  ;;  %4251 = vmatprep.mubr.msk.f32.mxu0 %vm434_vm0, %v399_v46  ;;  %v5715_v32 = vld [vmem:[%s7321_s0 + $0xb8] sm:$0xff]  ;;  %v5727_v34 = vld [vmem:[%s7321_s0 + $0xc8] sm:$0xff]  ;;  %v5732_v35 = vld [vmem:[%s7321_s0 + $0xd0] sm:$0xff] }
  0x32   : > { %v5739_v36 = vld [vmem:[%s7321_s0 + $0xd8] sm:$0xff]  ;;  %v5744_v37 = vld [vmem:[%s7321_s0 + $0xe0] sm:$0xff]  ;;  %v5751_v38 = vld [vmem:[%s7321_s0 + $0xe8] sm:$0xff] }
  0x33   : > { %v5756_v39 = vld [vmem:[%s7321_s0 + $0xf0] sm:$0xff]  ;;  %v5763_v40 = vld [vmem:[%s7321_s0 + $0xf8] sm:$0xff] }
  0x34   : > { %4670 = vmatpush3.bf16.msra.mxu1 %v4667_v41  ;;  %4252 = vmatmul.mubr.msk.f32.gmra.mrb[8].mxu0 %vm434_vm0, %v400_v48 }
  0x35   : > { %4672 = vmatprep.subr.bf16.mxu1 %v4671_v44  ;;  %4254 = vmatprep.mubr.msk.f32.mxu0 %vm434_vm0, %v401_v49 }
  0x38   : > { %4674 = vmatpush3.bf16.msra.mxu1 %v4671_v44  ;;  %4255 = vmatmul.mubr.msk.f32.gmra.mrb[10].mxu0 %vm434_vm0, %v402_v50 }
  0x39   : > { %4676 = vmatprep.subr.bf16.mxu1 %v4675_v47  ;;  %4257 = vmatprep.mubr.msk.f32.mxu0 %vm434_vm0, %v403_v51 }
  0x3c   : > { %4678 = vmatpush3.bf16.msra.mxu1 %v4675_v47  ;;  %4258 = vmatmul.mubr.msk.f32.gmra.mrb[12].mxu0 %vm434_vm0, %v404_v54 }
  0x3d   : > { %4260 = vmatprep.mubr.msk.f32.mxu0 %vm434_vm0, %v405_v55 }
  0x3f   : > { %4320 = vmatmul.mubr.f32.vlgmr.msra.gmra.mrb[0].mxu1 %v5531_v52 }
  0x40   : > { %4322 = vmatprep.mubr.f32.mxu1 %v5536_v53  ;;  %4261 = vmatmul.mubr.msk.f32.gmra.mrb[14].mxu0 %vm434_vm0, %v406_v58 }
  0x41   : > { %4263 = vmatprep.mubr.msk.f32.mxu0 %vm434_vm0, %v407_v59 }
  0x43   : > { %4323 = vmatmul.mubr.f32.gmra.mrb[2].mxu1 %v5547_v56 }
  0x44   : > { %4325 = vmatprep.mubr.f32.mxu1 %v5552_v57  ;;  %4264 = vmatmul.mubr.msk.f32.gmra.mrb[16].mxu0 %vm434_vm0, %v408_v62 }
  0x45   : > { %4266 = vmatprep.mubr.msk.f32.mxu0 %vm434_vm0, %v409_v63 }
  0x47   : > { %4326 = vmatmul.mubr.f32.gmra.mrb[4].mxu1 %v5563_v60 }
  0x48   : > { %4328 = vmatprep.mubr.f32.mxu1 %v5568_v61  ;;  %4267 = vmatmul.mubr.msk.f32.gmra.mrb[18].mxu0 %vm434_vm0, %v410_v3 }
  0x49   : > { %4269 = vmatprep.mubr.msk.f32.mxu0 %vm434_vm0, %v411_v4 }
  0x4b   : > { %4329 = vmatmul.mubr.f32.gmra.mrb[6].mxu1 %v5579_v1 }
  0x4c   : > { %4331 = vmatprep.mubr.f32.mxu1 %v5584_v2  ;;  %4270 = vmatmul.mubr.msk.f32.gmra.mrb[20].mxu0 %vm434_vm0, %v412_v7 }
  0x4d   : > { %4272 = vmatprep.mubr.msk.f32.mxu0 %vm434_vm0, %v413_v8 }
  0x4f   : > { %4332 = vmatmul.mubr.f32.gmra.mrb[8].mxu1 %v5595_v5 }
  0x50   : > { %4334 = vmatprep.mubr.f32.mxu1 %v5600_v6  ;;  %4273 = vmatmul.mubr.msk.f32.gmra.mrb[22].mxu0 %vm434_vm0, %v414_v11 }
  0x51   : > { %4275 = vmatprep.mubr.msk.f32.mxu0 %vm434_vm0, %v415_v12 }
  0x53   : > { %4335 = vmatmul.mubr.f32.gmra.mrb[10].mxu1 %v5611_v9 }
  0x54   : > { %4337 = vmatprep.mubr.f32.mxu1 %v5616_v10  ;;  %4276 = vmatmul.mubr.msk.f32.gmra.mrb[24].mxu0 %vm434_vm0, %v416_v16 }
  0x55   : > { %4278 = vmatprep.mubr.msk.f32.mxu0 %vm434_vm0, %v417_v17 }
  0x57   : > { %4338 = vmatmul.mubr.f32.gmra.mrb[12].mxu1 %v5633_v13 }
  0x58   : > { %4340 = vmatprep.mubr.f32.mxu1 %v5638_v14  ;;  %4279 = vmatmul.mubr.msk.f32.gmra.mrb[26].mxu0 %vm434_vm0, %v418_v20 }
  0x59   : > { %4281 = vmatprep.mubr.msk.f32.mxu0 %vm434_vm0, %v419_v21 }
  0x5b   : > { %4341 = vmatmul.mubr.f32.gmra.mrb[14].mxu1 %v5652_v18 }
  0x5c   : > { %4343 = vmatprep.mubr.f32.mxu1 %v5657_v19  ;;  %4282 = vmatmul.mubr.msk.f32.gmra.mrb[28].mxu0 %vm434_vm0, %v420_v24 }
  0x5d   : > { %4284 = vmatprep.mubr.msk.f32.mxu0 %vm434_vm0, %v421_v25 }
  0x5f   : > { %4344 = vmatmul.mubr.f32.gmra.mrb[16].mxu1 %v5670_v22 }
  0x60   : > { %4346 = vmatprep.mubr.f32.mxu1 %v5675_v23  ;;  %4285 = vmatmul.mubr.msk.f32.gmra.mrb[30].mxu0 %vm434_vm0, %v422_v29 }
  0x61   : > { %4399 = vmatprep.mubr.f32.mxu0 %v5448_v0 }
  0x63   : > { %4347 = vmatmul.mubr.f32.gmra.mrb[18].mxu1 %v5686_v27 }
  0x64   : > { %4349 = vmatprep.mubr.f32.mxu1 %v5691_v28 }
  0x67   : > { %4350 = vmatmul.mubr.f32.gmra.mrb[20].mxu1 %v5701_v30 }
  0x68   : > { %4352 = vmatprep.mubr.f32.mxu1 %v5706_v31 }
  0x6b   : > { %4353 = vmatmul.mubr.f32.gmra.mrb[22].mxu1 %v5715_v32 }
  0x6c   : > { %4355 = vmatprep.mubr.f32.mxu1 %v5720_v33 }
  0x6f   : > { %4356 = vmatmul.mubr.f32.gmra.mrb[24].mxu1 %v5727_v34 }
  0x70   : > { %4358 = vmatprep.mubr.f32.mxu1 %v5732_v35 }
  0x73   : > { %4359 = vmatmul.mubr.f32.gmra.mrb[26].mxu1 %v5739_v36 }
  0x74   : > { %4361 = vmatprep.mubr.f32.mxu1 %v5744_v37 }
  0x77   : > { %4362 = vmatmul.mubr.f32.gmra.mrb[28].mxu1 %v5751_v38 }
  0x78   : > { %4364 = vmatprep.mubr.f32.mxu1 %v5756_v39 }
  0x7b   : > { %4365 = vmatmul.mubr.f32.gmra.mrb[30].mxu1 %v5763_v40 }
  0x7c   : > { %4408 = vmatprep.mubr.f32.mxu1 %v5568_v61 }
  0x91   : > { %v4868_v41 = vpop.permute.xlu0 %4867 }
  0x92   : > { %v4870_v42 = vunpack.i.h.bf16 %v4868_v41  ;;  %v4869_v43 = vunpack.i.l.bf16 %v4868_v41 }
  0x93   : > { %v4878_v44 = vpop.permute.xlu1 %4877 }
  0x94   : > { %v4679_v45 = vpack.c.bf16 %v4870_v42, %v4869_v43  ;;  %v4880_v46 = vunpack.i.h.bf16 %v4878_v44  ;;  %v4879_v47 = vunpack.i.l.bf16 %v4878_v44  ;;  %v2352_v43 = vld [vmem:[%s5461_s11 + $0x8] sm:$0xff]  ;;  %v2353_v44 = vld [vmem:[%s5461_s11 + $0x18] sm:$0xff] }
  0x95   : > { %v4873_v48 = vpop.permute.xlu0 %4872 }
  0x96   : > { %v4875_v49 = vunpack.i.h.bf16 %v4873_v48  ;;  %v4874_v50 = vunpack.i.l.bf16 %v4873_v48  ;;  %4680 = vmatprep.subr.bf16.mxu0 %v4679_v45  ;;  %4759 = vmatprep.subr.bf16.mxu1 %v4679_v45  ;;  %v4687_v55 = vpack.c.bf16 %v4880_v46, %v4879_v47  ;;  %v2354_v46 = vld [vmem:[%s5461_s11 + $0x28] sm:$0xff]  ;;  %v2355_v47 = vld [vmem:[%s5461_s11 + $0x38] sm:$0xff] }
  0x97   : > { %v4883_v51 = vpop.permute.xlu1 %4882  ;;  %4682 = vmatpush3.bf16.msra.mxu0 %v4679_v45  ;;  %4767 = vmatpush3.bf16.msra.mxu1 %v4679_v45  ;;  %v4711_v45 = vpack.c.bf16 %v2353_v44, %v2352_v43  ;;  %v4715_v48 = vpack.c.bf16 %v2355_v47, %v2354_v46 }
  0x98   : > { %v4683_v54 = vpack.c.bf16 %v4875_v49, %v4874_v50  ;;  %v4885_v58 = vunpack.i.h.bf16 %v4883_v51  ;;  %v4884_v59 = vunpack.i.l.bf16 %v4883_v51  ;;  %v2356_v49 = vld [vmem:[%s5461_s11 + $0x48] sm:$0xff]  ;;  %v2357_v50 = vld [vmem:[%s5461_s11 + $0x58] sm:$0xff] }
  0x99   : > { %v4888_v62 = vpop.permute.xlu0 %4887  ;;  %v4719_v51 = vpack.c.bf16 %v2357_v50, %v2356_v49 }
  0x9a   : > { %4684 = vmatprep.subr.bf16.mxu0 %v4683_v54  ;;  %4760 = vmatprep.subr.bf16.mxu1 %v4683_v54  ;;  %v4691_v63 = vpack.c.bf16 %v4885_v58, %v4884_v59  ;;  %v4890_v3 = vunpack.i.h.bf16 %v4888_v62  ;;  %v4889_v4 = vunpack.i.l.bf16 %v4888_v62  ;;  %v2360_v59 = vld [vmem:[%s5461_s11 + $0x88] sm:$0xff]  ;;  %v2361_v62 = vld [vmem:[%s5461_s11 + $0x98] sm:$0xff] }
  0x9b   : > { %4686 = vmatpush3.bf16.msra.mxu0 %v4683_v54  ;;  %4768 = vmatpush3.bf16.msra.mxu1 %v4683_v54  ;;  %v4893_v7 = vpop.permute.xlu1 %4892  ;;  %v2358_v54 = vld [vmem:[%s5461_s11 + $0x68] sm:$0xff] }
  0x9c   : > { %4688 = vmatprep.subr.bf16.mxu0 %v4687_v55  ;;  %4761 = vmatprep.subr.bf16.mxu1 %v4687_v55  ;;  %v4695_v8 = vpack.c.bf16 %v4890_v3, %v4889_v4  ;;  %v4895_v11 = vunpack.i.h.bf16 %v4893_v7  ;;  %v4894_v12 = vunpack.i.l.bf16 %v4893_v7  ;;  %v2362_v3 = vld [vmem:[%s5461_s11 + $0xa8] sm:$0xff]  ;;  %v2363_v4 = vld [vmem:[%s5461_s11 + $0xb8] sm:$0xff] }
  0x9d   : > { %v4898_v16 = vpop.permute.xlu0 %4897  ;;  %v4731_v7 = vpack.c.bf16 %v2363_v4, %v2362_v3 }
  0x9e   : > { %v4699_v17 = vpack.c.bf16 %v4895_v11, %v4894_v12  ;;  %v4900_v20 = vunpack.i.h.bf16 %v4898_v16  ;;  %v4899_v21 = vunpack.i.l.bf16 %v4898_v16  ;;  %v2365_v11 = vld [vmem:[%s5461_s11 + $0xd8] sm:$0xff]  ;;  %v2366_v12 = vld [vmem:[%s5461_s11 + $0xe8] sm:$0xff] }
  0x9f   : > { %4690 = vmatpush3.bf16.msra.mxu0 %v4687_v55  ;;  %4769 = vmatpush3.bf16.msra.mxu1 %v4687_v55  ;;  %v4903_v24 = vpop.permute.xlu1 %4902  ;;  %v2359_v55 = vld [vmem:[%s5461_s11 + $0x78] sm:$0xff] }
  0xa0   : > { %4692 = vmatprep.subr.bf16.mxu0 %v4691_v63  ;;  %4762 = vmatprep.subr.bf16.mxu1 %v4691_v63  ;;  %v4703_v25 = vpack.c.bf16 %v4900_v20, %v4899_v21  ;;  %v4905_v29 = vunpack.i.h.bf16 %v4903_v24  ;;  %v4904_v41 = vunpack.i.l.bf16 %v4903_v24  ;;  %v4723_v58 = vpack.c.bf16 %v2359_v55, %v2358_v54  ;;  %v2367_v16 = vld [vmem:[%s5461_s11 + $0xf8] sm:$0xff] }
  0xa2   : > { %v4707_v42 = vpack.c.bf16 %v4905_v29, %v4904_v41 }
  0xa3   : > { %4694 = vmatpush3.bf16.msra.mxu0 %v4691_v63  ;;  %4770 = vmatpush3.bf16.msra.mxu1 %v4691_v63  ;;  %v4727_v63 = vpack.c.bf16 %v2361_v62, %v2360_v59 }
  0xa4   : > { %4696 = vmatprep.subr.bf16.mxu0 %v4695_v8  ;;  %4763 = vmatprep.subr.bf16.mxu1 %v4695_v8 }
  0xa7   : > { %4698 = vmatpush3.bf16.msra.mxu0 %v4695_v8  ;;  %4771 = vmatpush3.bf16.msra.mxu1 %v4695_v8  ;;  %v2364_v8 = vld [vmem:[%s5461_s11 + $0xc8] sm:$0xff] }
  0xa8   : > { %4700 = vmatprep.subr.bf16.mxu0 %v4699_v17  ;;  %4764 = vmatprep.subr.bf16.mxu1 %v4699_v17 }
  0xab   : > { %4702 = vmatpush3.bf16.msra.mxu0 %v4699_v17  ;;  %4772 = vmatpush3.bf16.msra.mxu1 %v4699_v17  ;;  %v4739_v17 = vpack.c.bf16 %v2367_v16, %v2366_v12 }
  0xac   : > { %4704 = vmatprep.subr.bf16.mxu0 %v4703_v25  ;;  %4765 = vmatprep.subr.bf16.mxu1 %v4703_v25 }
  0xaf   : > { %4706 = vmatpush3.bf16.msra.mxu0 %v4703_v25  ;;  %4773 = vmatpush3.bf16.msra.mxu1 %v4703_v25 }
  0xb0   : > { %4708 = vmatprep.subr.bf16.mxu0 %v4707_v42  ;;  %4766 = vmatprep.subr.bf16.mxu1 %v4707_v42 }
  0xb3   : > { %4710 = vmatpush3.bf16.msra.mxu0 %v4707_v42  ;;  %4774 = vmatpush3.bf16.msra.mxu1 %v4707_v42 }
  0xb4   : > { %4712 = vmatprep.subr.bf16.mxu1 %v4711_v45 }
  0xb6   : > { %4400 = vmatmul.mubr.f32.vlgmr.msra.gmra.mrb[32].mxu0 %v5531_v52  ;;  %4409 = vmatmul.mubr.f32.vlgmr.msra.gmra.mrb[32].mxu1 %v5579_v1 }
  0xb7   : > { %4411 = vmatprep.mubr.f32.mxu1 %v5584_v2  ;;  %4402 = vmatprep.mubr.f32.mxu0 %v5536_v53 }
  0xb8   : > { %4714 = vmatpush3.bf16.msra.mxu1 %v4711_v45 }
  0xb9   : > { %4716 = vmatprep.subr.bf16.mxu1 %v4715_v48 }
  0xba   : > { %4412 = vmatmul.mubr.f32.gmra.mrb[34].mxu1 %v5595_v5  ;;  %4403 = vmatmul.mubr.f32.gmra.mrb[34].mxu0 %v5547_v56 }
  0xbb   : > { %4414 = vmatprep.mubr.f32.mxu1 %v5600_v6  ;;  %4405 = vmatprep.mubr.f32.mxu0 %v5552_v57 }
  0xbc   : > { %4718 = vmatpush3.bf16.msra.mxu1 %v4715_v48 }
  0xbd   : > { %4720 = vmatprep.subr.bf16.mxu1 %v4719_v51 }
  0xbe   : > { %4415 = vmatmul.mubr.f32.gmra.mrb[36].mxu1 %v5611_v9  ;;  %4406 = vmatmul.mubr.f32.gmra.mrb[36].mxu0 %v5563_v60 }
  0xbf   : > { %4417 = vmatprep.mubr.f32.mxu1 %v5616_v10  ;;  %4535 = vmatprep.mubr.msk.f32.mxu0 %vm434_vm0, %v5492_v26  ;;  %v4735_v26 = vpack.c.bf16 %v2365_v11, %v2364_v8 }
  0xc0   : > { %4722 = vmatpush3.bf16.msra.mxu1 %v4719_v51 }
  0xc1   : > { %4724 = vmatprep.subr.bf16.mxu1 %v4723_v58 }
  0xc2   : > { %4418 = vmatmul.mubr.f32.gmra.mrb[38].mxu1 %v5633_v13 }
  0xc3   : > { %4420 = vmatprep.mubr.f32.mxu1 %v5638_v14 }
  0xc4   : > { %4726 = vmatpush3.bf16.msra.mxu1 %v4723_v58 }
  0xc5   : > { %4728 = vmatprep.subr.bf16.mxu1 %v4727_v63 }
  0xc6   : > { %4421 = vmatmul.mubr.f32.gmra.mrb[40].mxu1 %v5652_v18 }
  0xc7   : > { %4423 = vmatprep.mubr.f32.mxu1 %v5657_v19 }
  0xc8   : > { %4730 = vmatpush3.bf16.msra.mxu1 %v4727_v63 }
  0xc9   : > { %4732 = vmatprep.subr.bf16.mxu1 %v4731_v7 }
  0xca   : > { %4424 = vmatmul.mubr.f32.gmra.mrb[42].mxu1 %v5670_v22 }
  0xcb   : > { %4426 = vmatprep.mubr.f32.mxu1 %v5675_v23 }
  0xcc   : > { %4734 = vmatpush3.bf16.msra.mxu1 %v4731_v7 }
  0xcd   : > { %4736 = vmatprep.subr.bf16.mxu1 %v4735_v26 }
  0xce   : > { %4427 = vmatmul.mubr.f32.gmra.mrb[44].mxu1 %v5686_v27 }
  0xcf   : > { %4429 = vmatprep.mubr.f32.mxu1 %v5691_v28 }
  0xd0   : > { %4738 = vmatpush3.bf16.msra.mxu1 %v4735_v26 }
  0xd1   : > { %4740 = vmatprep.subr.bf16.mxu1 %v4739_v17 }
  0xd2   : > { %4430 = vmatmul.mubr.f32.gmra.mrb[46].mxu1 %v5701_v30 }
  0xd3   : > { %4432 = vmatprep.mubr.f32.mxu1 %v5706_v31 }
  0xd4   : > { %4742 = vmatpush3.bf16.msra.mxu1 %v4739_v17 }
  0xd6   : > { %4433 = vmatmul.mubr.f32.gmra.mrb[48].mxu1 %v5715_v32 }
  0xd7   : > { %4435 = vmatprep.mubr.f32.mxu1 %v5720_v33 }
  0xda   : > { %4436 = vmatmul.mubr.f32.gmra.mrb[50].mxu1 %v5727_v34 }
  0xdb   : > { %4438 = vmatprep.mubr.f32.mxu1 %v5732_v35 }
  0xde   : > { %4439 = vmatmul.mubr.f32.gmra.mrb[52].mxu1 %v5739_v36 }
  0xdf   : > { %4441 = vmatprep.mubr.f32.mxu1 %v5744_v37 }
  0xe2   : > { %4442 = vmatmul.mubr.f32.gmra.mrb[54].mxu1 %v5751_v38 }
  0xe3   : > { %4444 = vmatprep.mubr.f32.mxu1 %v5756_v39 }
  0xe6   : > { %4445 = vmatmul.mubr.f32.gmra.mrb[56].mxu1 %v5763_v40 }
  0xe7   : > { %4479 = vmatprep.mubr.f32.mxu1 %v5448_v0 }
  0xea   : > { %4480 = vmatmul.mubr.f32.vlgmr.msra.gmra.mrb[58].mxu1 %v5531_v52 }
  0xeb   : > { %4482 = vmatprep.mubr.f32.mxu1 %v5536_v53 }
  0xee   : > { %4483 = vmatmul.mubr.f32.gmra.mrb[60].mxu1 %v5547_v56 }
  0xef   : > { %4485 = vmatprep.mubr.f32.mxu1 %v5552_v57 }
  0xf2   : > { %4486 = vmatmul.mubr.f32.gmra.mrb[62].mxu1 %v5563_v60 }
  0xf3   : > { %4488 = vmatprep.mubr.f32.mxu1 %v5568_v61 }
  0xf6   : > { %4489 = vmatmul.mubr.f32.gmra.mrb[64].mxu1 %v5579_v1 }
  0xf7   : > { %4491 = vmatprep.mubr.f32.mxu1 %v5584_v2  ;;  %v5826_v0 = vpop.f32.mrb[0].mxu0 }
  0xf8   : > { %v5828_v52 = vpop.f32.mrb[1].mxu0 }
  0xfa   : > { %4492 = vmatmul.mubr.f32.gmra.mrb[66].mxu1 %v5595_v5 }
  0xfb   : > { %4494 = vmatprep.mubr.f32.mxu1 %v5600_v6  ;;  %v5832_v53 = vpop.f32.mrb[2].mxu0 }
  0xfc   : > { %v5834_v56 = vpop.f32.mrb[3].mxu0 }
  0xfe   : > { %4495 = vmatmul.mubr.f32.gmra.mrb[68].mxu1 %v5611_v9 }
  0xff   : > { %4497 = vmatprep.mubr.f32.mxu1 %v5616_v10  ;;  %v5838_v57 = vpop.f32.mrb[4].mxu0 }
 0x100   : > { %v5840_v60 = vpop.f32.mrb[5].mxu0 }
 0x102   : > { %4498 = vmatmul.mubr.f32.gmra.mrb[70].mxu1 %v5633_v13 }
 0x103   : > { %4500 = vmatprep.mubr.f32.mxu1 %v5638_v14  ;;  %v5844_v61 = vpop.f32.mrb[6].mxu0 }
 0x104   : > { %v5846_v1 = vpop.f32.mrb[7].mxu0 }
 0x106   : > { %4501 = vmatmul.mubr.f32.gmra.mrb[72].mxu1 %v5652_v18 }
 0x107   : > { %4503 = vmatprep.mubr.f32.mxu1 %v5657_v19  ;;  %v5850_v2 = vpop.f32.mrb[8].mxu0 }
 0x108   : > { %v5852_v5 = vpop.f32.mrb[9].mxu0 }
 0x10a   : > { %4504 = vmatmul.mubr.f32.gmra.mrb[74].mxu1 %v5670_v22 }
 0x10b   : > { %4506 = vmatprep.mubr.f32.mxu1 %v5675_v23  ;;  %v5856_v6 = vpop.f32.mrb[10].mxu0 }
 0x10c   : > { %v5858_v9 = vpop.f32.mrb[11].mxu0 }
 0x10e   : > { %4507 = vmatmul.mubr.f32.gmra.mrb[76].mxu1 %v5686_v27 }
 0x10f   : > { %4509 = vmatprep.mubr.f32.mxu1 %v5691_v28  ;;  %v5870_v14 = vpop.f32.mrb[12].mxu0 }
 0x110   : > { %v5872_v18 = vpop.f32.mrb[13].mxu0 }
 0x112   : > { %v5860_v10 = vpop.f32.mrb[0].mxu1  ;;  %4510 = vmatmul.mubr.f32.gmra.mrb[78].mxu1 %v5701_v30 }
 0x113   : > { %1329 = vrot.lane.b32.xlu0 %v5860_v10, %s5340_s26  ;;  %v5865_v13 = vpop.f32.mrb[1].mxu1  ;;  %4512 = vmatprep.mubr.f32.mxu1 %v5706_v31  ;;  %v5882_v23 = vpop.f32.mrb[14].mxu0 }
 0x114   : > { %1327 = vrot.lane.b32.xlu1 %v5865_v13, %s5340_s26  ;;  %v5884_v27 = vpop.f32.mrb[15].mxu0 }
 0x116   : > { %4513 = vmatmul.mubr.f32.gmra.mrb[80].mxu1 %v5715_v32  ;;  %v5875_v19 = vpop.f32.mrb[2].mxu1 }
 0x117   : > { %4515 = vmatprep.mubr.f32.mxu1 %v5720_v33  ;;  %v5878_v22 = vpop.f32.mrb[3].mxu1  ;;  %v5894_v31 = vpop.f32.mrb[16].mxu0 }
 0x118   : > { %1333 = vrot.lane.b32.xlu1 %v5875_v19, %s5340_s26  ;;  %v5896_v32 = vpop.f32.mrb[17].mxu0 }
 0x11a   : > { %4516 = vmatmul.mubr.f32.gmra.mrb[82].mxu1 %v5727_v34  ;;  %v5887_v28 = vpop.f32.mrb[4].mxu1 }
 0x11b   : > { %4518 = vmatprep.mubr.f32.mxu1 %v5732_v35  ;;  %v5890_v30 = vpop.f32.mrb[5].mxu1  ;;  %v5909_v35 = vld [vmem:[%s7326_s5] ss:$0 sm:$0xff]  ;;  %v4268_v20 = vpop.f32.mrb[18].mxu0 }
 0x11c   : > { %1331 = vrot.lane.b32.xlu1 %v5878_v22, %s5340_s26  ;;  %v5912_v21 = vadd.f32 %v4268_v20, %v5909_v35  ;;  %v687_v24 = vpop.f32.mrb[19].mxu0 }
 0x11e   : > { %4519 = vmatmul.mubr.f32.gmra.mrb[84].mxu1 %v5739_v36  ;;  %v5899_v33 = vpop.f32.mrb[6].mxu1  ;;  %7466 = vst [vmem:[#allocation5_spill] sm:$0xff] %v5912_v21 }
 0x11f   : > { %4521 = vmatprep.mubr.f32.mxu1 %v5744_v37  ;;  %v5902_v34 = vpop.f32.mrb[7].mxu1  ;;  %v5918_v37 = vadd.f32 %v5909_v35, %v687_v24  ;;  %v4271_v29 = vpop.f32.mrb[20].mxu0 }
 0x120   : > { %1337 = vrot.lane.b32.xlu1 %v5887_v28, %s5340_s26  ;;  %v5926_v41 = vadd.f32 %v4271_v29, %v5909_v35  ;;  %v697_v42 = vpop.f32.mrb[21].mxu0 }
 0x121   : > { %7467 = vst [vmem:[#allocation6_spill] sm:$0xff] %v5918_v37  ;;  %v5932_v43 = vadd.f32 %v5909_v35, %v697_v42 }
 0x122   : > { %4522 = vmatmul.mubr.f32.gmra.mrb[86].mxu1 %v5751_v38  ;;  %v5915_v36 = vpop.f32.mrb[8].mxu1  ;;  %7468 = vst [vmem:[#allocation7_spill] sm:$0xff] %v5926_v41 }
 0x123   : > { %4524 = vmatprep.mubr.f32.mxu1 %v5756_v39  ;;  %v5921_v25 = vpop.f32.mrb[9].mxu1  ;;  %7469 = vst [vmem:[#allocation8_spill] sm:$0xff] %v5932_v43  ;;  %v4274_v39 = vpop.f32.mrb[22].mxu0 }
 0x124   : > { %1335 = vrot.lane.b32.xlu1 %v5890_v30, %s5340_s26  ;;  %v5939_v45 = vadd.f32 %v4274_v39, %v5909_v35  ;;  %v707_v46 = vpop.f32.mrb[23].mxu0 }
 0x125   : > { %v5944_v48 = vadd.f32 %v5909_v35, %v707_v46 }
 0x126   : > { %4525 = vmatmul.mubr.f32.gmra.mrb[88].mxu1 %v5763_v40  ;;  %v5929_v38 = vpop.f32.mrb[10].mxu1  ;;  %7470 = vst [vmem:[#allocation9_spill] sm:$0xff] %v5939_v45 }
 0x127   : > { %v5934_v44 = vpop.f32.mrb[11].mxu1  ;;  %7471 = vst [vmem:[#allocation10_spill] sm:$0xff] %v5944_v48  ;;  %v4277_v49 = vpop.f32.mrb[24].mxu0 }
 0x128   : > { %1341 = vrot.lane.b32.xlu1 %v5899_v33, %s5340_s26  ;;  %v5951_v50 = vadd.f32 %v4277_v49, %v5909_v35  ;;  %v717_v51 = vpop.f32.mrb[25].mxu0 }
 0x129   : > { %v5956_v55 = vadd.f32 %v5909_v35, %v717_v51 }
 0x12a   : > { %v5941_v47 = vpop.f32.mrb[12].mxu1  ;;  %7472 = vst [vmem:[#allocation11_spill] sm:$0xff] %v5951_v50 }
 0x12b   : > { %v5946_v40 = vpop.f32.mrb[13].mxu1  ;;  %7474 = vst [vmem:[#allocation13_spill] sm:$0xff] %v5956_v55  ;;  %v4280_v59 = vpop.f32.mrb[26].mxu0 }
 0x12c   : > { %1339 = vrot.lane.b32.xlu1 %v5902_v34, %s5340_s26  ;;  %v5963_v62 = vadd.f32 %v4280_v59, %v5909_v35  ;;  %v727_v63 = vpop.f32.mrb[27].mxu0 }
 0x12d   : > { %v5968_v4 = vadd.f32 %v5909_v35, %v727_v63 }
 0x12e   : > { %v5953_v54 = vpop.f32.mrb[14].mxu1  ;;  %7476 = vst [vmem:[#allocation15_spill] sm:$0xff] %v5963_v62 }
 0x12f   : > { %7473 = vst [vmem:[#allocation12_spill] sm:$0xff] %v5953_v54  ;;  %v5958_v58 = vpop.f32.mrb[15].mxu1  ;;  %7478 = vst [vmem:[#allocation17_spill] sm:$0xff] %v5968_v4  ;;  %v4283_v8 = vpop.f32.mrb[28].mxu0 }
 0x130   : > { %7475 = vst [vmem:[#allocation14_spill] sm:$0xff] %v5958_v58  ;;  %1345 = vrot.lane.b32.xlu1 %v5915_v36, %s5340_s26  ;;  %v5975_v11 = vadd.f32 %v4283_v8, %v5909_v35  ;;  %v737_v26 = vpop.f32.mrb[29].mxu0 }
 0x131   : > { %v5980_v16 = vadd.f32 %v5909_v35, %v737_v26 }
 0x132   : > { %v5965_v3 = vpop.f32.mrb[16].mxu1  ;;  %7480 = vst [vmem:[#allocation19_spill] sm:$0xff] %v5975_v11  ;;  %v6052_v11 = vadd.f32 %v5909_v35, %v5828_v52 }
 0x133   : > { %7477 = vst [vmem:[#allocation16_spill] sm:$0xff] %v5965_v3  ;;  %v5970_v7 = vpop.f32.mrb[17].mxu1  ;;  %7482 = vst [vmem:[#allocation21_spill] sm:$0xff] %v5980_v16  ;;  %v4286_v20 = vpop.f32.mrb[30].mxu0  ;;  %v6048_v16 = vadd.f32 %v5826_v0, %v5909_v35 }
 0x134   : > { %7479 = vst [vmem:[#allocation18_spill] sm:$0xff] %v5970_v7  ;;  %1343 = vrot.lane.b32.xlu1 %v5921_v25, %s5340_s26  ;;  %v5987_v24 = vadd.f32 %v4286_v20, %v5909_v35  ;;  %v747_v29 = vpop.f32.mrb[31].mxu0  ;;  %7499 = vst [vmem:[#allocation38_spill] sm:$0xff] %v6052_v11 }
 0x135   : > { %v5992_v39 = vadd.f32 %v5909_v35, %v747_v29  ;;  %7498 = vst [vmem:[#allocation37_spill] sm:$0xff] %v6048_v16 }
 0x136   : > { %v5977_v12 = vpop.f32.mrb[18].mxu1  ;;  %7484 = vst [vmem:[#allocation23_spill] sm:$0xff] %v5987_v24 }
 0x137   : > { %7481 = vst [vmem:[#allocation20_spill] sm:$0xff] %v5977_v12  ;;  %v5982_v17 = vpop.f32.mrb[19].mxu1  ;;  %7486 = vst [vmem:[#allocation25_spill] sm:$0xff] %v5992_v39 }
 0x138   : > { %7483 = vst [vmem:[#allocation22_spill] sm:$0xff] %v5982_v17  ;;  %1349 = vrot.lane.b32.xlu1 %v5929_v38, %s5340_s26 }
 0x13a   : > { %v5989_v42 = vpop.f32.mrb[20].mxu1 }
 0x13b   : > { %7485 = vst [vmem:[#allocation24_spill] sm:$0xff] %v5989_v42  ;;  %v5994_v46 = vpop.f32.mrb[21].mxu1 }
 0x13c   : > { %7487 = vst [vmem:[#allocation26_spill] sm:$0xff] %v5994_v46  ;;  %1347 = vrot.lane.b32.xlu1 %v5934_v44, %s5340_s26 }
 0x13e   : > { %v5998_v49 = vpop.f32.mrb[22].mxu1 }
 0x13f   : > { %7488 = vst [vmem:[#allocation27_spill] sm:$0xff] %v5998_v49  ;;  %v6000_v51 = vpop.f32.mrb[23].mxu1 }
 0x140   : > { %7489 = vst [vmem:[#allocation28_spill] sm:$0xff] %v6000_v51  ;;  %1353 = vrot.lane.b32.xlu1 %v5941_v47, %s5340_s26 }
 0x142   : > { %v6004_v59 = vpop.f32.mrb[24].mxu1 }
 0x143   : > { %7490 = vst [vmem:[#allocation29_spill] sm:$0xff] %v6004_v59  ;;  %v6006_v63 = vpop.f32.mrb[25].mxu1 }
 0x144   : > { %7491 = vst [vmem:[#allocation30_spill] sm:$0xff] %v6006_v63  ;;  %1351 = vrot.lane.b32.xlu1 %v5946_v40, %s5340_s26 }
 0x146   : > { %v6010_v8 = vpop.f32.mrb[26].mxu1 }
 0x147   : > { %7492 = vst [vmem:[#allocation31_spill] sm:$0xff] %v6010_v8  ;;  %v6012_v26 = vpop.f32.mrb[27].mxu1 }
 0x148   : > { %7493 = vst [vmem:[#allocation32_spill] sm:$0xff] %v6012_v26  ;;  %1357 = vrot.lane.b32.xlu1 %v5953_v54, %s5340_s26 }
 0x14a   : > { %v6016_v20 = vpop.f32.mrb[28].mxu1 }
 0x14b   : > { %7494 = vst [vmem:[#allocation33_spill] sm:$0xff] %v6016_v20  ;;  %v6018_v29 = vpop.f32.mrb[29].mxu1 }
 0x14c   : > { %7495 = vst [vmem:[#allocation34_spill] sm:$0xff] %v6018_v29  ;;  %1355 = vrot.lane.b32.xlu1 %v5958_v58, %s5340_s26 }
 0x14e   : > { %v6022_v39 = vpop.f32.mrb[30].mxu1 }
 0x14f   : > { %7496 = vst [vmem:[#allocation35_spill] sm:$0xff] %v6022_v39  ;;  %v6024_v24 = vpop.f32.mrb[31].mxu1 }
 0x150   : > { %7497 = vst [vmem:[#allocation36_spill] sm:$0xff] %v6024_v24  ;;  %1361 = vrot.lane.b32.xlu1 %v5965_v3, %s5340_s26 }
 0x154   : > { %1359 = vrot.lane.b32.xlu1 %v5970_v7, %s5340_s26 }
 0x158   : > { %1365 = vrot.lane.b32.xlu1 %v5977_v12, %s5340_s26 }
 0x15c   : > { %1363 = vrot.lane.b32.xlu1 %v5982_v17, %s5340_s26 }
 0x160   : > { %1369 = vrot.lane.b32.xlu1 %v5989_v42, %s5340_s26 }
 0x164   : > { %1367 = vrot.lane.b32.xlu1 %v5994_v46, %s5340_s26  ;;  %v6054_v46 = vpop.permute.xlu0 %762 }
 0x168   : > { %1373 = vrot.lane.b32.xlu1 %v5998_v49, %s5340_s26  ;;  %v6070_v49 = vadd.f32 %v5909_v35, %v5834_v56 }
 0x16a   : > { %7501 = vst [vmem:[#allocation40_spill] sm:$0xff] %v6070_v49 }
 0x16c   : > { %1371 = vrot.lane.b32.xlu1 %v6000_v51, %s5340_s26  ;;  %v766_v51 = vsub.f32 %v6048_v16, %v6054_v46 }
 0x16e   : > { %v798_v0 = vmul.f32 0.5, %v766_v51 }
 0x170   : > { %1377 = vrot.lane.b32.xlu1 %v6004_v59, %s5340_s26  ;;  %v765_v59 = vsub.f32 %v6052_v11, %v6054_v46  ;;  %4906 = vtanh.f32 %v798_v0  ;;  %v6088_v0 = vadd.f32 %v5909_v35, %v5840_v60 }
 0x172   : > { %v797_v52 = vmul.f32 0.5, %v765_v59  ;;  %v6082_v59 = vadd.f32 %v5838_v57, %v5909_v35  ;;  %7503 = vst [vmem:[#allocation42_spill] sm:$0xff] %v6088_v0  ;;  %v6094_v57 = vadd.f32 %v5844_v61, %v5909_v35 }
 0x174   : > { %1375 = vrot.lane.b32.xlu1 %v6006_v63, %s5340_s26  ;;  %v6064_v63 = vadd.f32 %v5832_v53, %v5909_v35  ;;  %4908 = vtanh.f32 %v797_v52  ;;  %v767_v53 = vsub.f32 %v6070_v49, %v6054_v46  ;;  %7502 = vst [vmem:[#allocation41_spill] sm:$0xff] %v6082_v59  ;;  %7504 = vst [vmem:[#allocation43_spill] sm:$0xff] %v6094_v57 }
 0x176   : > { %7500 = vst [vmem:[#allocation39_spill] sm:$0xff] %v6064_v63  ;;  %v799_v4 = vmul.f32 0.5, %v767_v53 }
 0x178   : > { %1381 = vrot.lane.b32.xlu1 %v6010_v8, %s5340_s26  ;;  %v768_v8 = vsub.f32 %v6064_v63, %v6054_v46 }
 0x17a   : > { %v800_v51 = vmul.f32 0.5, %v768_v8  ;;  %v770_v8 = vsub.f32 %v6082_v59, %v6054_v46  ;;  %v4907_v53 = vpop.eup %4906 }
 0x17b   : > { %v862_v12 = vmul.f32 0.5, %v4907_v53 }
 0x17c   : > { %1379 = vrot.lane.b32.xlu1 %v6012_v26, %s5340_s26  ;;  %4910 = vtanh.f32 %v800_v51 }
 0x17e   : > { %v4909_v51 = vpop.eup %4908 }
 0x17f   : > { %v861_v55 = vmul.f32 0.5, %v4909_v51 }
 0x180   : > { %1385 = vrot.lane.b32.xlu1 %v6016_v20, %s5340_s26 }
 0x184   : > { %1383 = vrot.lane.b32.xlu1 %v6018_v29, %s5340_s26 }
 0x185   : > { %v1330_v56 = vpop.permute.xlu0 %1329 }
 0x186   : > { %v1424_v26 = vsub.f32 %v6048_v16, %v1330_v56  ;;  %v1328_v20 = vpop.permute.xlu1 %1327 }
 0x187   : > { %v1423_v42 = vsub.f32 %v6052_v11, %v1328_v20  ;;  %v6102_v20 = vadd.f32 %v5909_v35, %v5846_v1  ;;  %v769_v1 = vsub.f32 %v6088_v0, %v6054_v46 }
 0x188   : > { %v1456_v52 = vmul.f32 0.5, %v1424_v26 }
 0x189   : > { %v1455_v29 = vmul.f32 0.5, %v1423_v42  ;;  %v6096_v17 = vpop.f32.mrb[32].mxu0  ;;  %v6098_v56 = vpop.f32.mrb[32].mxu1  ;;  %7507 = vst [vmem:[#allocation46_spill] sm:$0xff] %v6102_v20  ;;  %v801_v62 = vmul.f32 0.5, %v769_v1 }
 0x18a   : > { %7505 = vst [vmem:[#allocation44_spill] sm:$0xff] %v6096_v17  ;;  %7506 = vst [vmem:[#allocation45_spill] sm:$0xff] %v6098_v56  ;;  %4912 = vtanh.f32 %v1456_v52  ;;  %v1334_v60 = vpop.permute.xlu1 %1333  ;;  %2002 = vrot.lane.b32.xlu0 %v6096_v17, %s5340_s26  ;;  %v6106_v26 = vpop.f32.mrb[33].mxu0  ;;  %v802_v52 = vmul.f32 0.5, %v770_v8  ;;  %v772_v17 = vsub.f32 %v6094_v57, %v6054_v46  ;;  %v6129_v8 = vadd.f32 %v5850_v2, %v5909_v35 }
 0x18b   : > { %7508 = vst [vmem:[#allocation47_spill] sm:$0xff] %v6106_v26  ;;  %4914 = vtanh.f32 %v1455_v29  ;;  %v1426_v61 = vsub.f32 %v6064_v63, %v1334_v60  ;;  %2000 = vrot.lane.b32.xlu1 %v6106_v26, %s5340_s26  ;;  %v6111_v42 = vpop.f32.mrb[33].mxu1  ;;  %v771_v60 = vsub.f32 %v6102_v20, %v6054_v46  ;;  %v4911_v2 = vpop.eup %4910 }
 0x18c   : > { %7509 = vst [vmem:[#allocation48_spill] sm:$0xff] %v6111_v42  ;;  %4916 = vtanh.f32 %v799_v4  ;;  %7513 = vst [vmem:[#allocation52_spill] sm:$0xff] %v6129_v8  ;;  %v804_v7 = vmul.f32 0.5, %v772_v17  ;;  %v774_v17 = vsub.f32 %v6129_v8, %v6054_v46 }
 0x18d   : > { %v1458_v11 = vmul.f32 0.5, %v1426_v61  ;;  %v6117_v16 = vpop.f32.mrb[34].mxu0  ;;  %v6119_v29 = vpop.f32.mrb[34].mxu1  ;;  %v803_v48 = vmul.f32 0.5, %v771_v60  ;;  %v893_v60 = vadd.f32 0.5, %v861_v55 }
 0x18e   : > { %7510 = vst [vmem:[#allocation49_spill] sm:$0xff] %v6117_v16  ;;  %7511 = vst [vmem:[#allocation50_spill] sm:$0xff] %v6119_v29  ;;  %v1332_v26 = vpop.permute.xlu1 %1331  ;;  %2014 = vrot.lane.b32.xlu0 %v6098_v56, %s5340_s26  ;;  %v6125_v4 = vpop.f32.mrb[35].mxu0  ;;  %v806_v55 = vmul.f32 0.5, %v774_v17 }
 0x18f   : > { %7512 = vst [vmem:[#allocation51_spill] sm:$0xff] %v6125_v4  ;;  %4918 = vtanh.f32 %v1458_v11  ;;  %v1425_v61 = vsub.f32 %v6070_v49, %v1332_v26  ;;  %2012 = vrot.lane.b32.xlu1 %v6111_v42, %s5340_s26  ;;  %v6134_v63 = vpop.f32.mrb[35].mxu1  ;;  %v6142_v11 = vadd.f32 %v5909_v35, %v5852_v5  ;;  %v6155_v5 = vadd.f32 0.5, %v862_v12 }
 0x190   : > { %7514 = vst [vmem:[#allocation53_spill] sm:$0xff] %v6134_v63  ;;  %4920 = vtanh.f32 %v802_v52  ;;  %v864_v42 = vmul.f32 0.5, %v4911_v2 }
 0x191   : > { %v1457_v56 = vmul.f32 0.5, %v1425_v61  ;;  %v6136_v50 = vpop.f32.mrb[36].mxu0  ;;  %v6138_v3 = vpop.f32.mrb[36].mxu1  ;;  %7517 = vst [vmem:[#allocation56_spill] sm:$0xff] %v6142_v11  ;;  %7520 = vst [vmem:[#allocation59_spill] sm:$0xff] %v6155_v5  ;;  %v927_v2 = vmul.f32 %v5642_v15, %v6155_v5 }
 0x192   : > { %7515 = vst [vmem:[#allocation54_spill] sm:$0xff] %v6136_v50  ;;  %7516 = vst [vmem:[#allocation55_spill] sm:$0xff] %v6138_v3  ;;  %v1338_v26 = vpop.permute.xlu1 %1337  ;;  %2006 = vrot.lane.b32.xlu0 %v6117_v16, %s5340_s26  ;;  %v6146_v1 = vpop.f32.mrb[37].mxu0 }
 0x193   : > { %7518 = vst [vmem:[#allocation57_spill] sm:$0xff] %v6146_v1  ;;  %4922 = vtanh.f32 %v1457_v56  ;;  %v1428_v53 = vsub.f32 %v6082_v59, %v1338_v26  ;;  %2004 = vrot.lane.b32.xlu1 %v6125_v4, %s5340_s26  ;;  %v6153_v51 = vpop.f32.mrb[37].mxu1  ;;  %v773_v26 = vsub.f32 %v6142_v11, %v6054_v46 }
 0x194   : > { %7519 = vst [vmem:[#allocation58_spill] sm:$0xff] %v6153_v51  ;;  %v4913_v52 = vpop.eup %4912  ;;  %4924 = vtanh.f32 %v801_v62 }
 0x195   : > { %v4915_v61 = vpop.eup %4914  ;;  %4926 = vtanh.f32 %v804_v7  ;;  %v1520_v16 = vmul.f32 0.5, %v4913_v52  ;;  %v1460_v49 = vmul.f32 0.5, %v1428_v53  ;;  %v6157_v58 = vpop.f32.mrb[38].mxu1  ;;  %v926_v53 = vmul.f32 %v5642_v15, %v893_v60 }
 0x196   : > { %7521 = vst [vmem:[#allocation60_spill] sm:$0xff] %v6157_v58  ;;  %v4917_v56 = vpop.eup %4916  ;;  %4928 = vtanh.f32 %v803_v48  ;;  %v1519_v4 = vmul.f32 0.5, %v4915_v61  ;;  %v1336_v59 = vpop.permute.xlu1 %1335  ;;  %2018 = vrot.lane.b32.xlu0 %v6119_v29, %s5340_s26  ;;  %v6172_v48 = vadd.f32 %v5856_v6, %v5909_v35  ;;  %v3077_v6 = vld [vmem:[%s7327_s6 + $0x20] sm:$0xff] }
 0x197   : > { %v6163_v62 = vpop.f32.mrb[39].mxu1  ;;  %v6165_v12 = vadd.f32 0.5, %v1520_v16  ;;  %4930 = vtanh.f32 %v1460_v49  ;;  %v1427_v7 = vsub.f32 %v6088_v0, %v1336_v59  ;;  %2016 = vrot.lane.b32.xlu1 %v6134_v63, %s5340_s26  ;;  %v896_v49 = vadd.f32 0.5, %v864_v42  ;;  %v3078_v63 = vld [vmem:[%s7327_s6 + $0x28] sm:$0xff] }
 0x198   : > { %7522 = vst [vmem:[#allocation61_spill] sm:$0xff] %v6163_v62  ;;  %v1551_v52 = vadd.f32 0.5, %v1519_v4  ;;  %v863_v17 = vmul.f32 0.5, %v4917_v56  ;;  %v4743_v42 = vpack.c.bf16 %v3078_v63, %v3077_v6 }
 0x199   : > { %7523 = vst [vmem:[#allocation62_spill] sm:$0xff] %v6165_v12  ;;  %v4919_v61 = vpop.eup %4918  ;;  %v1584_v16 = vmul.f32 %v5860_v10, %v6165_v12  ;;  %v1459_v59 = vmul.f32 0.5, %v1427_v7  ;;  %v6179_v29 = vpop.f32.mrb[40].mxu1  ;;  %v805_v7 = vmul.f32 0.5, %v773_v26  ;;  %v776_v26 = vsub.f32 %v6172_v48, %v6054_v46 }
 0x19a   : > { %7524 = vst [vmem:[#allocation63_spill] sm:$0xff] %v6179_v29  ;;  %v1583_v0 = vmul.f32 %v1551_v52, %v5865_v13  ;;  %v6188_v4 = vadd.f32 %v1551_v52, %v893_v60  ;;  %v1522_v5 = vmul.f32 0.5, %v4919_v61  ;;  %v1342_v45 = vpop.permute.xlu1 %1341  ;;  %2010 = vrot.lane.b32.xlu0 %v6136_v50, %s5340_s26  ;;  %v6192_v10 = vpop.f32.mrb[41].mxu1  ;;  %v6201_v13 = vadd.f32 %v5909_v35, %v5858_v9 }
 0x19b   : > { %7525 = vst [vmem:[#allocation64_spill] sm:$0xff] %v6192_v10  ;;  %v4921_v56 = vpop.eup %4920  ;;  %v6194_v12 = vadd.f32 %v1584_v16, %v927_v2  ;;  %4932 = vtanh.f32 %v1459_v59  ;;  %v1430_v54 = vsub.f32 %v6094_v57, %v1342_v45  ;;  %2008 = vrot.lane.b32.xlu1 %v6146_v1, %s5340_s26  ;;  %4744 = vmatprep.subr.bf16.mxu0 %v4743_v42  ;;  %v895_v61 = vadd.f32 0.5, %v863_v17  ;;  %v3080_v17 = vld [vmem:[%s7327_s6 + $0x38] sm:$0xff] }
 0x19c   : > { %4934 = vtanh.f32 %v806_v55  ;;  %v6203_v60 = vadd.f32 %v1583_v0, %v926_v53  ;;  %v1554_v52 = vadd.f32 0.5, %v1522_v5  ;;  %v929_v2 = vmul.f32 %v5642_v15, %v896_v49  ;;  %4746 = vmatpush3.bf16.msra.mxu0 %v4743_v42 }
 0x19d   : > { %7526 = vst [vmem:[#allocation65_spill] sm:$0xff] %v6194_v12  ;;  %v4923_v63 = vpop.eup %4922  ;;  %v1462_v45 = vmul.f32 0.5, %v1430_v54  ;;  %v6208_v16 = vpop.f32.mrb[42].mxu1  ;;  %v866_v53 = vmul.f32 0.5, %v4921_v56  ;;  %v3079_v54 = vld [vmem:[%s7327_s6 + $0x30] sm:$0xff]  ;;  %v808_v50 = vmul.f32 0.5, %v776_v26 }
 0x19e   : > { %7527 = vst [vmem:[#allocation66_spill] sm:$0xff] %v6203_v60  ;;  %7528 = vst [vmem:[#allocation67_spill] sm:$0xff] %v6208_v16  ;;  %v4925_v55 = vpop.eup %4924  ;;  %v1586_v59 = vmul.f32 %v5875_v19, %v1554_v52  ;;  %v6211_v9 = vadd.f32 %v1554_v52, %v896_v49  ;;  %v1521_v0 = vmul.f32 0.5, %v4923_v63  ;;  %v1340_v5 = vpop.permute.xlu1 %1339  ;;  %2022 = vrot.lane.b32.xlu0 %v6138_v3, %s5340_s26 }
 0x19f   : > { %v6215_v6 = vpop.f32.mrb[43].mxu1  ;;  %v4927_v42 = vpop.eup %4926  ;;  %4936 = vtanh.f32 %v1462_v45  ;;  %v1429_v19 = vsub.f32 %v6102_v20, %v1340_v5  ;;  %1387 = vrot.lane.b32.xlu1 %v6024_v24, %s5340_s26  ;;  %v4747_v49 = vpack.c.bf16 %v3080_v17, %v3079_v54  ;;  %v775_v52 = vsub.f32 %v6201_v13, %v6054_v46 }
 0x1a0   : > { %7529 = vst [vmem:[#allocation68_spill] sm:$0xff] %v6211_v9  ;;  %7530 = vst [vmem:[#allocation69_spill] sm:$0xff] %v6215_v6  ;;  %v4929_v56 = vpop.eup %4928  ;;  %4938 = vtanh.f32 %v805_v7  ;;  %v6228_v63 = vadd.f32 %v1586_v59, %v929_v2  ;;  %v1553_v3 = vadd.f32 0.5, %v1521_v0  ;;  %v928_v9 = vmul.f32 %v5642_v15, %v895_v61 }
 0x1a1   : > { %v4931_v1 = vpop.eup %4930  ;;  %v865_v60 = vmul.f32 0.5, %v4925_v55  ;;  %v1461_v45 = vmul.f32 0.5, %v1429_v19  ;;  %v6231_v12 = vpop.f32.mrb[44].mxu1  ;;  %4748 = vmatprep.subr.bf16.mxu0 %v4747_v49  ;;  %v898_v7 = vadd.f32 0.5, %v866_v53  ;;  %v6242_v15 = vadd.f32 %v5870_v14, %v5909_v35 }
 0x1a2   : > { %7531 = vst [vmem:[#allocation70_spill] sm:$0xff] %v6231_v12  ;;  %v1585_v5 = vmul.f32 %v1553_v3, %v5878_v22  ;;  %v6234_v54 = vadd.f32 %v1553_v3, %v895_v61  ;;  %v1524_v17 = vmul.f32 0.5, %v4931_v1  ;;  %v1346_v24 = vpop.permute.xlu1 %1345  ;;  %2026 = vrot.lane.b32.xlu0 %v6157_v58, %s5340_s26  ;;  %v6238_v2 = vpop.f32.mrb[45].mxu1  ;;  %4750 = vmatpush3.bf16.msra.mxu0 %v4747_v49  ;;  %v807_v3 = vmul.f32 0.5, %v775_v52  ;;  %v6258_v49 = vld [vmem:[%s5625_s22] ss:$0 sm:$0xff] }
 0x1a3   : > { %7532 = vst [vmem:[#allocation71_spill] sm:$0xff] %v6238_v2  ;;  %4940 = vtanh.f32 %v1461_v45  ;;  %v1432_v22 = vsub.f32 %v6129_v8, %v1346_v24  ;;  %1389 = vrot.lane.b32.xlu1 %v6022_v39, %s5340_s26  ;;  %v6249_v1 = vadd.f32 %v5909_v35, %v5872_v18  ;;  %v897_v14 = vadd.f32 0.5, %v865_v60  ;;  %v5226_v24 = vld [vmem:[%s5481_s25 + $0x8] sm:$0xff] }
 0x1a4   : > { %v6251_v26 = vadd.f32 %v1585_v5, %v928_v9  ;;  %v1556_v61 = vadd.f32 0.5, %v1524_v17  ;;  %4942 = vtanh.f32 %v808_v50  ;;  %v868_v59 = vmul.f32 0.5, %v4927_v42  ;;  %v5228_v42 = vld [vmem:[%s5481_s25 + $0x10] sm:$0xff] }
 0x1a5   : > { %7533 = vst [vmem:[#allocation72_spill] sm:$0xff] %v6249_v1  ;;  %v4933_v55 = vpop.eup %4932  ;;  %v1464_v0 = vmul.f32 0.5, %v1432_v22  ;;  %v6253_v53 = vpop.f32.mrb[46].mxu1  ;;  %4536 = vmatmul.mubr.msk.f32.vlgmr.msra.gmra.mrb[38].mxu0 %vm434_vm0, %v5226_v24  ;;  %v931_v18 = vmul.f32 %v6258_v49, %v898_v7  ;;  %v867_v24 = vmul.f32 0.5, %v4929_v56  ;;  %v5230_v56 = vld [vmem:[%s5481_s25 + $0x20] sm:$0xff] }
 0x1a6   : > { %7534 = vst [vmem:[#allocation73_spill] sm:$0xff] %v6253_v53  ;;  %v4935_v19 = vpop.eup %4934  ;;  %v1588_v9 = vmul.f32 %v5887_v28, %v1556_v61  ;;  %v6262_v52 = vadd.f32 %v1556_v61, %v898_v7  ;;  %v1523_v45 = vmul.f32 0.5, %v4933_v55  ;;  %v1344_v50 = vpop.permute.xlu1 %1343  ;;  %2030 = vrot.lane.b32.xlu0 %v6179_v29, %s5340_s26  ;;  %4538 = vmatprep.mubr.msk.f32.mxu0 %vm434_vm0, %v5228_v42  ;;  %v900_v55 = vadd.f32 0.5, %v868_v59 }
 0x1a7   : > { %v6266_v60 = vpop.f32.mrb[47].mxu1  ;;  %4944 = vtanh.f32 %v1464_v0  ;;  %v1431_v5 = vsub.f32 %v6142_v11, %v1344_v50  ;;  %2020 = vrot.lane.b32.xlu1 %v6153_v51, %s5340_s26  ;;  %v778_v28 = vsub.f32 %v6242_v15, %v6054_v46  ;;  %v777_v61 = vsub.f32 %v6249_v1, %v6054_v46  ;;  %v5229_v50 = vld [vmem:[%s5481_s25 + $0x18] sm:$0xff] }
 0x1a8   : > { %7535 = vst [vmem:[#allocation74_spill] sm:$0xff] %v6262_v52  ;;  %7536 = vst [vmem:[#allocation75_spill] sm:$0xff] %v6266_v60  ;;  %4946 = vtanh.f32 %v807_v3  ;;  %v6275_v7 = vadd.f32 %v1588_v9, %v931_v18  ;;  %v1555_v17 = vadd.f32 0.5, %v1523_v45  ;;  %v930_v51 = vmul.f32 %v6258_v49, %v897_v14  ;;  %v7608_v52 = vld [vmem:[#allocation24_spill] sm:$0xff] }
 0x1a9   : > { %v4937_v22 = vpop.eup %4936  ;;  %v1463_v0 = vmul.f32 0.5, %v1431_v5  ;;  %v6279_v42 = vpop.f32.mrb[48].mxu1  ;;  %4539 = vmatmul.mubr.msk.f32.gmra.mrb[40].mxu0 %vm434_vm0, %v5229_v50  ;;  %v933_v39 = vmul.f32 %v6258_v49, %v900_v55 }
 0x1aa   : > { %7537 = vst [vmem:[#allocation76_spill] sm:$0xff] %v6275_v7  ;;  %7538 = vst [vmem:[#allocation77_spill] sm:$0xff] %v6279_v42  ;;  %v4939_v3 = vpop.eup %4938  ;;  %v1587_v18 = vmul.f32 %v1555_v17, %v5890_v30  ;;  %v6285_v9 = vadd.f32 %v1555_v17, %v897_v14  ;;  %v1526_v45 = vmul.f32 0.5, %v4937_v22  ;;  %v1350_v29 = vpop.permute.xlu1 %1349  ;;  %2034 = vrot.lane.b32.xlu0 %v6208_v16, %s5340_s26  ;;  %4541 = vmatprep.mubr.msk.f32.mxu0 %vm434_vm0, %v5230_v56 }
 0x1ab   : > { %v6289_v59 = vpop.f32.mrb[49].mxu1  ;;  %4948 = vtanh.f32 %v1463_v0  ;;  %v1434_v5 = vsub.f32 %v6172_v48, %v1350_v29  ;;  %2024 = vrot.lane.b32.xlu1 %v6163_v62, %s5340_s26  ;;  %v810_v30 = vmul.f32 0.5, %v778_v28  ;;  %v6298_v14 = vadd.f32 %v5882_v23, %v5909_v35  ;;  %v5231_v29 = vld [vmem:[%s5481_s25 + $0x28] sm:$0xff] }
 0x1ac   : > { %7539 = vst [vmem:[#allocation78_spill] sm:$0xff] %v6285_v9  ;;  %7540 = vst [vmem:[#allocation79_spill] sm:$0xff] %v6289_v59  ;;  %v6300_v17 = vadd.f32 %v1587_v18, %v930_v51  ;;  %v1558_v22 = vadd.f32 0.5, %v1526_v45  ;;  %v809_v16 = vmul.f32 0.5, %v777_v61  ;;  %v899_v56 = vadd.f32 0.5, %v867_v24  ;;  %v5232_v45 = vld [vmem:[%s5481_s25 + $0x30] sm:$0xff] }
 0x1ad   : > { %7541 = vst [vmem:[#allocation80_spill] sm:$0xff] %v6298_v14  ;;  %v4941_v50 = vpop.eup %4940  ;;  %v1466_v0 = vmul.f32 0.5, %v1434_v5  ;;  %v6303_v58 = vpop.f32.mrb[50].mxu1  ;;  %4542 = vmatmul.mubr.msk.f32.gmra.mrb[42].mxu0 %vm434_vm0, %v5231_v29  ;;  %v870_v51 = vmul.f32 0.5, %v4935_v19  ;;  %v6318_v5 = vadd.f32 %v5909_v35, %v5884_v27  ;;  %v780_v19 = vsub.f32 %v6298_v14, %v6054_v46 }
 0x1ae   : > { %7542 = vst [vmem:[#allocation81_spill] sm:$0xff] %v6300_v17  ;;  %7543 = vst [vmem:[#allocation82_spill] sm:$0xff] %v6303_v58  ;;  %v1590_v28 = vmul.f32 %v5899_v33, %v1558_v22  ;;  %v6308_v62 = vadd.f32 %v1558_v22, %v900_v55  ;;  %v1525_v23 = vmul.f32 0.5, %v4941_v50  ;;  %v1348_v18 = vpop.permute.xlu1 %1347  ;;  %2038 = vrot.lane.b32.xlu0 %v6231_v12, %s5340_s26  ;;  %v6312_v61 = vpop.f32.mrb[51].mxu1  ;;  %4544 = vmatprep.mubr.msk.f32.mxu0 %vm434_vm0, %v5232_v45 }
 0x1af   : > { %7544 = vst [vmem:[#allocation83_spill] sm:$0xff] %v6312_v61  ;;  %v4943_v24 = vpop.eup %4942  ;;  %7545 = vst [vmem:[#allocation84_spill] sm:$0xff] %v6318_v5  ;;  %4950 = vtanh.f32 %v1466_v0  ;;  %v1433_v33 = vsub.f32 %v6201_v13, %v1348_v18  ;;  %2028 = vrot.lane.b32.xlu1 %v6192_v10, %s5340_s26  ;;  %v932_v29 = vmul.f32 %v6258_v49, %v899_v56  ;;  %v869_v27 = vmul.f32 0.5, %v4939_v3  ;;  %v5233_v18 = vld [vmem:[%s5481_s25 + $0x38] sm:$0xff]  ;;  %v5234_v3 = vld [vmem:[%s5481_s25 + $0x40] sm:$0xff] }
 0x1b0   : > { %4952 = vtanh.f32 %v810_v30  ;;  %v6325_v55 = vadd.f32 %v1590_v28, %v933_v39  ;;  %v1557_v22 = vadd.f32 0.5, %v1525_v23  ;;  %v902_v39 = vadd.f32 0.5, %v870_v51 }
 0x1b1   : > { %v4945_v50 = vpop.eup %4944  ;;  %4954 = vtanh.f32 %v809_v16  ;;  %v1465_v45 = vmul.f32 0.5, %v1433_v33  ;;  %v6328_v0 = vpop.f32.mrb[52].mxu1  ;;  %4545 = vmatmul.mubr.msk.f32.gmra.mrb[44].mxu0 %vm434_vm0, %v5233_v18  ;;  %v779_v33 = vsub.f32 %v6318_v5, %v6054_v46  ;;  %v6348_v51 = vadd.f32 %v5894_v31, %v5909_v35 }
 0x1b2   : > { %7546 = vst [vmem:[#allocation85_spill] sm:$0xff] %v6328_v0  ;;  %v4947_v10 = vpop.eup %4946  ;;  %v1589_v30 = vmul.f32 %v1557_v22, %v5902_v34  ;;  %v6333_v12 = vadd.f32 %v1557_v22, %v899_v56  ;;  %v1528_v28 = vmul.f32 0.5, %v4945_v50  ;;  %v1354_v23 = vpop.permute.xlu1 %1353  ;;  %2042 = vrot.lane.b32.xlu0 %v6253_v53, %s5340_s26  ;;  %4547 = vmatprep.mubr.msk.f32.mxu0 %vm434_vm0, %v5234_v3  ;;  %v812_v56 = vmul.f32 0.5, %v780_v19 }
 0x1b3   : > { %v6337_v16 = vpop.f32.mrb[53].mxu1  ;;  %4956 = vtanh.f32 %v1465_v45  ;;  %v1436_v34 = vsub.f32 %v6242_v15, %v1354_v23  ;;  %2032 = vrot.lane.b32.xlu1 %v6215_v6, %s5340_s26  ;;  %7548 = vst [vmem:[#allocation87_spill] sm:$0xff] %v6348_v51  ;;  %v6354_v3 = vadd.f32 %v5909_v35, %v5896_v32  ;;  %v901_v45 = vadd.f32 0.5, %v869_v27  ;;  %v5235_v6 = vld [vmem:[%s5481_s25 + $0x48] sm:$0xff]  ;;  %v5236_v35 = vld [vmem:[%s5481_s25 + $0x50] sm:$0xff] }
 0x1b4   : > { %7547 = vst [vmem:[#allocation86_spill] sm:$0xff] %v6337_v16  ;;  %v6350_v22 = vadd.f32 %v1589_v30, %v932_v29  ;;  %v1560_v50 = vadd.f32 0.5, %v1528_v28  ;;  %v872_v53 = vmul.f32 0.5, %v4943_v24  ;;  %v935_v31 = vmul.f32 %v6258_v49, %v902_v39 }
 0x1b5   : > { %v4949_v18 = vpop.eup %4948  ;;  %7549 = vst [vmem:[#allocation88_spill] sm:$0xff] %v6354_v3  ;;  %v1468_v23 = vmul.f32 0.5, %v1436_v34  ;;  %v6356_v17 = vpop.f32.mrb[54].mxu1  ;;  %4548 = vmatmul.mubr.msk.f32.gmra.mrb[46].mxu0 %vm434_vm0, %v5235_v6  ;;  %v811_v24 = vmul.f32 0.5, %v779_v33  ;;  %v871_v33 = vmul.f32 0.5, %v4947_v10  ;;  %v5238_v10 = vld [vmem:[%s5481_s25 + $0x60] sm:$0xff] }
 0x1b6   : > { %7550 = vst [vmem:[#allocation89_spill] sm:$0xff] %v6356_v17  ;;  %v1592_v19 = vmul.f32 %v5915_v36, %v1560_v50  ;;  %v6362_v29 = vadd.f32 %v1560_v50, %v902_v39  ;;  %v1527_v30 = vmul.f32 0.5, %v4949_v18  ;;  %v1352_v28 = vpop.permute.xlu1 %1351  ;;  %2046 = vrot.lane.b32.xlu0 %v6279_v42, %s5340_s26  ;;  %v6366_v32 = vpop.f32.mrb[55].mxu1  ;;  %4550 = vmatprep.mubr.msk.f32.mxu0 %vm434_vm0, %v5236_v35  ;;  %v904_v18 = vadd.f32 0.5, %v872_v53 }
 0x1b7   : > { %7551 = vst [vmem:[#allocation90_spill] sm:$0xff] %v6366_v32  ;;  %4958 = vtanh.f32 %v1468_v23  ;;  %v1435_v6 = vsub.f32 %v6249_v1, %v1352_v28  ;;  %2036 = vrot.lane.b32.xlu1 %v6238_v2, %s5340_s26  ;;  %v782_v36 = vsub.f32 %v6348_v51, %v6054_v46  ;;  %v781_v50 = vsub.f32 %v6354_v3, %v6054_v46  ;;  %v5237_v28 = vld [vmem:[%s5481_s25 + $0x58] sm:$0xff] }
 0x1b8   : > { %4960 = vtanh.f32 %v812_v56  ;;  %v6375_v27 = vadd.f32 %v1592_v19, %v935_v31  ;;  %v1559_v39 = vadd.f32 0.5, %v1527_v30  ;;  %v934_v2 = vmul.f32 %v6258_v49, %v901_v45 }
 0x1b9   : > { %v4951_v34 = vpop.eup %4950  ;;  %v1467_v23 = vmul.f32 0.5, %v1435_v6  ;;  %v6379_v35 = vpop.f32.mrb[56].mxu1  ;;  %4551 = vmatmul.mubr.msk.f32.gmra.mrb[48].mxu0 %vm434_vm0, %v5237_v28  ;;  %v903_v7 = vadd.f32 0.5, %v871_v33  ;;  %v5240_v33 = vld [vmem:[%s5481_s25 + $0x70] sm:$0xff] }
 0x1ba   : > { %7552 = vst [vmem:[#allocation91_spill] sm:$0xff] %v6379_v35  ;;  %v4953_v56 = vpop.eup %4952  ;;  %v1591_v31 = vmul.f32 %v1559_v39, %v5921_v25  ;;  %v6385_v19 = vadd.f32 %v1559_v39, %v901_v45  ;;  %v1530_v30 = vmul.f32 0.5, %v4951_v34  ;;  %v1358_v42 = vpop.permute.xlu1 %1357  ;;  %2050 = vrot.lane.b32.xlu0 %v6303_v58, %s5340_s26  ;;  %4553 = vmatprep.mubr.msk.f32.mxu0 %vm434_vm0, %v5238_v10  ;;  %v814_v25 = vmul.f32 0.5, %v782_v36 }
 0x1bb   : > { %v6389_v53 = vpop.f32.mrb[57].mxu1  ;;  %v4955_v6 = vpop.eup %4954  ;;  %4962 = vtanh.f32 %v1467_v23  ;;  %v1438_v28 = vsub.f32 %v6298_v14, %v1358_v42  ;;  %2040 = vrot.lane.b32.xlu1 %v6266_v60, %s5340_s26  ;;  %v813_v58 = vmul.f32 0.5, %v781_v50  ;;  %v937_v35 = vmul.f32 %v6258_v49, %v904_v18  ;;  %v5239_v23 = vld [vmem:[%s5481_s25 + $0x68] sm:$0xff] }
 0x1bc   : > { %7553 = vst [vmem:[#allocation92_spill] sm:$0xff] %v6389_v53  ;;  %4964 = vtanh.f32 %v811_v24  ;;  %v6396_v45 = vadd.f32 %v1591_v31, %v934_v2  ;;  %v1562_v39 = vadd.f32 0.5, %v1530_v30  ;;  %v874_v2 = vmul.f32 0.5, %v4953_v56 }
 0x1bd   : > { %v4957_v34 = vpop.eup %4956  ;;  %v1470_v9 = vmul.f32 0.5, %v1438_v28  ;;  %v6399_v10 = vpop.f32.mrb[58].mxu1  ;;  %4554 = vmatmul.mubr.msk.f32.gmra.mrb[50].mxu0 %vm434_vm0, %v5239_v23  ;;  %v936_v28 = vmul.f32 %v6258_v49, %v903_v7  ;;  %v5241_v23 = vld [vmem:[%s5481_s25 + $0x78] sm:$0xff] }
 0x1be   : > { %7554 = vst [vmem:[#allocation93_spill] sm:$0xff] %v6396_v45  ;;  %7555 = vst [vmem:[#allocation94_spill] sm:$0xff] %v6399_v10  ;;  %v1594_v42 = vmul.f32 %v5929_v38, %v1562_v39  ;;  %v6404_v60 = vadd.f32 %v1562_v39, %v904_v18  ;;  %v1529_v24 = vmul.f32 0.5, %v4957_v34  ;;  %v1356_v36 = vpop.permute.xlu1 %1355  ;;  %2054 = vrot.lane.b32.xlu0 %v6328_v0, %s5340_s26  ;;  %v6408_v50 = vpop.f32.mrb[59].mxu1  ;;  %4556 = vmatprep.mubr.msk.f32.mxu0 %vm434_vm0, %v5240_v33 }
 0x1bf   : > { %7557 = vst [vmem:[#allocation96_spill] sm:$0xff] %v6408_v50  ;;  %4966 = vtanh.f32 %v1470_v9  ;;  %v1437_v31 = vsub.f32 %v6318_v5, %v1356_v36  ;;  %2044 = vrot.lane.b32.xlu1 %v6289_v59, %s5340_s26  ;;  %v784_v38 = vsub.f32 %v5912_v21, %v6054_v46  ;;  %v873_v39 = vmul.f32 0.5, %v4955_v6  ;;  %v5242_v6 = vld [vmem:[%s5481_s25 + $0x80] sm:$0xff] }
 0x1c0   : > { %7556 = vst [vmem:[#allocation95_spill] sm:$0xff] %v6404_v60  ;;  %4968 = vtanh.f32 %v814_v25  ;;  %v6417_v18 = vadd.f32 %v1594_v42, %v937_v35  ;;  %v1561_v56 = vadd.f32 0.5, %v1529_v24  ;;  %v906_v35 = vadd.f32 0.5, %v874_v2 }
 0x1c1   : > { %v4959_v30 = vpop.eup %4958  ;;  %4970 = vtanh.f32 %v813_v58  ;;  %v1469_v34 = vmul.f32 0.5, %v1437_v31  ;;  %v6420_v9 = vpop.f32.mrb[60].mxu1  ;;  %4557 = vmatmul.mubr.msk.f32.gmra.mrb[52].mxu0 %vm434_vm0, %v5241_v23  ;;  %v905_v23 = vadd.f32 0.5, %v873_v39 }
 0x1c2   : > { %7558 = vst [vmem:[#allocation97_spill] sm:$0xff] %v6417_v18  ;;  %7559 = vst [vmem:[#allocation98_spill] sm:$0xff] %v6420_v9  ;;  %v4961_v36 = vpop.eup %4960  ;;  %v1593_v25 = vmul.f32 %v1561_v56, %v5934_v44  ;;  %v6425_v33 = vadd.f32 %v1561_v56, %v903_v7  ;;  %v1532_v42 = vmul.f32 0.5, %v4959_v30  ;;  %v1362_v24 = vpop.permute.xlu1 %1361  ;;  %2058 = vrot.lane.b32.xlu0 %v6356_v17, %s5340_s26  ;;  %4559 = vmatprep.mubr.msk.f32.mxu0 %vm434_vm0, %v5242_v6  ;;  %v5253_v18 = vld [vmem:[%s5481_s25 + $0xd8] sm:$0xff] }
 0x1c3   : > { %v6429_v58 = vpop.f32.mrb[61].mxu1  ;;  %4972 = vtanh.f32 %v1469_v34  ;;  %v1440_v31 = vsub.f32 %v6348_v51, %v1362_v24  ;;  %2048 = vrot.lane.b32.xlu1 %v6312_v61, %s5340_s26  ;;  %v816_v44 = vmul.f32 0.5, %v784_v38  ;;  %v783_v7 = vsub.f32 %v5918_v37, %v6054_v46  ;;  %v5243_v34 = vld [vmem:[%s5481_s25 + $0x88] sm:$0xff] }
 0x1c4   : > { %7560 = vst [vmem:[#allocation99_spill] sm:$0xff] %v6425_v33  ;;  %7561 = vst [vmem:[#allocation100_spill] sm:$0xff] %v6429_v58  ;;  %v6438_v2 = vadd.f32 %v1593_v25, %v936_v28  ;;  %v1564_v56 = vadd.f32 0.5, %v1532_v42  ;;  %v876_v17 = vmul.f32 0.5, %v4961_v36  ;;  %v939_v6 = vmul.f32 %v6258_v49, %v906_v35  ;;  %v5244_v36 = vld [vmem:[%s5481_s25 + $0x90] sm:$0xff] }
 0x1c5   : > { %v4963_v30 = vpop.eup %4962  ;;  %v1472_v59 = vmul.f32 0.5, %v1440_v31  ;;  %v6440_v0 = vpop.f32.mrb[62].mxu1  ;;  %4560 = vmatmul.mubr.msk.f32.gmra.mrb[54].mxu0 %vm434_vm0, %v5243_v34 }
 0x1c6   : > { %7562 = vst [vmem:[#allocation101_spill] sm:$0xff] %v6438_v2  ;;  %7563 = vst [vmem:[#allocation102_spill] sm:$0xff] %v6440_v0  ;;  %v4965_v24 = vpop.eup %4964  ;;  %v1596_v38 = vmul.f32 %v5941_v47, %v1564_v56  ;;  %v6446_v61 = vadd.f32 %v1564_v56, %v906_v35  ;;  %v1531_v28 = vmul.f32 0.5, %v4963_v30  ;;  %v1360_v25 = vpop.permute.xlu1 %1359  ;;  %2627 = vrot.lane.b32.xlu0 %v6399_v10, %s5340_s26  ;;  %4562 = vmatprep.mubr.msk.f32.mxu0 %vm434_vm0, %v5244_v36 }
 0x1c7   : > { %v6450_v39 = vpop.f32.mrb[63].mxu1  ;;  %4974 = vtanh.f32 %v1472_v59  ;;  %v1439_v42 = vsub.f32 %v6354_v3, %v1360_v25  ;;  %2052 = vrot.lane.b32.xlu1 %v6337_v16, %s5340_s26  ;;  %v815_v47 = vmul.f32 0.5, %v783_v7  ;;  %v786_v30 = vsub.f32 %v5926_v41, %v6054_v46  ;;  %v5245_v59 = vld [vmem:[%s5481_s25 + $0x98] sm:$0xff] }
 0x1c8   : > { %7564 = vst [vmem:[#allocation103_spill] sm:$0xff] %v6446_v61  ;;  %7565 = vst [vmem:[#allocation104_spill] sm:$0xff] %v6450_v39  ;;  %4976 = vtanh.f32 %v816_v44  ;;  %v6457_v35 = vadd.f32 %v1596_v38, %v939_v6  ;;  %v1563_v31 = vadd.f32 0.5, %v1531_v28  ;;  %v908_v34 = vadd.f32 0.5, %v876_v17  ;;  %v5251_v61 = vld [vmem:[%s5481_s25 + $0xc8] sm:$0xff]  ;;  %v7584_v3 = vld [vmem:[#allocation16_spill] sm:$0xff] }
 0x1c9   : > { %v4967_v56 = vpop.eup %4966  ;;  %v875_v10 = vmul.f32 0.5, %v4965_v24  ;;  %v1471_v2 = vmul.f32 0.5, %v1439_v42  ;;  %v6461_v36 = vpop.f32.mrb[64].mxu1  ;;  %4563 = vmatmul.mubr.msk.f32.gmra.mrb[56].mxu0 %vm434_vm0, %v5245_v59  ;;  %v938_v44 = vmul.f32 %v6258_v49, %v905_v23  ;;  %v5246_v24 = vld [vmem:[%s5481_s25 + $0xa0] sm:$0xff] }
 0x1ca   : > { %7566 = vst [vmem:[#allocation105_spill] sm:$0xff] %v6457_v35  ;;  %7567 = vst [vmem:[#allocation106_spill] sm:$0xff] %v6461_v36  ;;  %v4969_v25 = vpop.eup %4968  ;;  %v1595_v7 = vmul.f32 %v1563_v31, %v5946_v40  ;;  %v6467_v6 = vadd.f32 %v1563_v31, %v905_v23  ;;  %v1534_v38 = vmul.f32 0.5, %v4967_v56  ;;  %v1366_v28 = vpop.permute.xlu1 %1365  ;;  %2625 = vrot.lane.b32.xlu0 %v6408_v50, %s5340_s26  ;;  %4565 = vmatprep.mubr.msk.f32.mxu0 %vm434_vm0, %v5246_v24 }
 0x1cb   : > { %v6471_v17 = vpop.f32.mrb[65].mxu1  ;;  %v4971_v42 = vpop.eup %4970  ;;  %4978 = vtanh.f32 %v1471_v2  ;;  %v1442_v59 = vsub.f32 %v5912_v21, %v1366_v28  ;;  %2056 = vrot.lane.b32.xlu1 %v6366_v32, %s5340_s26  ;;  %v785_v40 = vsub.f32 %v5932_v43, %v6054_v46  ;;  %v818_v50 = vmul.f32 0.5, %v786_v30  ;;  %v5247_v28 = vld [vmem:[%s5481_s25 + $0xa8] sm:$0xff]  ;;  %v7572_v32 = vld [vmem:[#allocation12_spill] sm:$0xff] }
 0x1cc   : > { %7568 = vst [vmem:[#allocation107_spill] sm:$0xff] %v6467_v6  ;;  %7569 = vst [vmem:[#allocation108_spill] sm:$0xff] %v6471_v17  ;;  %4980 = vtanh.f32 %v815_v47  ;;  %v6480_v23 = vadd.f32 %v1595_v7, %v938_v44  ;;  %v1566_v31 = vadd.f32 0.5, %v1534_v38  ;;  %v941_v16 = vmul.f32 %v6258_v49, %v908_v34 }
 0x1cd   : > { %v4973_v56 = vpop.eup %4972  ;;  %v907_v24 = vadd.f32 0.5, %v875_v10  ;;  %v1474_v6 = vmul.f32 0.5, %v1442_v59  ;;  %v6483_v2 = vpop.f32.mrb[66].mxu1  ;;  %4566 = vmatmul.mubr.msk.f32.gmra.mrb[58].mxu0 %vm434_vm0, %v5247_v28  ;;  %v878_v44 = vmul.f32 0.5, %v4969_v25  ;;  %v5248_v10 = vld [vmem:[%s5481_s25 + $0xb0] sm:$0xff] }
 0x1ce   : > { %7570 = vst [vmem:[#allocation109_spill] sm:$0xff] %v6480_v23  ;;  %7571 = vst [vmem:[#allocation110_spill] sm:$0xff] %v6483_v2  ;;  %v1598_v47 = vmul.f32 %v7572_v32, %v1566_v31  ;;  %v6488_v33 = vadd.f32 %v1566_v31, %v908_v34  ;;  %v1533_v35 = vmul.f32 0.5, %v4973_v56  ;;  %v1364_v7 = vpop.permute.xlu1 %1363  ;;  %2631 = vrot.lane.b32.xlu0 %v6420_v9, %s5340_s26  ;;  %v6492_v30 = vpop.f32.mrb[67].mxu1  ;;  %4568 = vmatprep.mubr.msk.f32.mxu0 %vm434_vm0, %v5248_v10  ;;  %v7575_v34 = vld [vmem:[#allocation9_spill] sm:$0xff] }
 0x1cf   : > { %7574 = vst [vmem:[#allocation111_spill] sm:$0xff] %v6492_v30  ;;  %4982 = vtanh.f32 %v1474_v6  ;;  %v1441_v38 = vsub.f32 %v5918_v37, %v1364_v7  ;;  %2060 = vrot.lane.b32.xlu1 %v6389_v53, %s5340_s26  ;;  %v817_v32 = vmul.f32 0.5, %v785_v40  ;;  %v788_v25 = vsub.f32 %v7575_v34, %v6054_v46  ;;  %v5249_v7 = vld [vmem:[%s5481_s25 + $0xb8] sm:$0xff]  ;;  %v7578_v40 = vld [vmem:[#allocation14_spill] sm:$0xff] }
 0x1d0   : > { %7573 = vst [vmem:[#allocation12_spill] sm:$0xff] %v6488_v33  ;;  %v6501_v59 = vadd.f32 %v1598_v47, %v941_v16  ;;  %v1565_v31 = vadd.f32 0.5, %v1533_v35  ;;  %4984 = vtanh.f32 %v818_v50  ;;  %v940_v28 = vmul.f32 %v6258_v49, %v907_v24 }
 0x1d1   : > { %v4975_v56 = vpop.eup %4974  ;;  %v877_v9 = vmul.f32 0.5, %v4971_v42  ;;  %v1473_v10 = vmul.f32 0.5, %v1441_v38  ;;  %v6504_v6 = vpop.f32.mrb[68].mxu1  ;;  %4569 = vmatmul.mubr.msk.f32.gmra.mrb[60].mxu0 %vm434_vm0, %v5249_v7  ;;  %v910_v16 = vadd.f32 0.5, %v878_v44  ;;  %v5250_v42 = vld [vmem:[%s5481_s25 + $0xc0] sm:$0xff]  ;;  %v7581_v38 = vld [vmem:[#allocation10_spill] sm:$0xff] }
 0x1d2   : > { %7576 = vst [vmem:[#allocation112_spill] sm:$0xff] %v6501_v59  ;;  %7577 = vst [vmem:[#allocation113_spill] sm:$0xff] %v6504_v6  ;;  %v4977_v53 = vpop.eup %4976  ;;  %v1597_v23 = vmul.f32 %v1565_v31, %v7578_v40  ;;  %v6509_v33 = vadd.f32 %v1565_v31, %v907_v24  ;;  %v1536_v47 = vmul.f32 0.5, %v4975_v56  ;;  %v1370_v35 = vpop.permute.xlu1 %1369  ;;  %2629 = vrot.lane.b32.xlu0 %v6429_v58, %s5340_s26  ;;  %4571 = vmatprep.mubr.msk.f32.mxu0 %vm434_vm0, %v5250_v42 }
 0x1d3   : > { %v6513_v50 = vpop.f32.mrb[69].mxu1  ;;  %v787_v7 = vsub.f32 %v7581_v38, %v6054_v46  ;;  %4986 = vtanh.f32 %v1473_v10  ;;  %v1444_v40 = vsub.f32 %v5926_v41, %v1370_v35  ;;  %v820_v24 = vmul.f32 0.5, %v788_v25 }
 0x1d4   : > { %7579 = vst [vmem:[#allocation14_spill] sm:$0xff] %v6509_v33  ;;  %7580 = vst [vmem:[#allocation114_spill] sm:$0xff] %v6513_v50  ;;  %4988 = vtanh.f32 %v817_v32  ;;  %v6520_v44 = vadd.f32 %v1597_v23, %v940_v28  ;;  %v1568_v31 = vadd.f32 0.5, %v1536_v47  ;;  %v909_v58 = vadd.f32 0.5, %v877_v9  ;;  %v5252_v9 = vld [vmem:[%s5481_s25 + $0xd0] sm:$0xff] }
 0x1d5   : > { %v4979_v56 = vpop.eup %4978  ;;  %v880_v33 = vmul.f32 0.5, %v4977_v53  ;;  %v1476_v59 = vmul.f32 0.5, %v1444_v40  ;;  %v6522_v37 = vpop.f32.mrb[70].mxu1  ;;  %4572 = vmatmul.mubr.msk.f32.gmra.mrb[62].mxu0 %vm434_vm0, %v5251_v61  ;;  %v943_v10 = vmul.f32 %v6258_v49, %v910_v16  ;;  %v819_v28 = vmul.f32 0.5, %v787_v7  ;;  %v7590_v7 = vld [vmem:[#allocation18_spill] sm:$0xff] }
 0x1d6   : > { %7582 = vst [vmem:[#allocation115_spill] sm:$0xff] %v6520_v44  ;;  %7583 = vst [vmem:[#allocation116_spill] sm:$0xff] %v6522_v37  ;;  %v4981_v42 = vpop.eup %4980  ;;  %v1600_v35 = vmul.f32 %v7584_v3, %v1568_v31  ;;  %v6528_v32 = vadd.f32 %v1568_v31, %v910_v16  ;;  %v1535_v23 = vmul.f32 0.5, %v4979_v56  ;;  %v1368_v25 = vpop.permute.xlu1 %1367  ;;  %2635 = vrot.lane.b32.xlu0 %v6440_v0, %s5340_s26  ;;  %4574 = vmatprep.mubr.msk.f32.mxu0 %vm434_vm0, %v5252_v9  ;;  %v7587_v3 = vld [vmem:[#allocation11_spill] sm:$0xff] }
 0x1d7   : > { %v6532_v53 = vpop.f32.mrb[71].mxu1  ;;  %4990 = vtanh.f32 %v1476_v59  ;;  %v1443_v61 = vsub.f32 %v5932_v43, %v1368_v25  ;;  %v790_v16 = vsub.f32 %v7587_v3, %v6054_v46  ;;  %v912_v56 = vadd.f32 0.5, %v880_v33  ;;  %v5254_v33 = vld [vmem:[%s5481_s25 + $0xe0] sm:$0xff] }
 0x1d8   : > { %7585 = vst [vmem:[#allocation16_spill] sm:$0xff] %v6528_v32  ;;  %7586 = vst [vmem:[#allocation117_spill] sm:$0xff] %v6532_v53  ;;  %4992 = vtanh.f32 %v820_v24  ;;  %v6539_v47 = vadd.f32 %v1600_v35, %v943_v10  ;;  %v1567_v40 = vadd.f32 0.5, %v1535_v23  ;;  %v879_v0 = vmul.f32 0.5, %v4981_v42 }
 0x1d9   : > { %v4983_v31 = vpop.eup %4982  ;;  %v1475_v44 = vmul.f32 0.5, %v1443_v61  ;;  %v6541_v32 = vpop.f32.mrb[72].mxu1  ;;  %4575 = vmatmul.mubr.msk.f32.gmra.mrb[64].mxu0 %vm434_vm0, %v5253_v18  ;;  %v942_v59 = vmul.f32 %v6258_v49, %v909_v58  ;;  %v7593_v18 = vld [vmem:[#allocation13_spill] sm:$0xff] }
 0x1da   : > { %7588 = vst [vmem:[#allocation118_spill] sm:$0xff] %v6539_v47  ;;  %7589 = vst [vmem:[#allocation119_spill] sm:$0xff] %v6541_v32  ;;  %v1599_v24 = vmul.f32 %v1567_v40, %v7590_v7  ;;  %v6547_v25 = vadd.f32 %v1567_v40, %v909_v58  ;;  %v1538_v9 = vmul.f32 0.5, %v4983_v31  ;;  %v1374_v10 = vpop.permute.xlu1 %1373  ;;  %2633 = vrot.lane.b32.xlu0 %v6450_v39, %s5340_s26  ;;  %v6551_v35 = vpop.f32.mrb[73].mxu1  ;;  %4577 = vmatprep.mubr.msk.f32.mxu0 %vm434_vm0, %v5254_v33  ;;  %v3073_v7 = vld [vmem:[%s7327_s6] sm:$0xff]  ;;  %v3074_v33 = vld [vmem:[%s7327_s6 + $0x8] sm:$0xff] }
 0x1db   : > { %7592 = vst [vmem:[#allocation120_spill] sm:$0xff] %v6551_v35  ;;  %v4985_v42 = vpop.eup %4984  ;;  %v789_v23 = vsub.f32 %v7593_v18, %v6054_v46  ;;  %4994 = vtanh.f32 %v1475_v44  ;;  %v1446_v61 = vsub.f32 %v7575_v34, %v1374_v10  ;;  %v822_v58 = vmul.f32 0.5, %v790_v16 }
 0x1dc   : > { %7591 = vst [vmem:[#allocation18_spill] sm:$0xff] %v6547_v25  ;;  %4996 = vtanh.f32 %v819_v28  ;;  %v6558_v40 = vadd.f32 %v1599_v24, %v942_v59  ;;  %v1570_v31 = vadd.f32 0.5, %v1538_v9  ;;  %v945_v25 = vmul.f32 %v6258_v49, %v912_v56  ;;  %v5255_v28 = vld [vmem:[%s5481_s25 + $0xe8] sm:$0xff]  ;;  %v7596_v24 = vld [vmem:[#allocation20_spill] sm:$0xff] }
 0x1dd   : > { %v4987_v39 = vpop.eup %4986  ;;  %v911_v44 = vadd.f32 0.5, %v879_v0  ;;  %v1478_v47 = vmul.f32 0.5, %v1446_v61  ;;  %v6567_v10 = vpop.f32.mrb[74].mxu1  ;;  %4578 = vmatmul.mubr.msk.f32.gmra.mrb[66].mxu0 %vm434_vm0, %v5255_v28  ;;  %v4751_v16 = vpack.c.bf16 %v3074_v33, %v3073_v7  ;;  %v882_v34 = vmul.f32 0.5, %v4985_v42  ;;  %v5256_v0 = vld [vmem:[%s5481_s25 + $0xf0] sm:$0xff] }
 0x1de   : > { %7594 = vst [vmem:[#allocation121_spill] sm:$0xff] %v6558_v40  ;;  %7595 = vst [vmem:[#allocation122_spill] sm:$0xff] %v6567_v10  ;;  %v4989_v59 = vpop.eup %4988  ;;  %v1602_v9 = vmul.f32 %v7596_v24, %v1570_v31  ;;  %v6572_v40 = vadd.f32 %v1570_v31, %v912_v56  ;;  %v1537_v43 = vmul.f32 0.5, %v4987_v39  ;;  %v1372_v41 = vpop.permute.xlu1 %1371  ;;  %2639 = vrot.lane.b32.xlu0 %v6461_v36, %s5340_s26  ;;  %4580 = vmatprep.mubr.msk.f32.mxu0 %vm434_vm0, %v5256_v0  ;;  %v7599_v56 = vld [vmem:[#allocation15_spill] sm:$0xff]  ;;  %v5257_v0 = vld [vmem:[%s5481_s25 + $0xf8] sm:$0xff]  ;;  %s363_s25 = sand.u32 1, %s5321_s28  }
 0x1df   : > { %v6576_v60 = vpop.f32.mrb[75].mxu1  ;;  %v821_v61 = vmul.f32 0.5, %v789_v23  ;;  %4998 = vtanh.f32 %v1478_v47  ;;  %v1445_v7 = vsub.f32 %v7581_v38, %v1372_v41  ;;  %4752 = vmatprep.subr.bf16.mxu0 %v4751_v16  ;;  %v792_v39 = vsub.f32 %v7599_v56, %v6054_v46  ;;  %v3075_v33 = vld [vmem:[%s7327_s6 + $0x10] sm:$0xff]  ;;  %v3076_v23 = vld [vmem:[%s7327_s6 + $0x18] sm:$0xff]  ;;  %s3867_s11 = sshll.u32 %s363_s25, 8  ;;  %s7275_s30 = scalar_lea.sflag [#allocation3], %s363_s25 }
 0x1e0   : > { %7597 = vst [vmem:[#allocation20_spill] sm:$0xff] %v6572_v40  ;;  %7598 = vst [vmem:[#allocation123_spill] sm:$0xff] %v6576_v60  ;;  %5000 = vtanh.f32 %v822_v58  ;;  %v6583_v42 = vadd.f32 %v1602_v9, %v945_v25  ;;  %v1569_v31 = vadd.f32 0.5, %v1537_v43  ;;  %4754 = vmatpush3.bf16.msra.mxu0 %v4751_v16  ;;  %v944_v41 = vmul.f32 %v6258_v49, %v911_v44  ;;  %v7602_v16 = vld [vmem:[#allocation22_spill] sm:$0xff]  ;;  %s7200_s23 = scalar_lea.vmem [#allocation2], %s3867_s11 }
 0x1e1   : > { %v4991_v47 = vpop.eup %4990  ;;  %v881_v28 = vmul.f32 0.5, %v4989_v59  ;;  %v1477_v58 = vmul.f32 0.5, %v1445_v7  ;;  %v6592_v24 = vpop.f32.mrb[76].mxu1  ;;  %4581 = vmatmul.mubr.msk.f32.gmra.mrb[68].mxu0 %vm434_vm0, %v5257_v0  ;;  %v4755_v43 = vpack.c.bf16 %v3076_v23, %v3075_v33  ;;  %v7605_v59 = vld [vmem:[#allocation17_spill] sm:$0xff]  ;;  %v824_v33 = vmul.f32 0.5, %v792_v39  ;;  %s3746_s12 = sshll.u32 %s7200_s23, 4  ;;  %s7269_s12 = int_to_ptr.vmem [resolvable:$true] %s3746_s12 }
 0x1e2   : > { %7600 = vst [vmem:[#allocation124_spill] sm:$0xff] %v6583_v42  ;;  %7601 = vst [vmem:[#allocation125_spill] sm:$0xff] %v6592_v24  ;;  %v4993_v25 = vpop.eup %4992  ;;  %v1601_v9 = vmul.f32 %v1569_v31, %v7602_v16  ;;  %v6597_v36 = vadd.f32 %v1569_v31, %v911_v44  ;;  %v914_v42 = vadd.f32 0.5, %v882_v34  ;;  %v1540_v40 = vmul.f32 0.5, %v4991_v47  ;;  %v1378_v38 = vpop.permute.xlu1 %1377  ;;  %2637 = vrot.lane.b32.xlu0 %v6471_v17, %s5340_s26  ;;  %s5259_s21 = scalar_lea.vmem %s7269_s12, 4096 }
 0x1e3   : > { %v6601_v5 = vpop.f32.mrb[77].mxu1  ;;  %v791_v7 = vsub.f32 %v7605_v59, %v6054_v46  ;;  %5002 = vtanh.f32 %v1477_v58  ;;  %v1448_v0 = vsub.f32 %v7587_v3, %v1378_v38  ;;  %4756 = vmatprep.subr.bf16.mxu0 %v4755_v43  ;;  %v913_v31 = vadd.f32 0.5, %v881_v28  ;;  %v7611_v28 = vld [vmem:[#allocation19_spill] sm:$0xff]  ;;  %p5260_p12 = scmp.ne.s32.totalorder %s7269_s12, %s5259_s21 }
 0x1e4   : > { %7603 = vst [vmem:[#allocation22_spill] sm:$0xff] %v6597_v36  ;;  %7604 = vst [vmem:[#allocation126_spill] sm:$0xff] %v6601_v5  ;;  %5004 = vtanh.f32 %v821_v61  ;;  %v6606_v23 = vadd.f32 %v1601_v9, %v944_v41  ;;  %v1572_v44 = vadd.f32 0.5, %v1540_v40  ;;  %4758 = vmatpush3.bf16.msra.mxu0 %v4755_v43  ;;  %v884_v47 = vmul.f32 0.5, %v4993_v25  ;;  %v7613_v9 = vld [vmem:[#allocation21_spill] sm:$0xff] }
 0x1e5   : > { %v4995_v34 = vpop.eup %4994  ;;  %v1480_v16 = vmul.f32 0.5, %v1448_v0  ;;  %v6608_v17 = vpop.f32.mrb[78].mxu1  ;;  %v947_v21 = vmul.f32 %v6258_v49, %v914_v42  ;;  %v823_v39 = vmul.f32 0.5, %v791_v7  ;;  %v794_v43 = vsub.f32 %v7611_v28, %v6054_v46  ;;  %p5261_p13 = pnand %p5260_p12, %p5429_p4 }
 0x1e6   : > { %7606 = vst [vmem:[#allocation127_spill] sm:$0xff] %v6606_v23  ;;  %7607 = vst [vmem:[#allocation128_spill] sm:$0xff] %v6608_v17  ;;  %v4997_v36 = vpop.eup %4996  ;;  %v1604_v58 = vmul.f32 %v7608_v52, %v1572_v44  ;;  %v6612_v1 = vadd.f32 %v1572_v44, %v914_v42  ;;  %v1539_v38 = vmul.f32 0.5, %v4995_v34  ;;  %v1376_v61 = vpop.permute.xlu1 %1375  ;;  %2643 = vrot.lane.b32.xlu0 %v6483_v2, %s5340_s26  ;;  %v916_v44 = vadd.f32 0.5, %v884_v47 }
 0x1e7   : > { %v6616_v40 = vpop.f32.mrb[79].mxu1  ;;  %5006 = vtanh.f32 %v1480_v16  ;;  %v1447_v41 = vsub.f32 %v7593_v18, %v1376_v61  ;;  %v793_v0 = vsub.f32 %v7613_v9, %v6054_v46  ;;  %v883_v34 = vmul.f32 0.5, %v4997_v36  ;;  %v7615_v61 = vld [vmem:[#allocation26_spill] sm:$0xff]  ;;  %p5262_p0 = pneg %p5261_p13 }
 0x1e8   : > { %7609 = vst [vmem:[#allocation24_spill] sm:$0xff] %v6612_v1  ;;  %7610 = vst [vmem:[#allocation129_spill] sm:$0xff] %v6616_v40  ;;  %5008 = vtanh.f32 %v824_v33  ;;  %v6621_v25 = vadd.f32 %v1604_v58, %v947_v21  ;;  %v1571_v52 = vadd.f32 0.5, %v1539_v38  ;;  %v946_v16 = vmul.f32 %v6258_v49, %v913_v31 }
 0x1e9   : > { %v4999_v42 = vpop.eup %4998  ;;  %v1479_v2 = vmul.f32 0.5, %v1447_v41  ;;  %v6625_v23 = vpop.f32.mrb[80].mxu1  ;;  %v826_v47 = vmul.f32 0.5, %v794_v43  ;;  %v825_v3 = vmul.f32 0.5, %v793_v0 }
 0x1ea   : > { %7612 = vst [vmem:[#allocation130_spill] sm:$0xff] %v6621_v25  ;;  %7614 = vst [vmem:[#allocation21_spill] sm:$0xff] %v6625_v23  ;;  %v5001_v7 = vpop.eup %5000  ;;  %v1603_v33 = vmul.f32 %v1571_v52, %v7615_v61  ;;  %v6629_v18 = vadd.f32 %v1571_v52, %v913_v31  ;;  %v1542_v1 = vmul.f32 0.5, %v4999_v42  ;;  %v1382_v21 = vpop.permute.xlu1 %1381  ;;  %2641 = vrot.lane.b32.xlu0 %v6492_v30, %s5340_s26  ;;  %v915_v52 = vadd.f32 0.5, %v883_v34  ;;  %v7620_v30 = vld [vmem:[#allocation27_spill] sm:$0xff] }
 0x1eb   : > { %v6633_v58 = vpop.f32.mrb[81].mxu1  ;;  %5010 = vtanh.f32 %v1479_v2  ;;  %v1450_v36 = vsub.f32 %v7599_v56, %v1382_v21  ;;  %v949_v31 = vmul.f32 %v6258_v49, %v916_v44  ;;  %v886_v21 = vmul.f32 0.5, %v5001_v7 }
 0x1ec   : > { %7616 = vst [vmem:[#allocation26_spill] sm:$0xff] %v6629_v18  ;;  %7617 = vst [vmem:[#allocation131_spill] sm:$0xff] %v6633_v58  ;;  %5012 = vtanh.f32 %v823_v39  ;;  %v6636_v38 = vadd.f32 %v1603_v33, %v946_v16  ;;  %v1574_v41 = vadd.f32 0.5, %v1542_v1 }
 0x1ed   : > { %v5003_v25 = vpop.eup %5002  ;;  %v1482_v42 = vmul.f32 0.5, %v1450_v36  ;;  %v6639_v61 = vpop.f32.mrb[82].mxu1  ;;  %v7625_v36 = vld [vmem:[#allocation28_spill] sm:$0xff] }
 0x1ee   : > { %7618 = vst [vmem:[#allocation132_spill] sm:$0xff] %v6636_v38  ;;  %7619 = vst [vmem:[#allocation133_spill] sm:$0xff] %v6639_v61  ;;  %v5005_v18 = vpop.eup %5004  ;;  %v1606_v45 = vmul.f32 %v7620_v30, %v1574_v41  ;;  %v6642_v58 = vadd.f32 %v1574_v41, %v916_v44  ;;  %v1541_v2 = vmul.f32 0.5, %v5003_v25  ;;  %v1380_v39 = vpop.permute.xlu1 %1379  ;;  %2647 = vrot.lane.b32.xlu0 %v6504_v6, %s5340_s26 }
 0x1ef   : > { %v6646_v1 = vpop.f32.mrb[83].mxu1  ;;  %5014 = vtanh.f32 %v1482_v42  ;;  %v1449_v43 = vsub.f32 %v7605_v59, %v1380_v39  ;;  %v948_v30 = vmul.f32 %v6258_v49, %v915_v52  ;;  %v885_v44 = vmul.f32 0.5, %v5005_v18  ;;  %v7628_v18 = vld [vmem:[#allocation23_spill] sm:$0xff] }
 0x1f0   : > { %7621 = vst [vmem:[#allocation27_spill] sm:$0xff] %v6642_v58  ;;  %7622 = vst [vmem:[#allocation134_spill] sm:$0xff] %v6646_v1  ;;  %5016 = vtanh.f32 %v826_v47  ;;  %v6649_v0 = vadd.f32 %v1606_v45, %v949_v31  ;;  %v1573_v34 = vadd.f32 0.5, %v1541_v2  ;;  %v918_v42 = vadd.f32 0.5, %v886_v21 }
 0x1f1   : > { %v5007_v16 = vpop.eup %5006  ;;  %5018 = vtanh.f32 %v825_v3  ;;  %v1481_v25 = vmul.f32 0.5, %v1449_v43  ;;  %v6652_v7 = vpop.f32.mrb[84].mxu1  ;;  %v796_v47 = vsub.f32 %v7628_v18, %v6054_v46 }
 0x1f2   : > { %7623 = vst [vmem:[#allocation135_spill] sm:$0xff] %v6649_v0  ;;  %7624 = vst [vmem:[#allocation136_spill] sm:$0xff] %v6652_v7  ;;  %v5009_v33 = vpop.eup %5008  ;;  %v1605_v41 = vmul.f32 %v1573_v34, %v7625_v36  ;;  %v6655_v6 = vadd.f32 %v1573_v34, %v915_v52  ;;  %v1544_v38 = vmul.f32 0.5, %v5007_v16  ;;  %v1386_v39 = vpop.permute.xlu1 %1385  ;;  %2645 = vrot.lane.b32.xlu0 %v6513_v50, %s5340_s26  ;;  %v917_v52 = vadd.f32 0.5, %v885_v44 }
 0x1f3   : > { %v6659_v45 = vpop.f32.mrb[85].mxu1  ;;  %5020 = vtanh.f32 %v1481_v25  ;;  %v1452_v3 = vsub.f32 %v7611_v28, %v1386_v39  ;;  %v888_v34 = vmul.f32 0.5, %v5009_v33  ;;  %v951_v50 = vmul.f32 %v6258_v49, %v918_v42 }
 0x1f4   : > { %7626 = vst [vmem:[#allocation28_spill] sm:$0xff] %v6655_v6  ;;  %7627 = vst [vmem:[#allocation137_spill] sm:$0xff] %v6659_v45  ;;  %v6664_v31 = vadd.f32 %v1605_v41, %v948_v30  ;;  %v1576_v2 = vadd.f32 0.5, %v1544_v38  ;;  %v7631_v6 = vld [vmem:[#allocation29_spill] sm:$0xff]  ;;  %v828_v41 = vmul.f32 0.5, %v796_v47 }
 0x1f5   : > { %v5011_v43 = vpop.eup %5010  ;;  %v1484_v21 = vmul.f32 0.5, %v1452_v3  ;;  %v6666_v16 = vpop.f32.mrb[86].mxu1  ;;  %v7634_v38 = vld [vmem:[#allocation25_spill] sm:$0xff] }
 0x1f6   : > { %7629 = vst [vmem:[#allocation138_spill] sm:$0xff] %v6664_v31  ;;  %7630 = vst [vmem:[#allocation139_spill] sm:$0xff] %v6666_v16  ;;  %v5013_v36 = vpop.eup %5012  ;;  %v1608_v0 = vmul.f32 %v7631_v6, %v1576_v2  ;;  %v6670_v25 = vadd.f32 %v1576_v2, %v918_v42  ;;  %v1543_v39 = vmul.f32 0.5, %v5011_v43  ;;  %v1384_v59 = vpop.permute.xlu1 %1383  ;;  %2651 = vrot.lane.b32.xlu0 %v6522_v37, %s5340_s26  ;;  %v920_v42 = vadd.f32 0.5, %v888_v34 }
 0x1f7   : > { %v6674_v30 = vpop.f32.mrb[87].mxu1  ;;  %v795_v44 = vsub.f32 %v7634_v38, %v6054_v46  ;;  %5022 = vtanh.f32 %v1484_v21  ;;  %v1451_v33 = vsub.f32 %v7613_v9, %v1384_v59  ;;  %v887_v2 = vmul.f32 0.5, %v5013_v36 }
 0x1f8   : > { %7632 = vst [vmem:[#allocation29_spill] sm:$0xff] %v6670_v25  ;;  %7633 = vst [vmem:[#allocation140_spill] sm:$0xff] %v6674_v30  ;;  %v6679_v3 = vadd.f32 %v1608_v0, %v951_v50  ;;  %v1575_v31 = vadd.f32 0.5, %v1543_v39  ;;  %v950_v37 = vmul.f32 %v6258_v49, %v917_v52  ;;  %v7636_v30 = vld [vmem:[#allocation30_spill] sm:$0xff] }
 0x1f9   : > { %v5015_v6 = vpop.eup %5014  ;;  %v1483_v43 = vmul.f32 0.5, %v1451_v33  ;;  %v6681_v25 = vpop.f32.mrb[88].mxu1  ;;  %v827_v59 = vmul.f32 0.5, %v795_v44 }
 0x1fa   : > { %7635 = vst [vmem:[#allocation25_spill] sm:$0xff] %v6681_v25  ;;  %v5017_v58 = vpop.eup %5016  ;;  %v1607_v28 = vmul.f32 %v1575_v31, %v7636_v30  ;;  %v6685_v16 = vadd.f32 %v1575_v31, %v917_v52  ;;  %v1546_v46 = vmul.f32 0.5, %v5015_v6  ;;  %v6687_v21 = vpop.f32.mrb[89].mxu1  ;;  %2649 = vrot.lane.b32.xlu0 %v6532_v53, %s5340_s26  ;;  %v953_v31 = vmul.f32 %v6258_v49, %v920_v42  ;;  %v7640_v30 = vld [vmem:[#allocation37_spill] sm:$0xff]  ;;  %v7641_v53 = vld [vmem:[#allocation31_spill] sm:$0xff]  ;;  %v7642_v25 = vld [vmem:[#allocation38_spill] sm:$0xff] }
 0x1fb   : > { %7638 = vst [vmem:[#allocation141_spill] sm:$0xff] %v6687_v21  ;;  %v5019_v50 = vpop.eup %5018  ;;  %5024 = vtanh.f32 %v1483_v43  ;;  %2685 = vrot.lane.b32.xlu1 %v6687_v21, %s5340_s26  ;;  %v919_v52 = vadd.f32 0.5, %v887_v2  ;;  %v890_v39 = vmul.f32 0.5, %v5017_v58 }
 0x1fc   : > { %7637 = vst [vmem:[#allocation30_spill] sm:$0xff] %v6685_v16  ;;  %5026 = vtanh.f32 %v828_v41  ;;  %v6693_v0 = vadd.f32 %v1607_v28, %v950_v37  ;;  %v1578_v47 = vadd.f32 0.5, %v1546_v46  ;;  %v2003_v34 = vpop.permute.xlu0 %2002  ;;  %v889_v2 = vmul.f32 0.5, %v5019_v50 }
 0x1fd   : > { %v5021_v36 = vpop.eup %5020  ;;  %v2097_v33 = vsub.f32 %v7640_v30, %v2003_v34  ;;  %v2001_v6 = vpop.permute.xlu1 %2000  ;;  %5028 = vtanh.f32 %v827_v59 }
 0x1fe   : > { %7639 = vst [vmem:[#allocation142_spill] sm:$0xff] %v6693_v0  ;;  %v1610_v16 = vmul.f32 %v7641_v53, %v1578_v47  ;;  %v6698_v44 = vadd.f32 %v1578_v47, %v920_v42  ;;  %v1545_v43 = vmul.f32 0.5, %v5021_v36  ;;  %v2096_v21 = vsub.f32 %v7642_v25, %v2001_v6  ;;  %2655 = vrot.lane.b32.xlu0 %v6541_v32, %s5340_s26  ;;  %v7643_v36 = vld [vmem:[#allocation32_spill] sm:$0xff] }
 0x1ff   : > { %v2129_v37 = vmul.f32 0.5, %v2097_v33  ;;  %v952_v0 = vmul.f32 %v6258_v49, %v919_v52  ;;  %v922_v53 = vadd.f32 0.5, %v890_v39 }
 0x200   : > { %v6703_v28 = vadd.f32 %v1610_v16, %v953_v31  ;;  %v1577_v41 = vadd.f32 0.5, %v1545_v43  ;;  %v2128_v58 = vmul.f32 0.5, %v2096_v21  ;;  %v2015_v46 = vpop.permute.xlu0 %2014  ;;  %v921_v31 = vadd.f32 0.5, %v889_v2  ;;  %v6716_v43 = vld [vmem:[%s5625_s22] ss:$0 sm:$0xff]  ;;  %s5263_s22 = sshll.u32 %s5341_s20, 4  ;;  %s5264_s22 = int_to_ptr.vmem [resolvable:$false] %s5263_s22 }
 0x201   : > { %v5023_v34 = vpop.eup %5022  ;;  %5030 = vtanh.f32 %v2129_v37  ;;  %v2103_v42 = vsub.f32 %v6094_v57, %v2015_v46  ;;  %v2013_v47 = vpop.permute.xlu1 %2012  ;;  %v955_v37 = vmul.f32 %v6716_v43, %v922_v53  ;;  %p5266_p1 = scmp.lt.s32.totalorder %s7269_s12, %s5264_s22 }
 0x202   : > { %v1609_v6 = vmul.f32 %v1577_v41, %v7643_v36  ;;  %v6708_v32 = vadd.f32 %v1577_v41, %v919_v52  ;;  %v1548_v59 = vmul.f32 0.5, %v5023_v34  ;;  %5032 = vtanh.f32 %v2128_v58  ;;  %2653 = vrot.lane.b32.xlu0 %v6551_v35, %s5340_s26  ;;  %v7646_v41 = vld [vmem:[#allocation39_spill] sm:$0xff]  ;;  %v7647_v36 = vld [vmem:[#allocation33_spill] sm:$0xff] }
 0x203   : > { %v2135_v16 = vmul.f32 0.5, %v2103_v42  ;;  %v2102_v21 = vsub.f32 %v6102_v20, %v2013_v47  ;;  %v7648_v47 = vld [vmem:[#allocation40_spill] sm:$0xff] }
 0x204   : > { %7644 = vst [vmem:[#allocation37_spill] sm:$0xff] %v6708_v32  ;;  %v6713_v50 = vadd.f32 %v1609_v6, %v952_v0  ;;  %v1580_v49 = vadd.f32 0.5, %v1548_v59  ;;  %v2007_v39 = vpop.permute.xlu0 %2006 }
 0x205   : > { %v5025_v33 = vpop.eup %5024  ;;  %5034 = vtanh.f32 %v2135_v16  ;;  %v2134_v52 = vmul.f32 0.5, %v2102_v21  ;;  %v2099_v58 = vsub.f32 %v7646_v41, %v2007_v39  ;;  %v2005_v46 = vpop.permute.xlu1 %2004 }
 0x206   : > { %7645 = vst [vmem:[#allocation31_spill] sm:$0xff] %v6713_v50  ;;  %v5027_v34 = vpop.eup %5026  ;;  %v1612_v42 = vmul.f32 %v7647_v36, %v1580_v49  ;;  %v6721_v35 = vadd.f32 %v1580_v49, %v922_v53  ;;  %v1547_v0 = vmul.f32 0.5, %v5025_v33  ;;  %v2098_v6 = vsub.f32 %v7648_v47, %v2005_v46  ;;  %2659 = vrot.lane.b32.xlu0 %v6567_v10, %s5340_s26  ;;  %v7649_v33 = vld [vmem:[#allocation34_spill] sm:$0xff] }
 0x207   : > { %5036 = vtanh.f32 %v2134_v52  ;;  %v2131_v2 = vmul.f32 0.5, %v2099_v58  ;;  %v5029_v39 = vpop.eup %5028  ;;  %v954_v50 = vmul.f32 %v6716_v43, %v921_v31 }
 0x208   : > { %v6726_v59 = vadd.f32 %v1612_v42, %v955_v37  ;;  %v1579_v16 = vadd.f32 0.5, %v1547_v0  ;;  %v2130_v21 = vmul.f32 0.5, %v2098_v6  ;;  %v2019_v20 = vpop.permute.xlu0 %2018 }
 0x209   : > { %5038 = vtanh.f32 %v2131_v2  ;;  %v2105_v53 = vsub.f32 %v6129_v8, %v2019_v20  ;;  %v2017_v49 = vpop.permute.xlu1 %2016  ;;  %v7652_v8 = vld [vmem:[#allocation41_spill] sm:$0xff] }
 0x20a   : > { %v1611_v36 = vmul.f32 %v1579_v16, %v7649_v33  ;;  %v6731_v46 = vadd.f32 %v1579_v16, %v921_v31  ;;  %5040 = vtanh.f32 %v2130_v21  ;;  %v2104_v52 = vsub.f32 %v6142_v11, %v2017_v49  ;;  %2657 = vrot.lane.b32.xlu0 %v6576_v60, %s5340_s26  ;;  %v7653_v16 = vld [vmem:[#allocation59_spill] sm:$0xff]  ;;  %v7654_v21 = vld [vmem:[#allocation62_spill] sm:$0xff] }
 0x20b   : > { %v5031_v37 = vpop.eup %5030  ;;  %v2137_v58 = vmul.f32 0.5, %v2105_v53  ;;  %v7655_v11 = vld [vmem:[#allocation42_spill] sm:$0xff] }
 0x20c   : > { %7650 = vst [vmem:[#allocation38_spill] sm:$0xff] %v6731_v46  ;;  %v5033_v42 = vpop.eup %5032  ;;  %v6736_v0 = vadd.f32 %v1611_v36, %v954_v50  ;;  %v2193_v6 = vmul.f32 0.5, %v5031_v37  ;;  %v2136_v2 = vmul.f32 0.5, %v2104_v52  ;;  %v2011_v10 = vpop.permute.xlu0 %2010  ;;  %v1648_v46 = vadd.f32 %v7654_v21, %v7653_v16 }
 0x20d   : > { %v2192_v20 = vmul.f32 0.5, %v5033_v42  ;;  %5042 = vtanh.f32 %v2137_v58  ;;  %v2101_v33 = vsub.f32 %v7652_v8, %v2011_v10  ;;  %v2009_v31 = vpop.permute.xlu1 %2008  ;;  %v891_v52 = vmul.f32 0.5, %v5029_v39  ;;  %v7656_v42 = vld [vmem:[#allocation44_spill] sm:$0xff] }
 0x20e   : > { %7651 = vst [vmem:[#allocation32_spill] sm:$0xff] %v6736_v0  ;;  %v2225_v49 = vadd.f32 0.5, %v2193_v6  ;;  %5044 = vtanh.f32 %v2136_v2  ;;  %v2100_v60 = vsub.f32 %v7655_v11, %v2009_v31  ;;  %2663 = vrot.lane.b32.xlu0 %v6592_v24, %s5340_s26  ;;  %v892_v37 = vmul.f32 0.5, %v5027_v34  ;;  %v7657_v6 = vld [vmem:[#allocation47_spill] sm:$0xff] }
 0x20f   : > { %v5035_v50 = vpop.eup %5034  ;;  %v2224_v53 = vadd.f32 0.5, %v2192_v20  ;;  %v2133_v36 = vmul.f32 0.5, %v2101_v33  ;;  %v7658_v33 = vld [vmem:[#allocation65_spill] sm:$0xff] }
 0x210   : > { %v2257_v58 = vmul.f32 %v7656_v42, %v2225_v49  ;;  %v6745_v0 = vadd.f32 %v2225_v49, %v1648_v46  ;;  %v2199_v10 = vmul.f32 0.5, %v5035_v50  ;;  %v2132_v32 = vmul.f32 0.5, %v2100_v60  ;;  %v2023_v57 = vpop.permute.xlu0 %2022  ;;  %v7659_v46 = vld [vmem:[#allocation66_spill] sm:$0xff] }
 0x211   : > { %v5037_v16 = vpop.eup %5036  ;;  %v2256_v2 = vmul.f32 %v2224_v53, %v7657_v6  ;;  %v6749_v31 = vadd.f32 %v2224_v53, %v6188_v4  ;;  %5046 = vtanh.f32 %v2133_v36  ;;  %v2107_v21 = vsub.f32 %v6172_v48, %v2023_v57  ;;  %v1388_v20 = vpop.permute.xlu1 %1387  ;;  %v7660_v36 = vld [vmem:[#allocation45_spill] sm:$0xff] }
 0x212   : > { %v6753_v39 = vadd.f32 %v2257_v58, %v7658_v33  ;;  %v2231_v34 = vadd.f32 0.5, %v2199_v10  ;;  %v2198_v42 = vmul.f32 0.5, %v5037_v16  ;;  %5048 = vtanh.f32 %v2132_v32  ;;  %2661 = vrot.lane.b32.xlu0 %v6601_v5, %s5340_s26 }
 0x213   : > { %v5039_v60 = vpop.eup %5038  ;;  %v6758_v49 = vadd.f32 %v2256_v2, %v7659_v46  ;;  %v2139_v50 = vmul.f32 0.5, %v2107_v21  ;;  %v1453_v4 = vsub.f32 %v7634_v38, %v1388_v20  ;;  %v6761_v53 = vadd.f32 0.5, %v892_v37  ;;  %v7661_v37 = vld [vmem:[#allocation48_spill] sm:$0xff] }
 0x214   : > { %v5041_v57 = vpop.eup %5040  ;;  %v2263_v6 = vmul.f32 %v7660_v36, %v2231_v34  ;;  %v6765_v58 = vadd.f32 %v2231_v34, %v6308_v62  ;;  %v2230_v10 = vadd.f32 0.5, %v2198_v42  ;;  %v2195_v32 = vmul.f32 0.5, %v5039_v60  ;;  %v2027_v16 = vpop.permute.xlu0 %2026 }
 0x215   : > { %v2194_v33 = vmul.f32 0.5, %v5041_v57  ;;  %5050 = vtanh.f32 %v2139_v50  ;;  %v1485_v5 = vmul.f32 0.5, %v1453_v4  ;;  %v2109_v2 = vsub.f32 %v6242_v15, %v2027_v16  ;;  %v1390_v46 = vpop.permute.xlu1 %1389 }
 0x216   : > { %v6769_v21 = vadd.f32 %v2263_v6, %v6325_v55  ;;  %v2262_v20 = vmul.f32 %v2230_v10, %v7661_v37  ;;  %v6773_v24 = vadd.f32 %v2230_v10, %v6333_v12  ;;  %v2227_v36 = vadd.f32 0.5, %v2195_v32  ;;  %2667 = vrot.lane.b32.xlu0 %v6608_v17, %s5340_s26  ;;  %v7663_v55 = vld [vmem:[#allocation49_spill] sm:$0xff]  ;;  %v7664_v6 = vld [vmem:[#allocation68_spill] sm:$0xff]  ;;  %v7665_v32 = vld [vmem:[#allocation51_spill] sm:$0xff] }
 0x217   : > { %v5043_v62 = vpop.eup %5042  ;;  %v2226_v34 = vadd.f32 0.5, %v2194_v33  ;;  %5052 = vtanh.f32 %v1485_v5  ;;  %v2141_v42 = vmul.f32 0.5, %v2109_v2  ;;  %v1454_v60 = vsub.f32 %v7628_v18, %v1390_v46 }
 0x218   : > { %v5045_v50 = vpop.eup %5044  ;;  %v6779_v4 = vadd.f32 %v2262_v20, %v6350_v22  ;;  %v2259_v57 = vmul.f32 %v7663_v55, %v2227_v36  ;;  %v6783_v16 = vadd.f32 %v2227_v36, %v7664_v6  ;;  %v2201_v12 = vmul.f32 0.5, %v5043_v62  ;;  %v2031_v10 = vpop.permute.xlu0 %2030 }
 0x219   : > { %v2258_v37 = vmul.f32 %v2226_v34, %v7665_v32  ;;  %v6787_v17 = vadd.f32 %v2226_v34, %v6234_v54  ;;  %v2200_v5 = vmul.f32 0.5, %v5045_v50  ;;  %5054 = vtanh.f32 %v2141_v42  ;;  %v2021_v33 = vpop.permute.xlu1 %2020  ;;  %v7666_v50 = vld [vmem:[#allocation50_spill] sm:$0xff] }
 0x21a   : > { %7662 = vst [vmem:[#allocation39_spill] sm:$0xff] %v6779_v4  ;;  %v6790_v2 = vadd.f32 %v2259_v57, %v6228_v63  ;;  %v2233_v22 = vadd.f32 0.5, %v2201_v12  ;;  %v1486_v46 = vmul.f32 0.5, %v1454_v60  ;;  %v2111_v20 = vsub.f32 %v6298_v14, %v2031_v10  ;;  %2665 = vrot.lane.b32.xlu0 %v6616_v40, %s5340_s26  ;;  %v7668_v12 = vld [vmem:[#allocation53_spill] sm:$0xff] }
 0x21b   : > { %v5047_v36 = vpop.eup %5046  ;;  %v6796_v62 = vadd.f32 %v2258_v37, %v6251_v26  ;;  %v2232_v55 = vadd.f32 0.5, %v2200_v5  ;;  %v923_v54 = vadd.f32 0.5, %v891_v52  ;;  %v2106_v34 = vsub.f32 %v6201_v13, %v2021_v33  ;;  %v7679_v14 = vld [vmem:[#allocation5_spill] sm:$0xff] }
 0x21c   : > { %v5049_v42 = vpop.eup %5048  ;;  %v2265_v6 = vmul.f32 %v7666_v50, %v2233_v22  ;;  %v6801_v63 = vadd.f32 %v2233_v22, %v6362_v29  ;;  %v2197_v60 = vmul.f32 0.5, %v5047_v36  ;;  %5056 = vtanh.f32 %v1486_v46  ;;  %v2035_v57 = vpop.permute.xlu0 %2034  ;;  %v7671_v22 = vld [vmem:[#allocation93_spill] sm:$0xff] }
 0x21d   : > { %v2264_v10 = vmul.f32 %v2232_v55, %v7668_v12  ;;  %v6805_v32 = vadd.f32 %v2232_v55, %v6385_v19  ;;  %v2196_v26 = vmul.f32 0.5, %v5049_v42  ;;  %v2143_v37 = vmul.f32 0.5, %v2111_v20  ;;  %v2025_v5 = vpop.permute.xlu1 %2024  ;;  %v7673_v19 = vld [vmem:[#allocation72_spill] sm:$0xff]  ;;  %v7674_v20 = vld [vmem:[#allocation54_spill] sm:$0xff] }
 0x21e   : > { %7667 = vst [vmem:[#allocation33_spill] sm:$0xff] %v6801_v63  ;;  %v6808_v52 = vadd.f32 %v2265_v6, %v6375_v27  ;;  %v2229_v33 = vadd.f32 0.5, %v2197_v60  ;;  %v2138_v18 = vmul.f32 0.5, %v2106_v34  ;;  %v2113_v50 = vsub.f32 %v6348_v51, %v2035_v57  ;;  %2671 = vrot.lane.b32.xlu0 %v6625_v23, %s5340_s26  ;;  %v7675_v12 = vld [vmem:[#allocation74_spill] sm:$0xff]  ;;  %v7676_v57 = vld [vmem:[#allocation57_spill] sm:$0xff] }
 0x21f   : > { %7669 = vst [vmem:[#allocation40_spill] sm:$0xff] %v6805_v32  ;;  %v5051_v29 = vpop.eup %5050  ;;  %v6814_v46 = vadd.f32 %v2264_v10, %v7671_v22  ;;  %v2228_v36 = vadd.f32 0.5, %v2196_v26  ;;  %5058 = vtanh.f32 %v2143_v37  ;;  %v2108_v55 = vsub.f32 %v7673_v19, %v2025_v5  ;;  %v7677_v23 = vld [vmem:[#allocation78_spill] sm:$0xff]  ;;  %v7678_v37 = vld [vmem:[#allocation76_spill] sm:$0xff]  ;;  %v7686_v63 = vld [vmem:[#allocation97_spill] sm:$0xff] }
 0x220   : > { %7670 = vst [vmem:[#allocation34_spill] sm:$0xff] %v6808_v52  ;;  %v2261_v42 = vmul.f32 %v7674_v20, %v2229_v33  ;;  %v6819_v27 = vadd.f32 %v2229_v33, %v7675_v12  ;;  %v2203_v6 = vmul.f32 0.5, %v5051_v29  ;;  %5060 = vtanh.f32 %v2138_v18  ;;  %v2039_v34 = vpop.permute.xlu0 %2038  ;;  %v7680_v29 = vld [vmem:[#allocation131_spill] sm:$0xff]  ;;  %v7681_v12 = vld [vmem:[#allocation81_spill] sm:$0xff] }
 0x221   : > { %7672 = vst [vmem:[#allocation41_spill] sm:$0xff] %v6814_v46  ;;  %v5053_v60 = vpop.eup %5052  ;;  %v2260_v40 = vmul.f32 %v2228_v36, %v7676_v57  ;;  %v6823_v51 = vadd.f32 %v2228_v36, %v7677_v23  ;;  %v2145_v10 = vmul.f32 0.5, %v2113_v50  ;;  %v2140_v22 = vmul.f32 0.5, %v2108_v55  ;;  %v2029_v26 = vpop.permute.xlu1 %2028  ;;  %v7682_v50 = vld [vmem:[#allocation84_spill] sm:$0xff]  ;;  %v7683_v55 = vld [vmem:[#allocation55_spill] sm:$0xff] }
 0x222   : > { %v6826_v46 = vadd.f32 %v2261_v42, %v7678_v37  ;;  %v2235_v5 = vadd.f32 0.5, %v2203_v6  ;;  %v1549_v20 = vmul.f32 0.5, %v5053_v60  ;;  %v2115_v33 = vsub.f32 %v7679_v14, %v2039_v34  ;;  %2669 = vrot.lane.b32.xlu0 %v7680_v29, %s5340_s26  ;;  %v7684_v42 = vld [vmem:[#allocation95_spill] sm:$0xff] }
 0x223   : > { %v5055_v18 = vpop.eup %5054  ;;  %v6832_v32 = vadd.f32 %v2260_v40, %v7681_v12  ;;  %v956_v23 = vmul.f32 %v6716_v43, %v923_v54  ;;  %5062 = vtanh.f32 %v2145_v10  ;;  %v2110_v36 = vsub.f32 %v7682_v50, %v2029_v26  ;;  %v7685_v52 = vld [vmem:[#allocation7_spill] sm:$0xff]  ;;  %v7687_v10 = vld [vmem:[#allocation36_spill] sm:$0xff] }
 0x224   : > { %v2267_v57 = vmul.f32 %v7683_v55, %v2235_v5  ;;  %v6838_v37 = vadd.f32 %v2235_v5, %v7684_v42  ;;  %v1581_v6 = vadd.f32 0.5, %v1549_v20  ;;  %v2205_v60 = vmul.f32 0.5, %v5055_v18  ;;  %v2043_v34 = vpop.permute.xlu0 %2042  ;;  %v7688_v20 = vld [vmem:[#allocation88_spill] sm:$0xff] }
 0x225   : > { %5064 = vtanh.f32 %v2140_v22  ;;  %v2147_v14 = vmul.f32 0.5, %v2115_v33  ;;  %v2142_v29 = vmul.f32 0.5, %v2110_v36  ;;  %v2117_v19 = vsub.f32 %v7685_v52, %v2043_v34  ;;  %v2033_v40 = vpop.permute.xlu1 %2032  ;;  %v7689_v36 = vld [vmem:[#allocation60_spill] sm:$0xff]  ;;  %v7690_v34 = vld [vmem:[#allocation103_spill] sm:$0xff] }
 0x226   : > { %v5057_v12 = vpop.eup %5056  ;;  %v6842_v4 = vadd.f32 %v2267_v57, %v7686_v63  ;;  %v1613_v26 = vmul.f32 %v1581_v6, %v7687_v10  ;;  %v6845_v50 = vadd.f32 %v1581_v6, %v923_v54  ;;  %v2237_v55 = vadd.f32 0.5, %v2205_v60  ;;  %2675 = vrot.lane.b32.xlu0 %v6639_v61, %s5340_s26  ;;  %v7691_v10 = vld [vmem:[#allocation9_spill] sm:$0xff] }
 0x227   : > { %v1550_v5 = vmul.f32 0.5, %v5057_v12  ;;  %5066 = vtanh.f32 %v2147_v14  ;;  %v2149_v22 = vmul.f32 0.5, %v2117_v19  ;;  %v2112_v33 = vsub.f32 %v7688_v20, %v2033_v40  ;;  %v7692_v19 = vld [vmem:[#allocation105_spill] sm:$0xff]  ;;  %v7700_v20 = vld [vmem:[#allocation12_spill] sm:$0xff] }
 0x228   : > { %v6850_v18 = vadd.f32 %v1613_v26, %v956_v23  ;;  %v2269_v42 = vmul.f32 %v7689_v36, %v2237_v55  ;;  %v6854_v63 = vadd.f32 %v2237_v55, %v7690_v34  ;;  %5068 = vtanh.f32 %v2142_v29  ;;  %v2047_v57 = vpop.permute.xlu0 %2046  ;;  %v7694_v26 = vld [vmem:[#allocation6_spill] sm:$0xff]  ;;  %v7695_v29 = vld [vmem:[#allocation35_spill] sm:$0xff] }
 0x229   : > { %v5059_v54 = vpop.eup %5058  ;;  %v1582_v6 = vadd.f32 0.5, %v1550_v5  ;;  %5070 = vtanh.f32 %v2149_v22  ;;  %v2144_v60 = vmul.f32 0.5, %v2112_v33  ;;  %v2119_v61 = vsub.f32 %v7691_v10, %v2047_v57  ;;  %v2037_v12 = vpop.permute.xlu1 %2036 }
 0x22a   : > { %v5061_v14 = vpop.eup %5060  ;;  %v6858_v52 = vadd.f32 %v2269_v42, %v7692_v19  ;;  %v957_v23 = vmul.f32 %v6716_v43, %v6761_v53  ;;  %v2207_v40 = vmul.f32 0.5, %v5059_v54  ;;  %v2114_v55 = vsub.f32 %v7694_v26, %v2037_v12  ;;  %2673 = vrot.lane.b32.xlu0 %v6646_v1, %s5340_s26  ;;  %v7698_v54 = vld [vmem:[#allocation11_spill] sm:$0xff] }
 0x22b   : > { %v1614_v5 = vmul.f32 %v7695_v29, %v1582_v6  ;;  %v6867_v22 = vadd.f32 %v1582_v6, %v6761_v53  ;;  %v2202_v33 = vmul.f32 0.5, %v5061_v14  ;;  %5072 = vtanh.f32 %v2144_v60  ;;  %v7702_v6 = vld [vmem:[#allocation58_spill] sm:$0xff]  ;;  %v7703_v14 = vld [vmem:[#allocation99_spill] sm:$0xff] }
 0x22c   : > { %7693 = vst [vmem:[#allocation59_spill] sm:$0xff] %v6858_v52  ;;  %v2239_v36 = vadd.f32 0.5, %v2207_v40  ;;  %v2151_v34 = vmul.f32 0.5, %v2119_v61  ;;  %v2146_v42 = vmul.f32 0.5, %v2114_v55  ;;  %v2051_v57 = vpop.permute.xlu0 %2050  ;;  %v7699_v52 = vld [vmem:[#allocation63_spill] sm:$0xff]  ;;  %v7704_v55 = vld [vmem:[#allocation112_spill] sm:$0xff] }
 0x22d   : > { %7696 = vst [vmem:[#allocation62_spill] sm:$0xff] %v6867_v22  ;;  %v5063_v19 = vpop.eup %5062  ;;  %v6869_v10 = vadd.f32 %v1614_v5, %v957_v23  ;;  %v2234_v43 = vadd.f32 0.5, %v2202_v33  ;;  %v2121_v12 = vsub.f32 %v7698_v54, %v2051_v57  ;;  %v2041_v26 = vpop.permute.xlu1 %2040  ;;  %v7712_v54 = vld [vmem:[#allocation118_spill] sm:$0xff] }
 0x22e   : > { %v2271_v1 = vmul.f32 %v7699_v52, %v2239_v36  ;;  %v6874_v29 = vadd.f32 %v2239_v36, %v7700_v20  ;;  %v2209_v53 = vmul.f32 0.5, %v5063_v19  ;;  %5074 = vtanh.f32 %v2151_v34  ;;  %2679 = vrot.lane.b32.xlu0 %v6652_v7, %s5340_s26  ;;  %v7706_v20 = vld [vmem:[#allocation8_spill] sm:$0xff]  ;;  %v7707_v19 = vld [vmem:[#allocation101_spill] sm:$0xff] }
 0x22f   : > { %7697 = vst [vmem:[#allocation42_spill] sm:$0xff] %v6869_v10  ;;  %v5065_v61 = vpop.eup %5064  ;;  %v2266_v60 = vmul.f32 %v2234_v43, %v7702_v6  ;;  %v6880_v23 = vadd.f32 %v2234_v43, %v7703_v14  ;;  %5076 = vtanh.f32 %v2146_v42  ;;  %v2153_v40 = vmul.f32 0.5, %v2121_v12  ;;  %v7708_v14 = vld [vmem:[#allocation67_spill] sm:$0xff]  ;;  %v7709_v12 = vld [vmem:[#allocation16_spill] sm:$0xff] }
 0x230   : > { %7701 = vst [vmem:[#allocation44_spill] sm:$0xff] %v6874_v29  ;;  %v6883_v5 = vadd.f32 %v2271_v1, %v7704_v55  ;;  %v2241_v52 = vadd.f32 0.5, %v2209_v53  ;;  %v2204_v33 = vmul.f32 0.5, %v5065_v61  ;;  %v2116_v36 = vsub.f32 %v7706_v20, %v2041_v26  ;;  %v2055_v57 = vpop.permute.xlu0 %2054 }
 0x231   : > { %v5067_v34 = vpop.eup %5066  ;;  %v6887_v10 = vadd.f32 %v2266_v60, %v7707_v19  ;;  %5078 = vtanh.f32 %v2153_v40  ;;  %v2123_v6 = vsub.f32 %v7599_v56, %v2055_v57  ;;  %v2045_v22 = vpop.permute.xlu1 %2044  ;;  %v7711_v19 = vld [vmem:[#allocation10_spill] sm:$0xff]  ;;  %v7714_v56 = vld [vmem:[#allocation61_spill] sm:$0xff] }
 0x232   : > { %7705 = vst [vmem:[#allocation47_spill] sm:$0xff] %v6883_v5  ;;  %v5069_v43 = vpop.eup %5068  ;;  %v2273_v42 = vmul.f32 %v7708_v14, %v2241_v52  ;;  %v6892_v7 = vadd.f32 %v2241_v52, %v7709_v12  ;;  %v2236_v1 = vadd.f32 0.5, %v2204_v33  ;;  %v2211_v53 = vmul.f32 0.5, %v5067_v34  ;;  %2677 = vrot.lane.b32.xlu0 %v6659_v45, %s5340_s26  ;;  %v7715_v14 = vld [vmem:[#allocation107_spill] sm:$0xff] }
 0x233   : > { %v5071_v26 = vpop.eup %5070  ;;  %v2206_v61 = vmul.f32 0.5, %v5069_v43  ;;  %v2148_v55 = vmul.f32 0.5, %v2116_v36  ;;  %v2155_v60 = vmul.f32 0.5, %v2123_v6  ;;  %v2118_v40 = vsub.f32 %v7711_v19, %v2045_v22  ;;  %v7716_v36 = vld [vmem:[#allocation109_spill] sm:$0xff]  ;;  %v7718_v22 = vld [vmem:[#allocation70_spill] sm:$0xff] }
 0x234   : > { %7710 = vst [vmem:[#allocation65_spill] sm:$0xff] %v6892_v7  ;;  %v6898_v57 = vadd.f32 %v2273_v42, %v7712_v54  ;;  %v2268_v20 = vmul.f32 %v2236_v1, %v7714_v56  ;;  %v6902_v5 = vadd.f32 %v2236_v1, %v7715_v14  ;;  %v2243_v52 = vadd.f32 0.5, %v2211_v53  ;;  %v2059_v33 = vpop.permute.xlu0 %2058  ;;  %v7719_v54 = vld [vmem:[#allocation20_spill] sm:$0xff]  ;;  %v7721_v1 = vld [vmem:[#allocation139_spill] sm:$0xff] }
 0x235   : > { %v5073_v34 = vpop.eup %5072  ;;  %v2238_v12 = vadd.f32 0.5, %v2206_v61  ;;  %v2213_v7 = vmul.f32 0.5, %v5071_v26  ;;  %5080 = vtanh.f32 %v2148_v55  ;;  %v2150_v45 = vmul.f32 0.5, %v2118_v40  ;;  %v2049_v43 = vpop.permute.xlu1 %2048  ;;  %v7722_v53 = vld [vmem:[#allocation64_spill] sm:$0xff] }
 0x236   : > { %7713 = vst [vmem:[#allocation66_spill] sm:$0xff] %v6898_v57  ;;  %v6905_v6 = vadd.f32 %v2268_v20, %v7716_v36  ;;  %v2275_v19 = vmul.f32 %v7718_v22, %v2243_v52  ;;  %v6909_v42 = vadd.f32 %v2243_v52, %v7719_v54  ;;  %v2208_v56 = vmul.f32 0.5, %v5073_v34  ;;  %2683 = vrot.lane.b32.xlu0 %v7721_v1, %s5340_s26  ;;  %v7723_v57 = vld [vmem:[#allocation14_spill] sm:$0xff]  ;;  %v7725_v40 = vld [vmem:[#allocation124_spill] sm:$0xff]  ;;  %v7727_v22 = vld [vmem:[#allocation19_spill] sm:$0xff] }
 0x237   : > { %v2270_v14 = vmul.f32 %v2238_v12, %v7722_v53  ;;  %v6915_v61 = vadd.f32 %v2238_v12, %v7723_v57  ;;  %v2245_v26 = vadd.f32 0.5, %v2213_v7  ;;  %5082 = vtanh.f32 %v2155_v60  ;;  %v7730_v1 = vld [vmem:[#allocation73_spill] sm:$0xff] }
 0x238   : > { %7717 = vst [vmem:[#allocation45_spill] sm:$0xff] %v6905_v6  ;;  %7720 = vst [vmem:[#allocation48_spill] sm:$0xff] %v6909_v42  ;;  %v5075_v55 = vpop.eup %5074  ;;  %v6918_v20 = vadd.f32 %v2275_v19, %v7725_v40  ;;  %v2240_v36 = vadd.f32 0.5, %v2208_v56  ;;  %5084 = vtanh.f32 %v2150_v45  ;;  %v2125_v52 = vsub.f32 %v7727_v22, %v2059_v33  ;;  %v2628_v54 = vpop.permute.xlu0 %2627  ;;  %v7728_v42 = vld [vmem:[#allocation115_spill] sm:$0xff]  ;;  %v7731_v6 = vld [vmem:[#allocation24_spill] sm:$0xff] }
 0x239   : > { %7724 = vst [vmem:[#allocation49_spill] sm:$0xff] %v6915_v61  ;;  %v5077_v34 = vpop.eup %5076  ;;  %v6922_v29 = vadd.f32 %v2270_v14, %v7728_v42  ;;  %v2277_v53 = vmul.f32 %v7730_v1, %v2245_v26  ;;  %v6926_v57 = vadd.f32 %v2245_v26, %v7731_v6  ;;  %v2215_v7 = vmul.f32 0.5, %v5075_v55  ;;  %v2053_v60 = vpop.permute.xlu1 %2052  ;;  %v7733_v12 = vld [vmem:[#allocation69_spill] sm:$0xff]  ;;  %v7734_v19 = vld [vmem:[#allocation18_spill] sm:$0xff]  ;;  %v7736_v33 = vld [vmem:[#allocation140_spill] sm:$0xff] }
 0x23a   : > { %7726 = vst [vmem:[#allocation68_spill] sm:$0xff] %v6918_v20  ;;  %v2272_v61 = vmul.f32 %v2240_v36, %v7733_v12  ;;  %v6930_v40 = vadd.f32 %v2240_v36, %v7734_v19  ;;  %v2210_v45 = vmul.f32 0.5, %v5077_v34  ;;  %v2157_v56 = vmul.f32 0.5, %v2125_v52  ;;  %2681 = vrot.lane.b32.xlu0 %v7736_v33, %s5340_s26  ;;  %v7737_v42 = vld [vmem:[#allocation130_spill] sm:$0xff]  ;;  %v7739_v20 = vld [vmem:[#allocation13_spill] sm:$0xff] }
 0x23b   : > { %7729 = vst [vmem:[#allocation51_spill] sm:$0xff] %v6922_v29  ;;  %7732 = vst [vmem:[#allocation50_spill] sm:$0xff] %v6926_v57  ;;  %v5079_v22 = vpop.eup %5078  ;;  %v6935_v14 = vadd.f32 %v2277_v53, %v7737_v42  ;;  %v2247_v1 = vadd.f32 0.5, %v2215_v7  ;;  %v2120_v6 = vsub.f32 %v7739_v20, %v2049_v43  ;;  %v2722_v26 = vsub.f32 %v7640_v30, %v2628_v54  ;;  %v7740_v55 = vld [vmem:[#allocation121_spill] sm:$0xff]  ;;  %v7743_v7 = vld [vmem:[#allocation71_spill] sm:$0xff] }
 0x23c   : > { %7735 = vst [vmem:[#allocation53_spill] sm:$0xff] %v6930_v40  ;;  %v6940_v57 = vadd.f32 %v2272_v61, %v7740_v55  ;;  %v2242_v12 = vadd.f32 0.5, %v2210_v45  ;;  %v2217_v36 = vmul.f32 0.5, %v5079_v22  ;;  %5086 = vtanh.f32 %v2157_v56  ;;  %v2626_v34 = vpop.permute.xlu0 %2625  ;;  %v7741_v52 = vld [vmem:[#allocation77_spill] sm:$0xff]  ;;  %v7742_v40 = vld [vmem:[#allocation27_spill] sm:$0xff]  ;;  %v7744_v43 = vld [vmem:[#allocation22_spill] sm:$0xff] }
 0x23d   : > { %7738 = vst [vmem:[#allocation93_spill] sm:$0xff] %v6935_v14  ;;  %v2279_v19 = vmul.f32 %v7741_v52, %v2247_v1  ;;  %v6944_v33 = vadd.f32 %v2247_v1, %v7742_v40  ;;  %v2152_v29 = vmul.f32 0.5, %v2120_v6  ;;  %v2754_v53 = vmul.f32 0.5, %v2722_v26  ;;  %v2057_v42 = vpop.permute.xlu1 %2056  ;;  %v7745_v61 = vld [vmem:[#allocation17_spill] sm:$0xff]  ;;  %v7746_v22 = vld [vmem:[#allocation91_spill] sm:$0xff] }
 0x23e   : > { %v2274_v14 = vmul.f32 %v2242_v12, %v7743_v7  ;;  %v6948_v20 = vadd.f32 %v2242_v12, %v7744_v43  ;;  %v2249_v30 = vadd.f32 0.5, %v2217_v36  ;;  %v2122_v54 = vsub.f32 %v7745_v61, %v2053_v60  ;;  %2062 = vrot.lane.b32.xlu0 %v7746_v22, %s5340_s26  ;;  %v7747_v56 = vld [vmem:[#allocation135_spill] sm:$0xff]  ;;  %v7750_v12 = vld [vmem:[#allocation82_spill] sm:$0xff]  ;;  %v7751_v36 = vld [vmem:[#allocation29_spill] sm:$0xff] }
 0x23f   : > { %v5081_v45 = vpop.eup %5080  ;;  %v6954_v55 = vadd.f32 %v2279_v19, %v7747_v56  ;;  %5088 = vtanh.f32 %v2152_v29  ;;  %v2721_v40 = vsub.f32 %v7642_v25, %v2626_v34  ;;  %v2124_v1 = vsub.f32 %v7613_v9, %v2057_v42  ;;  %v7749_v6 = vld [vmem:[#allocation127_spill] sm:$0xff] }
 0x240   : > { %v6959_v26 = vadd.f32 %v2274_v14, %v7749_v6  ;;  %v2281_v52 = vmul.f32 %v7750_v12, %v2249_v30  ;;  %v6963_v7 = vadd.f32 %v2249_v30, %v7751_v36  ;;  %v2212_v60 = vmul.f32 0.5, %v5081_v45  ;;  %v2632_v43 = vpop.permute.xlu0 %2631  ;;  %v7752_v6 = vld [vmem:[#allocation25_spill] sm:$0xff] }
 0x241   : > { %7748 = vst [vmem:[#allocation54_spill] sm:$0xff] %v6954_v55  ;;  %v5083_v22 = vpop.eup %5082  ;;  %5090 = vtanh.f32 %v2754_v53  ;;  %v2154_v61 = vmul.f32 0.5, %v2122_v54  ;;  %v2753_v19 = vmul.f32 0.5, %v2721_v40  ;;  %v2156_v56 = vmul.f32 0.5, %v2124_v1  ;;  %v2061_v29 = vpop.permute.xlu1 %2060  ;;  %v7753_v53 = vld [vmem:[#allocation75_spill] sm:$0xff]  ;;  %v7754_v40 = vld [vmem:[#allocation26_spill] sm:$0xff] }
 0x242   : > { %v5085_v55 = vpop.eup %5084  ;;  %v6966_v25 = vadd.f32 %v2281_v52, %v6679_v3  ;;  %v2244_v34 = vadd.f32 0.5, %v2212_v60  ;;  %v2219_v14 = vmul.f32 0.5, %v5083_v22  ;;  %v2724_v42 = vsub.f32 %v7646_v41, %v2632_v43  ;;  %2687 = vrot.lane.b32.xlu0 %v7752_v6, %s5340_s26  ;;  %v7755_v60 = vld [vmem:[#allocation132_spill] sm:$0xff]  ;;  %v7767_v6 = vld [vmem:[#allocation94_spill] sm:$0xff]  ;;  %s5265_s26 = scalar_lea.vmem %s5264_s22, 8192 }
 0x243   : > { %v2214_v30 = vmul.f32 0.5, %v5085_v55  ;;  %5092 = vtanh.f32 %v2154_v61  ;;  %v2126_v45 = vsub.f32 %v7634_v38, %v2061_v29  ;;  %v7756_v55 = vld [vmem:[#allocation85_spill] sm:$0xff]  ;;  %p5267_p2 = scmp.lt.s32.totalorder %s5265_s26, %s5259_s21 }
 0x244   : > { %v2276_v54 = vmul.f32 %v2244_v34, %v7753_v53  ;;  %v6974_v1 = vadd.f32 %v2244_v34, %v7754_v40  ;;  %v2251_v12 = vadd.f32 0.5, %v2219_v14  ;;  %5094 = vtanh.f32 %v2753_v19  ;;  %v2630_v3 = vpop.permute.xlu0 %2629  ;;  %v7757_v34 = vld [vmem:[#allocation79_spill] sm:$0xff]  ;;  %v7758_v14 = vld [vmem:[#allocation28_spill] sm:$0xff] }
 0x245   : > { %v2246_v52 = vadd.f32 0.5, %v2214_v30  ;;  %5096 = vtanh.f32 %v2156_v56  ;;  %v2756_v22 = vmul.f32 0.5, %v2724_v42  ;;  %v2158_v36 = vmul.f32 0.5, %v2126_v45  ;;  %p5268_p3 = por %p5267_p2, %p5266_p1 }
 0x246   : > { %v5087_v41 = vpop.eup %5086  ;;  %v6977_v43 = vadd.f32 %v2276_v54, %v7755_v60  ;;  %v2283_v61 = vmul.f32 %v7756_v55, %v2251_v12  ;;  %v6981_v29 = vadd.f32 %v2251_v12, %v6698_v44  ;;  %v2723_v53 = vsub.f32 %v7648_v47, %v2630_v3  ;;  %v7760_v60 = vld [vmem:[#allocation138_spill] sm:$0xff] }
 0x247   : > { %v2278_v40 = vmul.f32 %v2246_v52, %v7757_v34  ;;  %v6986_v19 = vadd.f32 %v2246_v52, %v7758_v14  ;;  %v2221_v30 = vmul.f32 0.5, %v5087_v41  ;;  %5098 = vtanh.f32 %v2756_v22  ;;  %v7761_v52 = vld [vmem:[#allocation89_spill] sm:$0xff]  ;;  %p5269_p5 = pnand %p5268_p3, %p5262_p0 }
 0x248   : > { %v6989_v56 = vadd.f32 %v2283_v61, %v6703_v28  ;;  %5100 = vtanh.f32 %v2158_v36  ;;  %v2755_v42 = vmul.f32 0.5, %v2723_v53  ;;  %v2636_v45 = vpop.permute.xlu0 %2635 }
 0x249   : > { %v5089_v54 = vpop.eup %5088  ;;  %v6992_v55 = vadd.f32 %v2278_v40, %v7760_v60  ;;  %v2253_v44 = vadd.f32 0.5, %v2221_v30  ;;  %v2726_v47 = vsub.f32 %v7652_v8, %v2636_v45  ;;  %v7764_v30 = vld [vmem:[#allocation83_spill] sm:$0xff]  ;;  %v7765_v45 = vld [vmem:[#allocation30_spill] sm:$0xff] }
 0x24a   : > { %7759 = vst [vmem:[#allocation74_spill] sm:$0xff] %v6989_v56  ;;  %v2216_v12 = vmul.f32 0.5, %v5089_v54  ;;  %5102 = vtanh.f32 %v2755_v42 }
 0x24b   : > { %v5091_v3 = vpop.eup %5090  ;;  %v2285_v34 = vmul.f32 %v7761_v52, %v2253_v44  ;;  %v6997_v22 = vadd.f32 %v2253_v44, %v6721_v35  ;;  %v2758_v28 = vmul.f32 0.5, %v2726_v47 }
 0x24c   : > { %v2248_v41 = vadd.f32 0.5, %v2216_v12  ;;  %v2818_v36 = vmul.f32 0.5, %v5091_v3  ;;  %v2634_v61 = vpop.permute.xlu0 %2633  ;;  %v7766_v3 = vld [vmem:[#allocation142_spill] sm:$0xff] }
 0x24d   : > { %7762 = vst [vmem:[#allocation57_spill] sm:$0xff] %v6997_v22  ;;  %v5093_v53 = vpop.eup %5092  ;;  %v7000_v14 = vadd.f32 %v2285_v34, %v6726_v59  ;;  %5104 = vtanh.f32 %v2758_v28  ;;  %v2725_v40 = vsub.f32 %v7655_v11, %v2634_v61 }
 0x24e   : > { %v5095_v8 = vpop.eup %5094  ;;  %v2280_v42 = vmul.f32 %v2248_v41, %v7764_v30  ;;  %v7005_v54 = vadd.f32 %v2248_v41, %v7765_v45  ;;  %v2850_v60 = vadd.f32 0.5, %v2818_v36  ;;  %v2218_v35 = vmul.f32 0.5, %v5093_v53  ;;  %v7768_v41 = vld [vmem:[#allocation43_spill] sm:$0xff] }
 0x24f   : > { %7763 = vst [vmem:[#allocation78_spill] sm:$0xff] %v7000_v14  ;;  %v5097_v44 = vpop.eup %5096  ;;  %v2817_v47 = vmul.f32 0.5, %v5095_v8  ;;  %v2757_v12 = vmul.f32 0.5, %v2725_v40  ;;  %v7769_v40 = vld [vmem:[#allocation86_spill] sm:$0xff] }
 0x250   : > { %v7008_v52 = vadd.f32 %v2280_v42, %v7766_v3  ;;  %v2882_v59 = vmul.f32 %v7767_v6, %v2850_v60  ;;  %v2946_v34 = vadd.f32 %v2850_v60, %v6745_v0  ;;  %v2250_v28 = vadd.f32 0.5, %v2218_v35  ;;  %v2640_v11 = vpop.permute.xlu0 %2639  ;;  %v7770_v42 = vld [vmem:[#allocation37_spill] sm:$0xff]  ;;  %v7772_v6 = vld [vmem:[#allocation96_spill] sm:$0xff] }
 0x251   : > { %v5099_v61 = vpop.eup %5098  ;;  %v2849_v14 = vadd.f32 0.5, %v2817_v47  ;;  %v2220_v30 = vmul.f32 0.5, %v5097_v44  ;;  %5106 = vtanh.f32 %v2757_v12  ;;  %v2728_v45 = vsub.f32 %v7768_v41, %v2640_v11  ;;  %v7773_v44 = vld [vmem:[#allocation31_spill] sm:$0xff] }
 0x252   : > { %v5101_v36 = vpop.eup %5100  ;;  %v2914_v53 = vadd.f32 %v2882_v59, %v6753_v39  ;;  %v2978_v8 = vmax.f32 %v2946_v34, 1e-12  ;;  %v2282_v22 = vmul.f32 %v2250_v28, %v7769_v40  ;;  %v7016_v3 = vadd.f32 %v2250_v28, %v7770_v42  ;;  %v7774_v40 = vld [vmem:[#allocation90_spill] sm:$0xff] }
 0x253   : > { %v2881_v56 = vmul.f32 %v2849_v14, %v7772_v6  ;;  %v2945_v0 = vadd.f32 %v2849_v14, %v6749_v31  ;;  %v2252_v60 = vadd.f32 0.5, %v2220_v30  ;;  %v2820_v35 = vmul.f32 0.5, %v5099_v61  ;;  %v7775_v42 = vld [vmem:[#allocation38_spill] sm:$0xff]  ;;  %v7776_v30 = vld [vmem:[#allocation32_spill] sm:$0xff] }
 0x254   : > { %7771 = vst [vmem:[#allocation76_spill] sm:$0xff] %v7016_v3  ;;  %v5103_v47 = vpop.eup %5102  ;;  %5108 = vrcp.f32 %v2978_v8  ;;  %v7021_v12 = vadd.f32 %v2282_v22, %v7773_v44  ;;  %v2222_v11 = vmul.f32 0.5, %v5101_v36  ;;  %v2760_v41 = vmul.f32 0.5, %v2728_v45  ;;  %v2638_v39 = vpop.permute.xlu0 %2637  ;;  %v7777_v36 = vld [vmem:[#allocation46_spill] sm:$0xff] }
 0x255   : > { %v2913_v59 = vadd.f32 %v2881_v56, %v6758_v49  ;;  %v2977_v34 = vmax.f32 %v2945_v0, 1e-12  ;;  %v2284_v28 = vmul.f32 %v2252_v60, %v7774_v40  ;;  %v7026_v3 = vadd.f32 %v2252_v60, %v7775_v42  ;;  %v7778_v8 = vld [vmem:[#allocation98_spill] sm:$0xff]  ;;  %v7779_v56 = vld [vmem:[#allocation92_spill] sm:$0xff] }
 0x256   : > { %v2852_v6 = vadd.f32 0.5, %v2820_v35  ;;  %v2254_v31 = vadd.f32 0.5, %v2222_v11  ;;  %v2819_v14 = vmul.f32 0.5, %v5103_v47  ;;  %5110 = vtanh.f32 %v2760_v41  ;;  %v7780_v40 = vld [vmem:[#allocation52_spill] sm:$0xff] }
 0x257   : > { %v5105_v61 = vpop.eup %5104  ;;  %5112 = vrcp.f32 %v2977_v34  ;;  %v7029_v22 = vadd.f32 %v2284_v28, %v7776_v30  ;;  %v2727_v45 = vsub.f32 %v7777_v36, %v2638_v39  ;;  %v7781_v36 = vld [vmem:[#allocation100_spill] sm:$0xff] }
 0x258   : > { %v2884_v44 = vmul.f32 %v7778_v8, %v2852_v6  ;;  %v2948_v49 = vadd.f32 %v2852_v6, %v6783_v16  ;;  %v2286_v0 = vmul.f32 %v2254_v31, %v7779_v56  ;;  %v7036_v60 = vadd.f32 %v2254_v31, %v6845_v50  ;;  %v2644_v35 = vpop.permute.xlu0 %2643  ;;  %v7782_v56 = vld [vmem:[#allocation102_spill] sm:$0xff] }
 0x259   : > { %v2851_v11 = vadd.f32 0.5, %v2819_v14  ;;  %v2822_v47 = vmul.f32 0.5, %v5105_v61  ;;  %v2759_v41 = vmul.f32 0.5, %v2727_v45  ;;  %v2730_v34 = vsub.f32 %v7780_v40, %v2644_v35 }
 0x25a   : > { %v2916_v28 = vadd.f32 %v2884_v44, %v6790_v2  ;;  %v2980_v42 = vmax.f32 %v2948_v49, 1e-12  ;;  %v7041_v39 = vadd.f32 %v2286_v0, %v6850_v18  ;;  %v7783_v0 = vld [vmem:[#allocation56_spill] sm:$0xff] }
 0x25b   : > { %v5107_v30 = vpop.eup %5106  ;;  %v2883_v16 = vmul.f32 %v2851_v11, %v7781_v36  ;;  %v2947_v6 = vadd.f32 %v2851_v11, %v6787_v17  ;;  %v2854_v8 = vadd.f32 0.5, %v2822_v47  ;;  %5114 = vtanh.f32 %v2759_v41  ;;  %v7784_v41 = vld [vmem:[#allocation104_spill] sm:$0xff] }
 0x25c   : > { %5116 = vrcp.f32 %v2980_v42  ;;  %v2821_v50 = vmul.f32 0.5, %v5107_v30  ;;  %v2762_v31 = vmul.f32 0.5, %v2730_v34  ;;  %v2642_v14 = vpop.permute.xlu0 %2641 }
 0x25d   : > { %v2915_v61 = vadd.f32 %v2883_v16, %v6796_v62  ;;  %v2979_v45 = vmax.f32 %v2947_v6, 1e-12  ;;  %v2886_v2 = vmul.f32 %v7782_v56, %v2854_v8  ;;  %v2950_v44 = vadd.f32 %v2854_v8, %v6819_v27 }
 0x25e   : > { %v5109_v18 = vpop.eup %5108  ;;  %v2853_v49 = vadd.f32 0.5, %v2821_v50  ;;  %5118 = vtanh.f32 %v2762_v31  ;;  %v2729_v35 = vsub.f32 %v7783_v0, %v2642_v14 }
 0x25f   : > { %v3042_v40 = vmul.f32 %v5109_v18, %v2914_v53  ;;  %5120 = vrcp.f32 %v2979_v45  ;;  %v2918_v17 = vadd.f32 %v2886_v2, %v6826_v46  ;;  %v2982_v11 = vmax.f32 %v2950_v44, 1e-12 }
 0x260   : > { %v5111_v47 = vpop.eup %5110  ;;  %v2885_v34 = vmul.f32 %v2853_v49, %v7784_v41  ;;  %v2949_v62 = vadd.f32 %v2853_v49, %v6823_v51  ;;  %v2761_v42 = vmul.f32 0.5, %v2729_v35  ;;  %v2648_v30 = vpop.permute.xlu0 %2647  ;;  %v7785_v51 = vld [vmem:[#allocation106_spill] sm:$0xff] }
 0x261   : > { %v5113_v36 = vpop.eup %5112  ;;  %5122 = vrcp.f32 %v2982_v11  ;;  %v2824_v27 = vmul.f32 0.5, %v5111_v47  ;;  %v2732_v16 = vsub.f32 %v6172_v48, %v2648_v30 }
 0x262   : > { %v2917_v6 = vadd.f32 %v2885_v34, %v6832_v32  ;;  %v2981_v8 = vmax.f32 %v2949_v62, 1e-12  ;;  %5124 = vtanh.f32 %v2761_v42  ;;  %v3041_v53 = vmul.f32 %v5113_v36, %v2913_v59  ;;  %v7786_v34 = vld [vmem:[#allocation108_spill] sm:$0xff] }
 0x263   : > { %v2856_v50 = vadd.f32 0.5, %v2824_v27  ;;  %v2764_v46 = vmul.f32 0.5, %v2732_v16  ;;  %v7787_v27 = vld [vmem:[#allocation39_spill] sm:$0xff] }
 0x264   : > { %5126 = vrcp.f32 %v2981_v8  ;;  %4591 = vmatprep.mubr.msk.f32.mxu0 %vm434_vm0, %v3041_v53  ;;  %v2646_v31 = vpop.permute.xlu0 %2645 }
 0x265   : > { %v5115_v14 = vpop.eup %5114  ;;  %v2888_v45 = vmul.f32 %v7785_v51, %v2856_v50  ;;  %v2952_v56 = vadd.f32 %v2856_v50, %v6765_v58  ;;  %5128 = vtanh.f32 %v2764_v46  ;;  %4592 = vmatmul.mubr.msk.f32.vlgmr.msra.gmra.mrb[38].mxu0 %vm434_vm0, %v3042_v40  ;;  %v2731_v48 = vsub.f32 %v6201_v13, %v2646_v31  ;;  %v7788_v50 = vld [vmem:[#allocation110_spill] sm:$0xff]  ;;  %v7790_v51 = vld [vmem:[#allocation72_spill] sm:$0xff] }
 0x266   : > { %v5117_v32 = vpop.eup %5116  ;;  %v2823_v2 = vmul.f32 0.5, %v5115_v14 }
 0x267   : > { %v2920_v59 = vadd.f32 %v2888_v45, %v6769_v21  ;;  %v2984_v44 = vmax.f32 %v2952_v56, 1e-12  ;;  %v2763_v18 = vmul.f32 0.5, %v2731_v48  ;;  %v3044_v49 = vmul.f32 %v5117_v32, %v2916_v28  ;;  %v7791_v32 = vld [vmem:[#allocation34_spill] sm:$0xff] }
 0x268   : > { %v5119_v0 = vpop.eup %5118  ;;  %v2855_v35 = vadd.f32 0.5, %v2823_v2  ;;  %v2652_v11 = vpop.permute.xlu0 %2651 }
 0x269   : > { %v5121_v47 = vpop.eup %5120  ;;  %5130 = vrcp.f32 %v2984_v44  ;;  %v2826_v41 = vmul.f32 0.5, %v5119_v0  ;;  %v2734_v58 = vsub.f32 %v6242_v15, %v2652_v11  ;;  %v7789_v15 = vld [vmem:[#allocation33_spill] sm:$0xff] }
 0x26a   : > { %v2887_v62 = vmul.f32 %v2855_v35, %v7786_v34  ;;  %v2951_v40 = vadd.f32 %v2855_v35, %v6773_v24  ;;  %5132 = vtanh.f32 %v2763_v18  ;;  %v3043_v13 = vmul.f32 %v5121_v47, %v2915_v61 }
 0x26b   : > { %v5123_v42 = vpop.eup %5122  ;;  %v2858_v30 = vadd.f32 0.5, %v2826_v41  ;;  %v2766_v21 = vmul.f32 0.5, %v2734_v58  ;;  %v7792_v41 = vld [vmem:[#allocation111_spill] sm:$0xff]  ;;  %v7793_v58 = vld [vmem:[#allocation40_spill] sm:$0xff] }
 0x26c   : > { %v5125_v36 = vpop.eup %5124  ;;  %v2919_v28 = vadd.f32 %v2887_v62, %v7787_v27  ;;  %v2983_v16 = vmax.f32 %v2951_v40, 1e-12  ;;  %4594 = vmatprep.mubr.msk.f32.mxu0 %vm434_vm0, %v3043_v13  ;;  %v2650_v8 = vpop.permute.xlu0 %2649  ;;  %v3046_v53 = vmul.f32 %v5123_v42, %v2918_v17  ;;  %v7794_v62 = vld [vmem:[#allocation80_spill] sm:$0xff]  ;;  %v7795_v42 = vld [vmem:[#allocation41_spill] sm:$0xff] }
 0x26d   : > { %v2890_v46 = vmul.f32 %v7788_v50, %v2858_v30  ;;  %v2954_v31 = vadd.f32 %v2858_v30, %v7789_v15  ;;  %v2825_v14 = vmul.f32 0.5, %v5125_v36  ;;  %5134 = vtanh.f32 %v2766_v21  ;;  %4595 = vmatmul.mubr.msk.f32.gmra.mrb[40].mxu0 %vm434_vm0, %v3044_v49  ;;  %v2686_v24 = vpop.permute.xlu1 %2685  ;;  %v7796_v27 = vld [vmem:[#allocation113_spill] sm:$0xff] }
 0x26e   : > { %v5127_v61 = vpop.eup %5126  ;;  %5136 = vrcp.f32 %v2983_v16  ;;  %v2733_v45 = vsub.f32 %v7790_v51, %v2650_v8  ;;  %v2751_v56 = vsub.f32 %v7634_v38, %v2686_v24 }
 0x26f   : > { %v5129_v48 = vpop.eup %5128  ;;  %v2922_v2 = vadd.f32 %v2890_v46, %v7791_v32  ;;  %v2986_v44 = vmax.f32 %v2954_v31, 1e-12  ;;  %v2857_v17 = vadd.f32 0.5, %v2825_v14  ;;  %v3045_v18 = vmul.f32 %v5127_v61, %v2917_v6  ;;  %v7797_v31 = vld [vmem:[#allocation84_spill] sm:$0xff] }
 0x270   : > { %v2828_v0 = vmul.f32 0.5, %v5129_v48  ;;  %v2765_v35 = vmul.f32 0.5, %v2733_v45  ;;  %v2783_v11 = vmul.f32 0.5, %v2751_v56  ;;  %v2656_v47 = vpop.permute.xlu0 %2655 }
 0x271   : > { %5138 = vrcp.f32 %v2986_v44  ;;  %v2889_v49 = vmul.f32 %v2857_v17, %v7792_v41  ;;  %v2953_v34 = vadd.f32 %v2857_v17, %v7793_v58  ;;  %v2736_v40 = vsub.f32 %v7794_v62, %v2656_v47  ;;  %4597 = vmatprep.mubr.msk.f32.mxu0 %vm434_vm0, %v3045_v18  ;;  %v7798_v44 = vld [vmem:[#allocation114_spill] sm:$0xff]  ;;  %v7800_v58 = vld [vmem:[#allocation116_spill] sm:$0xff] }
 0x272   : > { %v2860_v38 = vadd.f32 0.5, %v2828_v0  ;;  %5140 = vtanh.f32 %v2765_v35  ;;  %4598 = vmatmul.mubr.msk.f32.gmra.mrb[42].mxu0 %vm434_vm0, %v3046_v53 }
 0x273   : > { %v5131_v13 = vpop.eup %5130  ;;  %v2921_v6 = vadd.f32 %v2889_v49, %v7795_v42  ;;  %v2985_v30 = vmax.f32 %v2953_v34, 1e-12  ;;  %5142 = vtanh.f32 %v2783_v11  ;;  %v2768_v21 = vmul.f32 0.5, %v2736_v40 }
 0x274   : > { %v5133_v36 = vpop.eup %5132  ;;  %v2892_v16 = vmul.f32 %v7796_v27, %v2860_v38  ;;  %v2956_v8 = vadd.f32 %v2860_v38, %v6838_v37  ;;  %v2654_v50 = vpop.permute.xlu0 %2653  ;;  %v3048_v46 = vmul.f32 %v5131_v13, %v2920_v59  ;;  %v7799_v59 = vld [vmem:[#allocation87_spill] sm:$0xff] }
 0x275   : > { %5144 = vrcp.f32 %v2985_v30  ;;  %v2827_v15 = vmul.f32 0.5, %v5133_v36  ;;  %v2735_v14 = vsub.f32 %v7797_v31, %v2654_v50  ;;  %v7802_v30 = vld [vmem:[#allocation59_spill] sm:$0xff]  ;;  %v7803_v31 = vld [vmem:[#allocation117_spill] sm:$0xff] }
 0x276   : > { %v2924_v24 = vadd.f32 %v2892_v16, %v6842_v4  ;;  %v2988_v53 = vmax.f32 %v2956_v8, 1e-12  ;;  %5146 = vtanh.f32 %v2768_v21 }
 0x277   : > { %v5135_v61 = vpop.eup %5134  ;;  %v2859_v51 = vadd.f32 0.5, %v2827_v15  ;;  %v2767_v45 = vmul.f32 0.5, %v2735_v14 }
 0x278   : > { %v5137_v56 = vpop.eup %5136  ;;  %5148 = vrcp.f32 %v2988_v53  ;;  %v2830_v48 = vmul.f32 0.5, %v5135_v61  ;;  %v2660_v32 = vpop.permute.xlu0 %2659 }
 0x279   : > { %v2891_v17 = vmul.f32 %v2859_v51, %v7798_v44  ;;  %v2955_v37 = vadd.f32 %v2859_v51, %v6880_v23  ;;  %5150 = vtanh.f32 %v2767_v45  ;;  %v2738_v18 = vsub.f32 %v7799_v59, %v2660_v32  ;;  %v7804_v51 = vld [vmem:[#allocation141_spill] sm:$0xff] }
 0x27a   : > { %v2862_v0 = vadd.f32 0.5, %v2830_v48  ;;  %v3047_v35 = vmul.f32 %v5137_v56, %v2919_v28  ;;  %v7801_v28 = vld [vmem:[#allocation88_spill] sm:$0xff]  ;;  %v7805_v48 = vld [vmem:[#allocation5_spill] sm:$0xff] }
 0x27b   : > { %v5139_v11 = vpop.eup %5138  ;;  %v2923_v4 = vadd.f32 %v2891_v17, %v6887_v10  ;;  %v2987_v47 = vmax.f32 %v2955_v37, 1e-12  ;;  %v2770_v41 = vmul.f32 0.5, %v2738_v18  ;;  %v7806_v17 = vld [vmem:[#allocation45_spill] sm:$0xff] }
 0x27c   : > { %v5141_v49 = vpop.eup %5140  ;;  %v2894_v34 = vmul.f32 %v7800_v58, %v2862_v0  ;;  %v2958_v62 = vadd.f32 %v2862_v0, %v6854_v63  ;;  %4600 = vmatprep.mubr.msk.f32.mxu0 %vm434_vm0, %v3047_v35  ;;  %v2658_v40 = vpop.permute.xlu0 %2657  ;;  %v3050_v38 = vmul.f32 %v5139_v11, %v2922_v2 }
 0x27d   : > { %v5143_v23 = vpop.eup %5142  ;;  %5152 = vrcp.f32 %v2987_v47  ;;  %v2829_v13 = vmul.f32 0.5, %v5141_v49  ;;  %4601 = vmatmul.mubr.msk.f32.gmra.mrb[44].mxu0 %vm434_vm0, %v3048_v46  ;;  %v2737_v42 = vsub.f32 %v7801_v28, %v2658_v40  ;;  %v7808_v49 = vld [vmem:[#allocation44_spill] sm:$0xff] }
 0x27e   : > { %v2926_v10 = vadd.f32 %v2894_v34, %v7802_v30  ;;  %v2990_v21 = vmax.f32 %v2958_v62, 1e-12  ;;  %v2847_v36 = vmul.f32 0.5, %v5143_v23  ;;  %5154 = vtanh.f32 %v2770_v41  ;;  %v7809_v34 = vld [vmem:[#allocation6_spill] sm:$0xff] }
 0x27f   : > { %v5145_v27 = vpop.eup %5144  ;;  %v2861_v16 = vadd.f32 0.5, %v2829_v13  ;;  %v2769_v8 = vmul.f32 0.5, %v2737_v42  ;;  %v7810_v13 = vld [vmem:[#allocation47_spill] sm:$0xff]  ;;  %v7811_v42 = vld [vmem:[#allocation120_spill] sm:$0xff] }
 0x280   : > { %v5147_v63 = vpop.eup %5146  ;;  %5156 = vrcp.f32 %v2990_v21  ;;  %v2879_v50 = vadd.f32 0.5, %v2847_v36  ;;  %v2664_v15 = vpop.permute.xlu0 %2663  ;;  %v3049_v2 = vmul.f32 %v5145_v27, %v2921_v6  ;;  %v7812_v21 = vld [vmem:[#allocation49_spill] sm:$0xff] }
 0x281   : > { %v2893_v14 = vmul.f32 %v2861_v16, %v7803_v31  ;;  %v2957_v53 = vadd.f32 %v2861_v16, %v6902_v5  ;;  %v2832_v46 = vmul.f32 0.5, %v5147_v63  ;;  %5158 = vtanh.f32 %v2769_v8  ;;  %v7813_v63 = vld [vmem:[#allocation7_spill] sm:$0xff] }
 0x282   : > { %v5149_v61 = vpop.eup %5148  ;;  %v2911_v45 = vmul.f32 %v2879_v50, %v7804_v51  ;;  %v2975_v56 = vadd.f32 %v2879_v50, %v7036_v60  ;;  %v2740_v32 = vsub.f32 %v7805_v48, %v2664_v15  ;;  %4603 = vmatprep.mubr.msk.f32.mxu0 %vm434_vm0, %v3049_v2  ;;  %v7807_v60 = vld [vmem:[#allocation119_spill] sm:$0xff] }
 0x283   : > { %v5151_v44 = vpop.eup %5150  ;;  %v2925_v37 = vadd.f32 %v2893_v14, %v7806_v17  ;;  %v2989_v59 = vmax.f32 %v2957_v53, 1e-12  ;;  %v2864_v6 = vadd.f32 0.5, %v2832_v46  ;;  %4604 = vmatmul.mubr.msk.f32.gmra.mrb[46].mxu0 %vm434_vm0, %v3050_v38  ;;  %v3052_v18 = vmul.f32 %v5149_v61, %v2924_v24  ;;  %v7814_v2 = vld [vmem:[#allocation51_spill] sm:$0xff]  ;;  %v7817_v17 = vld [vmem:[#allocation8_spill] sm:$0xff] }
 0x284   : > { %v2943_v5 = vadd.f32 %v2911_v45, %v7041_v39  ;;  %v3007_v0 = vmax.f32 %v2975_v56, 1e-12  ;;  %v2831_v35 = vmul.f32 0.5, %v5151_v44  ;;  %v2772_v11 = vmul.f32 0.5, %v2740_v32  ;;  %v2662_v47 = vpop.permute.xlu0 %2661  ;;  %v7815_v56 = vld [vmem:[#allocation122_spill] sm:$0xff]  ;;  %v7816_v32 = vld [vmem:[#allocation65_spill] sm:$0xff] }
 0x285   : > { %5160 = vrcp.f32 %v2989_v59  ;;  %v2896_v41 = vmul.f32 %v7807_v60, %v2864_v6  ;;  %v2960_v58 = vadd.f32 %v2864_v6, %v7808_v49  ;;  %v2739_v62 = vsub.f32 %v7809_v34, %v2662_v47  ;;  %v7819_v49 = vld [vmem:[#allocation123_spill] sm:$0xff] }
 0x286   : > { %5162 = vrcp.f32 %v3007_v0  ;;  %v2863_v40 = vadd.f32 0.5, %v2831_v35  ;;  %v7818_v35 = vld [vmem:[#allocation66_spill] sm:$0xff] }
 0x287   : > { %v5153_v23 = vpop.eup %5152  ;;  %v2928_v28 = vadd.f32 %v2896_v41, %v7810_v13  ;;  %v2992_v38 = vmax.f32 %v2960_v58, 1e-12  ;;  %5164 = vtanh.f32 %v2772_v11  ;;  %v2771_v24 = vmul.f32 0.5, %v2739_v62 }
 0x288   : > { %v5155_v39 = vpop.eup %5154  ;;  %v2895_v30 = vmul.f32 %v2863_v40, %v7811_v42  ;;  %v2959_v36 = vadd.f32 %v2863_v40, %v7812_v21  ;;  %v2668_v27 = vpop.permute.xlu0 %2667  ;;  %v3051_v16 = vmul.f32 %v5153_v23, %v2923_v4  ;;  %v7821_v23 = vld [vmem:[#allocation9_spill] sm:$0xff] }
 0x289   : > { %5166 = vrcp.f32 %v2992_v38  ;;  %v2834_v8 = vmul.f32 0.5, %v5155_v39  ;;  %v2742_v50 = vsub.f32 %v7813_v63, %v2668_v27 }
 0x28a   : > { %v5157_v15 = vpop.eup %5156  ;;  %v2927_v31 = vadd.f32 %v2895_v30, %v7814_v2  ;;  %v2991_v14 = vmax.f32 %v2959_v36, 1e-12  ;;  %5168 = vtanh.f32 %v2771_v24  ;;  %4606 = vmatprep.mubr.msk.f32.mxu0 %vm434_vm0, %v3051_v16  ;;  %v7824_v2 = vld [vmem:[#allocation48_spill] sm:$0xff] }
 0x28b   : > { %v5159_v53 = vpop.eup %5158  ;;  %v2866_v46 = vadd.f32 0.5, %v2834_v8  ;;  %v2774_v61 = vmul.f32 0.5, %v2742_v50  ;;  %4607 = vmatmul.mubr.msk.f32.gmra.mrb[48].mxu0 %vm434_vm0, %v3052_v18  ;;  %v3054_v51 = vmul.f32 %v5157_v15, %v2926_v10  ;;  %v7820_v10 = vld [vmem:[#allocation53_spill] sm:$0xff] }
 0x28c   : > { %5170 = vrcp.f32 %v2991_v14  ;;  %v2833_v45 = vmul.f32 0.5, %v5159_v53  ;;  %v2666_v4 = vpop.permute.xlu0 %2665 }
 0x28d   : > { %v2898_v48 = vmul.f32 %v7815_v56, %v2866_v46  ;;  %v2962_v44 = vadd.f32 %v2866_v46, %v7816_v32  ;;  %5172 = vtanh.f32 %v2774_v61  ;;  %v2741_v59 = vsub.f32 %v7817_v17, %v2666_v4  ;;  %v7825_v4 = vld [vmem:[#allocation68_spill] sm:$0xff] }
 0x28e   : > { %v2865_v6 = vadd.f32 0.5, %v2833_v45 }
 0x28f   : > { %v5161_v0 = vpop.eup %5160  ;;  %v2930_v11 = vadd.f32 %v2898_v48, %v7818_v35  ;;  %v2994_v47 = vmax.f32 %v2962_v44, 1e-12  ;;  %v2773_v60 = vmul.f32 0.5, %v2741_v59  ;;  %v7826_v44 = vld [vmem:[#allocation126_spill] sm:$0xff]  ;;  %v7827_v59 = vld [vmem:[#allocation11_spill] sm:$0xff] }
 0x290   : > { %v5163_v41 = vpop.eup %5162  ;;  %v2897_v18 = vmul.f32 %v2865_v6, %v7819_v49  ;;  %v2961_v58 = vadd.f32 %v2865_v6, %v7820_v10  ;;  %v2672_v34 = vpop.permute.xlu0 %2671  ;;  %v3053_v62 = vmul.f32 %v5161_v0, %v2925_v37  ;;  %v7828_v49 = vld [vmem:[#allocation128_spill] sm:$0xff]  ;;  %v7829_v10 = vld [vmem:[#allocation50_spill] sm:$0xff] }
 0x291   : > { %v5165_v40 = vpop.eup %5164  ;;  %5174 = vrcp.f32 %v2994_v47  ;;  %v2744_v13 = vsub.f32 %v7821_v23, %v2672_v34  ;;  %v7117_v38 = vmul.f32 %v5163_v41, %v2943_v5  ;;  %v7822_v5 = vld [vmem:[#allocation10_spill] sm:$0xff] }
 0x292   : > { %v2929_v24 = vadd.f32 %v2897_v18, %v6940_v57  ;;  %v2993_v39 = vmax.f32 %v2961_v58, 1e-12  ;;  %v2836_v42 = vmul.f32 0.5, %v5165_v40  ;;  %5176 = vtanh.f32 %v2773_v60  ;;  %4609 = vmatprep.mubr.msk.f32.mxu0 %vm434_vm0, %v3053_v62  ;;  %v7823_v57 = vld [vmem:[#allocation125_spill] sm:$0xff] }
 0x293   : > { %v5167_v30 = vpop.eup %5166  ;;  %v2776_v21 = vmul.f32 0.5, %v2744_v13  ;;  %4610 = vmatmul.mubr.msk.f32.gmra.mrb[50].mxu0 %vm434_vm0, %v3054_v51  ;;  %v7830_v40 = vld [vmem:[#allocation13_spill] sm:$0xff] }
 0x294   : > { %v5169_v36 = vpop.eup %5168  ;;  %5178 = vrcp.f32 %v2993_v39  ;;  %v2868_v37 = vadd.f32 0.5, %v2836_v42  ;;  %v2670_v27 = vpop.permute.xlu0 %2669  ;;  %v3056_v16 = vmul.f32 %v5167_v30, %v2928_v28  ;;  %v7831_v39 = vld [vmem:[#allocation93_spill] sm:$0xff] }
 0x295   : > { %v2835_v8 = vmul.f32 0.5, %v5169_v36  ;;  %5180 = vtanh.f32 %v2776_v21  ;;  %v2743_v63 = vsub.f32 %v7822_v5, %v2670_v27 }
 0x296   : > { %v5171_v50 = vpop.eup %5170  ;;  %v2900_v15 = vmul.f32 %v7823_v57, %v2868_v37  ;;  %v2964_v14 = vadd.f32 %v2868_v37, %v7824_v2 }
 0x297   : > { %v5173_v53 = vpop.eup %5172  ;;  %v2867_v46 = vadd.f32 0.5, %v2835_v8  ;;  %v2775_v61 = vmul.f32 0.5, %v2743_v63  ;;  %v3055_v45 = vmul.f32 %v5171_v50, %v2927_v31  ;;  %v7832_v8 = vld [vmem:[#allocation129_spill] sm:$0xff]  ;;  %v7833_v63 = vld [vmem:[#allocation15_spill] sm:$0xff] }
 0x298   : > { %v2932_v51 = vadd.f32 %v2900_v15, %v7825_v4  ;;  %v2996_v56 = vmax.f32 %v2964_v14, 1e-12  ;;  %v2838_v48 = vmul.f32 0.5, %v5173_v53  ;;  %v2676_v32 = vpop.permute.xlu0 %2675 }
 0x299   : > { %v2899_v28 = vmul.f32 %v2867_v46, %v7826_v44  ;;  %v2963_v17 = vadd.f32 %v2867_v46, %v6948_v20  ;;  %5182 = vtanh.f32 %v2775_v61  ;;  %v2746_v6 = vsub.f32 %v7827_v59, %v2676_v32  ;;  %4612 = vmatprep.mubr.msk.f32.mxu0 %vm434_vm0, %v3055_v45  ;;  %v7834_v46 = vld [vmem:[#allocation21_spill] sm:$0xff]  ;;  %v7836_v44 = vld [vmem:[#allocation54_spill] sm:$0xff] }
 0x29a   : > { %5184 = vrcp.f32 %v2996_v56  ;;  %v2870_v0 = vadd.f32 0.5, %v2838_v48  ;;  %4613 = vmatmul.mubr.msk.f32.gmra.mrb[52].mxu0 %vm434_vm0, %v3056_v16  ;;  %v7835_v56 = vld [vmem:[#allocation17_spill] sm:$0xff] }
 0x29b   : > { %v5175_v35 = vpop.eup %5174  ;;  %v2931_v31 = vadd.f32 %v2899_v28, %v6959_v26  ;;  %v2995_v47 = vmax.f32 %v2963_v17, 1e-12  ;;  %v2778_v60 = vmul.f32 0.5, %v2746_v6 }
 0x29c   : > { %v5177_v41 = vpop.eup %5176  ;;  %v2902_v18 = vmul.f32 %v7828_v49, %v2870_v0  ;;  %v2966_v58 = vadd.f32 %v2870_v0, %v7829_v10  ;;  %v2674_v20 = vpop.permute.xlu0 %2673  ;;  %v3058_v34 = vmul.f32 %v5175_v35, %v2930_v11  ;;  %v7837_v35 = vld [vmem:[#allocation131_spill] sm:$0xff] }
 0x29d   : > { %5186 = vrcp.f32 %v2995_v47  ;;  %v2837_v62 = vmul.f32 0.5, %v5177_v41  ;;  %v2745_v23 = vsub.f32 %v7830_v40, %v2674_v20 }
 0x29e   : > { %v5179_v13 = vpop.eup %5178  ;;  %v2934_v42 = vadd.f32 %v2902_v18, %v7831_v39  ;;  %v2998_v30 = vmax.f32 %v2966_v58, 1e-12  ;;  %5188 = vtanh.f32 %v2778_v60  ;;  %v7838_v18 = vld [vmem:[#allocation19_spill] sm:$0xff] }
 0x29f   : > { %v5181_v21 = vpop.eup %5180  ;;  %v2869_v26 = vadd.f32 0.5, %v2837_v62  ;;  %v2777_v36 = vmul.f32 0.5, %v2745_v23  ;;  %v3057_v37 = vmul.f32 %v5179_v13, %v2929_v24 }
 0x2a0   : > { %5190 = vrcp.f32 %v2998_v30  ;;  %v2840_v27 = vmul.f32 0.5, %v5181_v21  ;;  %v2680_v16 = vpop.permute.xlu0 %2679 }
 0x2a1   : > { %v2901_v5 = vmul.f32 %v2869_v26, %v7832_v8  ;;  %v2965_v11 = vadd.f32 %v2869_v26, %v6974_v1  ;;  %5192 = vtanh.f32 %v2777_v36  ;;  %v2748_v50 = vsub.f32 %v7833_v63, %v2680_v16  ;;  %4615 = vmatprep.mubr.msk.f32.mxu0 %vm434_vm0, %v3057_v37  ;;  %v7840_v8 = vld [vmem:[#allocation134_spill] sm:$0xff] }
 0x2a2   : > { %v2872_v57 = vadd.f32 0.5, %v2840_v27  ;;  %4616 = vmatmul.mubr.msk.f32.gmra.mrb[54].mxu0 %vm434_vm0, %v3058_v34 }
 0x2a3   : > { %v5183_v15 = vpop.eup %5182  ;;  %v2933_v2 = vadd.f32 %v2901_v5, %v6977_v43  ;;  %v2997_v14 = vmax.f32 %v2965_v11, 1e-12  ;;  %v2780_v24 = vmul.f32 0.5, %v2748_v50 }
 0x2a4   : > { %v5185_v53 = vpop.eup %5184  ;;  %v2904_v61 = vmul.f32 %v7834_v46, %v2872_v57  ;;  %v2968_v45 = vadd.f32 %v2872_v57, %v6944_v33  ;;  %v2839_v4 = vmul.f32 0.5, %v5183_v15  ;;  %v2678_v1 = vpop.permute.xlu0 %2677  ;;  %v7841_v57 = vld [vmem:[#allocation23_spill] sm:$0xff] }
 0x2a5   : > { %5194 = vrcp.f32 %v2997_v14  ;;  %v2747_v48 = vsub.f32 %v7835_v56, %v2678_v1  ;;  %v3060_v32 = vmul.f32 %v5185_v53, %v2932_v51 }
 0x2a6   : > { %v2936_v28 = vadd.f32 %v2904_v61, %v7836_v44  ;;  %v3000_v17 = vmax.f32 %v2968_v45, 1e-12  ;;  %v2871_v59 = vadd.f32 0.5, %v2839_v4  ;;  %5196 = vtanh.f32 %v2780_v24  ;;  %v7842_v61 = vld [vmem:[#allocation136_spill] sm:$0xff] }
 0x2a7   : > { %v5187_v6 = vpop.eup %5186  ;;  %v2779_v43 = vmul.f32 0.5, %v2747_v48 }
 0x2a8   : > { %v5189_v0 = vpop.eup %5188  ;;  %5198 = vrcp.f32 %v3000_v17  ;;  %v2903_v47 = vmul.f32 %v2871_v59, %v7837_v35  ;;  %v2967_v60 = vadd.f32 %v2871_v59, %v6986_v19  ;;  %v2684_v33 = vpop.permute.xlu0 %2683  ;;  %v3059_v41 = vmul.f32 %v5187_v6, %v2931_v31  ;;  %v7839_v31 = vld [vmem:[#allocation133_spill] sm:$0xff] }
 0x2a9   : > { %v2842_v49 = vmul.f32 0.5, %v5189_v0  ;;  %5200 = vtanh.f32 %v2779_v43  ;;  %v2750_v10 = vsub.f32 %v7838_v18, %v2684_v33  ;;  %v7844_v43 = vld [vmem:[#allocation137_spill] sm:$0xff]  ;;  %v7845_v0 = vld [vmem:[#allocation76_spill] sm:$0xff]  ;;  %v7846_v18 = vld [vmem:[#allocation139_spill] sm:$0xff] }
 0x2aa   : > { %v5191_v51 = vpop.eup %5190  ;;  %v2935_v58 = vadd.f32 %v2903_v47, %v6992_v55  ;;  %v2999_v20 = vmax.f32 %v2967_v60, 1e-12  ;;  %4618 = vmatprep.mubr.msk.f32.mxu0 %vm434_vm0, %v3059_v41 }
 0x2ab   : > { %v5193_v34 = vpop.eup %5192  ;;  %v2874_v62 = vadd.f32 0.5, %v2842_v49  ;;  %v2782_v40 = vmul.f32 0.5, %v2750_v10  ;;  %4619 = vmatmul.mubr.msk.f32.gmra.mrb[56].mxu0 %vm434_vm0, %v3060_v32  ;;  %v3062_v23 = vmul.f32 %v5191_v51, %v2934_v42  ;;  %v7843_v32 = vld [vmem:[#allocation74_spill] sm:$0xff]  ;;  %v7847_v51 = vld [vmem:[#allocation57_spill] sm:$0xff] }
 0x2ac   : > { %5202 = vrcp.f32 %v2999_v20  ;;  %v2841_v19 = vmul.f32 0.5, %v5193_v34  ;;  %v2682_v13 = vpop.permute.xlu0 %2681 }
 0x2ad   : > { %v2906_v39 = vmul.f32 %v7839_v31, %v2874_v62  ;;  %v2970_v30 = vadd.f32 %v2874_v62, %v6963_v7  ;;  %5204 = vtanh.f32 %v2782_v40  ;;  %v2749_v21 = vsub.f32 %v7613_v9, %v2682_v13  ;;  %v7848_v40 = vld [vmem:[#allocation78_spill] sm:$0xff] }
 0x2ae   : > { %v2873_v55 = vadd.f32 0.5, %v2841_v19 }
 0x2af   : > { %v5195_v26 = vpop.eup %5194  ;;  %v2938_v36 = vadd.f32 %v2906_v39, %v6966_v25  ;;  %v3002_v37 = vmax.f32 %v2970_v30, 1e-12  ;;  %v2781_v27 = vmul.f32 0.5, %v2749_v21  ;;  %v7849_v30 = vld [vmem:[#allocation140_spill] sm:$0xff] }
 0x2b0   : > { %v5197_v16 = vpop.eup %5196  ;;  %v2905_v5 = vmul.f32 %v2873_v55, %v7840_v8  ;;  %v2969_v42 = vadd.f32 %v2873_v55, %v7005_v54  ;;  %v2063_v11 = vpop.permute.xlu0 %2062  ;;  %v3061_v63 = vmul.f32 %v5195_v26, %v2933_v2  ;;  %v7850_v8 = vld [vmem:[#allocation91_spill] sm:$0xff] }
 0x2b1   : > { %5206 = vrcp.f32 %v3002_v37  ;;  %v2844_v50 = vmul.f32 0.5, %v5197_v16  ;;  %v2127_v7 = vsub.f32 %v7841_v57, %v2063_v11 }
 0x2b2   : > { %v5199_v15 = vpop.eup %5198  ;;  %v2937_v9 = vadd.f32 %v2905_v5, %v7008_v52  ;;  %v3001_v14 = vmax.f32 %v2969_v42, 1e-12  ;;  %5208 = vtanh.f32 %v2781_v27  ;;  %4621 = vmatprep.mubr.msk.f32.mxu0 %vm434_vm0, %v3061_v63  ;;  %v7851_v42 = vld [vmem:[#allocation62_spill] sm:$0xff] }
 0x2b3   : > { %v5201_v25 = vpop.eup %5200  ;;  %v2876_v24 = vadd.f32 0.5, %v2844_v50  ;;  %v2159_v53 = vmul.f32 0.5, %v2127_v7  ;;  %4622 = vmatmul.mubr.msk.f32.gmra.mrb[58].mxu0 %vm434_vm0, %v3062_v23  ;;  %v3064_v46 = vmul.f32 %v5199_v15, %v2936_v28  ;;  %v7852_v7 = vld [vmem:[#allocation42_spill] sm:$0xff] }
 0x2b4   : > { %5210 = vrcp.f32 %v3001_v14  ;;  %v2843_v54 = vmul.f32 0.5, %v5201_v25  ;;  %v2688_v2 = vpop.permute.xlu0 %2687  ;;  %v7853_v14 = vld [vmem:[#allocation25_spill] sm:$0xff] }
 0x2b5   : > { %v2908_v45 = vmul.f32 %v7842_v61, %v2876_v24  ;;  %v2972_v4 = vadd.f32 %v2876_v24, %v6981_v29  ;;  %5212 = vtanh.f32 %v2159_v53  ;;  %v2752_v52 = vsub.f32 %v7841_v57, %v2688_v2 }
 0x2b6   : > { %v5203_v1 = vpop.eup %5202  ;;  %v2875_v56 = vadd.f32 0.5, %v2843_v54 }
 0x2b7   : > { %v5205_v48 = vpop.eup %5204  ;;  %v2940_v44 = vadd.f32 %v2908_v45, %v7843_v32  ;;  %v3004_v17 = vmax.f32 %v2972_v4, 1e-12  ;;  %v2784_v59 = vmul.f32 0.5, %v2752_v52  ;;  %v3063_v6 = vmul.f32 %v5203_v1, %v2935_v58  ;;  %v7194_v52 = vld [vmem:[%s7328_s7] ss:$0 sm:$0xff] }
 0x2b8   : > { %v2907_v28 = vmul.f32 %v2875_v56, %v7844_v43  ;;  %v2971_v35 = vadd.f32 %v2875_v56, %v7845_v0  ;;  %v2846_v47 = vmul.f32 0.5, %v5205_v48 }
 0x2b9   : > { %5214 = vrcp.f32 %v3004_v17  ;;  %4624 = vmatprep.mubr.msk.f32.mxu0 %vm434_vm0, %v3063_v6 }
 0x2ba   : > { %v2939_v29 = vadd.f32 %v2907_v28, %v7021_v12  ;;  %v3003_v60 = vmax.f32 %v2971_v35, 1e-12  ;;  %v2878_v33 = vadd.f32 0.5, %v2846_v47  ;;  %5216 = vtanh.f32 %v2784_v59  ;;  %4625 = vmatmul.mubr.msk.f32.gmra.mrb[60].mxu0 %vm434_vm0, %v3064_v46 }
 0x2bb   : > { %v5207_v41 = vpop.eup %5206 }
 0x2bc   : > { %v5209_v49 = vpop.eup %5208  ;;  %5218 = vrcp.f32 %v3003_v60  ;;  %v2910_v10 = vmul.f32 %v7846_v18, %v2878_v33  ;;  %v2974_v58 = vadd.f32 %v2878_v33, %v7847_v51  ;;  %v3066_v20 = vmul.f32 %v5207_v41, %v2938_v36 }
 0x2bd   : > { %v2845_v34 = vmul.f32 0.5, %v5209_v49 }
 0x2be   : > { %v5211_v62 = vpop.eup %5210  ;;  %v2942_v23 = vadd.f32 %v2910_v10, %v7848_v40  ;;  %v3006_v19 = vmax.f32 %v2974_v58, 1e-12 }
 0x2bf   : > { %v5213_v13 = vpop.eup %5212  ;;  %v2877_v12 = vadd.f32 0.5, %v2845_v34  ;;  %v3065_v31 = vmul.f32 %v5211_v62, %v2937_v9 }
 0x2c0   : > { %5220 = vrcp.f32 %v3006_v19  ;;  %v2223_v39 = vmul.f32 0.5, %v5213_v13 }
 0x2c1   : > { %v2909_v21 = vmul.f32 %v2877_v12, %v7849_v30  ;;  %v2973_v55 = vadd.f32 %v2877_v12, %v7026_v3  ;;  %4627 = vmatprep.mubr.msk.f32.mxu0 %vm434_vm0, %v3065_v31 }
 0x2c2   : > { %v2255_v26 = vadd.f32 0.5, %v2223_v39  ;;  %4628 = vmatmul.mubr.msk.f32.gmra.mrb[62].mxu0 %vm434_vm0, %v3066_v20 }
 0x2c3   : > { %v5215_v36 = vpop.eup %5214  ;;  %v2941_v37 = vadd.f32 %v2909_v21, %v7029_v22  ;;  %v3005_v27 = vmax.f32 %v2973_v55, 1e-12 }
 0x2c4   : > { %v5217_v16 = vpop.eup %5216  ;;  %v2287_v5 = vmul.f32 %v7850_v8, %v2255_v26  ;;  %v2351_v11 = vadd.f32 %v2255_v26, %v7851_v42  ;;  %v3068_v63 = vmul.f32 %v5215_v36, %v2940_v44 }
 0x2c5   : > { %5222 = vrcp.f32 %v3005_v27  ;;  %v2848_v50 = vmul.f32 0.5, %v5217_v16 }
 0x2c6   : > { %v5219_v57 = vpop.eup %5218  ;;  %v2319_v3 = vadd.f32 %v2287_v5, %v7852_v7 }
 0x2c7   : > { %v2880_v15 = vadd.f32 0.5, %v2848_v50  ;;  %v3067_v9 = vmul.f32 %v5219_v57, %v2939_v29 }
 0x2c9   : > { %v2912_v25 = vmul.f32 %v7853_v14, %v2880_v15  ;;  %v2976_v24 = vadd.f32 %v2880_v15, %v2351_v11  ;;  %4630 = vmatprep.mubr.msk.f32.mxu0 %vm434_vm0, %v3067_v9 }
 0x2ca   : > { %v5221_v22 = vpop.eup %5220  ;;  %4631 = vmatmul.mubr.msk.f32.gmra.mrb[64].mxu0 %vm434_vm0, %v3068_v63 }
 0x2cb   : > { %v2944_v53 = vadd.f32 %v2912_v25, %v2319_v3  ;;  %v3008_v46 = vmax.f32 %v2976_v24, 1e-12  ;;  %v3070_v54 = vmul.f32 %v5221_v22, %v2942_v23 }
 0x2cd   : > { %5224 = vrcp.f32 %v3008_v46 }
 0x2cf   : > { %v5223_v2 = vpop.eup %5222 }
 0x2d0   : > { %v3069_v61 = vmul.f32 %v5223_v2, %v2941_v37 }
 0x2d2   : > { %4633 = vmatprep.mubr.msk.f32.mxu0 %vm434_vm0, %v3069_v61 }
 0x2d3   : > { %4634 = vmatmul.mubr.msk.f32.gmra.mrb[66].mxu0 %vm434_vm0, %v3070_v54 }
 0x2d4   : > { %4636 = vmatprep.mubr.msk.f32.mxu0 %vm434_vm0, %v7117_v38 }
 0x2d7   : > { %v5225_v45 = vpop.eup %5224 }
 0x2d8   : > { %v3072_v4 = vmul.f32 %v5225_v45, %v2944_v53 }
 0x2da   : > { %4637 = vmatmul.mubr.msk.f32.gmra.mrb[68].mxu0 %vm434_vm0, %v3072_v4 }
 0x338   : > { %v4593_v1 = vpop.f32.mrb[38].mxu0 }
 0x339   : > { %v3635_v56 = vadd.f32 %v4593_v1, %v7194_v52  ;;  %v3468_v48 = vpop.f32.mrb[39].mxu0 }
 0x33a   : > { %v3634_v32 = vadd.f32 %v7194_v52, %v3468_v48 }
 0x33b   : > { %v3667_v44 = vmax.f32 %v3635_v56, 0.0 }
 0x33c   : > { %v3666_v38 = vmax.f32 %v3634_v32, 0.0 }
 0x33d   : > { %3699 = vst [vmem:[%s7200_s23 + $0x8] sm:$0xff] %v3667_v44 }
 0x33e   : > { %3698 = vst [vmem:[%s7200_s23] sm:$0xff] %v3666_v38 }
 0x340   : > { %v4596_v17 = vpop.f32.mrb[40].mxu0 }
 0x341   : > { %v3637_v59 = vadd.f32 %v4596_v17, %v7194_v52  ;;  %v3478_v6 = vpop.f32.mrb[41].mxu0 }
 0x342   : > { %v3636_v43 = vadd.f32 %v7194_v52, %v3478_v6 }
 0x343   : > { %v3669_v28 = vmax.f32 %v3637_v59, 0.0 }
 0x344   : > { %v3668_v0 = vmax.f32 %v3636_v43, 0.0 }
 0x345   : > { %3701 = vst [vmem:[%s7200_s23 + $0x18] sm:$0xff] %v3669_v28  ;;  %v4599_v35 = vpop.f32.mrb[42].mxu0 }
 0x346   : > { %3700 = vst [vmem:[%s7200_s23 + $0x10] sm:$0xff] %v3668_v0  ;;  %v3639_v47 = vadd.f32 %v4599_v35, %v7194_v52  ;;  %v3488_v29 = vpop.f32.mrb[43].mxu0 }
 0x347   : > { %v3638_v60 = vadd.f32 %v7194_v52, %v3488_v29 }
 0x348   : > { %v3671_v33 = vmax.f32 %v3639_v47, 0.0 }
 0x349   : > { %v3670_v41 = vmax.f32 %v3638_v60, 0.0 }
 0x34a   : > { %3703 = vst [vmem:[%s7200_s23 + $0x28] sm:$0xff] %v3671_v33 }
 0x34b   : > { %3702 = vst [vmem:[%s7200_s23 + $0x20] sm:$0xff] %v3670_v41 }
 0x350   : > { %v4602_v49 = vpop.f32.mrb[44].mxu0 }
 0x351   : > { %v3641_v18 = vadd.f32 %v4602_v49, %v7194_v52  ;;  %v3498_v10 = vpop.f32.mrb[45].mxu0 }
 0x352   : > { %v3640_v51 = vadd.f32 %v7194_v52, %v3498_v10 }
 0x353   : > { %v3673_v58 = vmax.f32 %v3641_v18, 0.0 }
 0x354   : > { %v3672_v20 = vmax.f32 %v3640_v51, 0.0 }
 0x355   : > { %3705 = vst [vmem:[%s7200_s23 + $0x38] sm:$0xff] %v3673_v58 }
 0x356   : > { %3704 = vst [vmem:[%s7200_s23 + $0x30] sm:$0xff] %v3672_v20  ;;  %v4605_v34 = vpop.f32.mrb[46].mxu0 }
 0x357   : > { %v3643_v62 = vadd.f32 %v4605_v34, %v7194_v52  ;;  %v3508_v40 = vpop.f32.mrb[47].mxu0 }
 0x358   : > { %v3642_v23 = vadd.f32 %v7194_v52, %v3508_v40 }
 0x359   : > { %v3675_v19 = vmax.f32 %v3643_v62, 0.0 }
 0x35a   : > { %v3674_v13 = vmax.f32 %v3642_v23, 0.0 }
 0x35b   : > { %3707 = vst [vmem:[%s7200_s23 + $0x48] sm:$0xff] %v3675_v19 }
 0x35c   : > { %3706 = vst [vmem:[%s7200_s23 + $0x40] sm:$0xff] %v3674_v13 }
 0x35e   : > { %v4608_v12 = vpop.f32.mrb[48].mxu0 }
 0x35f   : > { %v3645_v31 = vadd.f32 %v4608_v12, %v7194_v52  ;;  %v3518_v39 = vpop.f32.mrb[49].mxu0 }
 0x360   : > { %v3644_v30 = vadd.f32 %v7194_v52, %v3518_v39 }
 0x361   : > { %v3677_v21 = vmax.f32 %v3645_v31, 0.0 }
 0x362   : > { %v3676_v55 = vmax.f32 %v3644_v30, 0.0 }
 0x363   : > { %3709 = vst [vmem:[%s7200_s23 + $0x58] sm:$0xff] %v3677_v21 }
 0x364   : > { %3708 = vst [vmem:[%s7200_s23 + $0x50] sm:$0xff] %v3676_v55 }
 0x366   : > { %v4611_v26 = vpop.f32.mrb[50].mxu0 }
 0x367   : > { %v3647_v36 = vadd.f32 %v4611_v26, %v7194_v52  ;;  %v3528_v37 = vpop.f32.mrb[51].mxu0 }
 0x368   : > { %v3646_v27 = vadd.f32 %v7194_v52, %v3528_v37 }
 0x369   : > { %v3679_v16 = vmax.f32 %v3647_v36, 0.0 }
 0x36a   : > { %v3678_v8 = vmax.f32 %v3646_v27, 0.0 }
 0x36b   : > { %3711 = vst [vmem:[%s7200_s23 + $0x68] sm:$0xff] %v3679_v16 }
 0x36c   : > { %3710 = vst [vmem:[%s7200_s23 + $0x60] sm:$0xff] %v3678_v8 }
 0x36d   : > { %v4614_v5 = vpop.f32.mrb[52].mxu0 }
 0x36e   : > { %v3649_v42 = vadd.f32 %v4614_v5, %v7194_v52  ;;  %v3538_v11 = vpop.f32.mrb[53].mxu0 }
 0x36f   : > { %v3648_v63 = vadd.f32 %v7194_v52, %v3538_v11 }
 0x370   : > { %v3681_v50 = vmax.f32 %v3649_v42, 0.0 }
 0x371   : > { %v3680_v57 = vmax.f32 %v3648_v63, 0.0 }
 0x372   : > { %3713 = vst [vmem:[%s7200_s23 + $0x78] sm:$0xff] %v3681_v50 }
 0x373   : > { %3712 = vst [vmem:[%s7200_s23 + $0x70] sm:$0xff] %v3680_v57 }
 0x375   : > { %v4617_v7 = vpop.f32.mrb[54].mxu0 }
 0x376   : > { %v3651_v3 = vadd.f32 %v4617_v7, %v7194_v52  ;;  %v3548_v15 = vpop.f32.mrb[55].mxu0 }
 0x377   : > { %v3650_v9 = vadd.f32 %v7194_v52, %v3548_v15 }
 0x378   : > { %v3683_v14 = vmax.f32 %v3651_v3, 0.0 }
 0x379   : > { %v3682_v25 = vmax.f32 %v3650_v9, 0.0 }
 0x37a   : > { %3715 = vst [vmem:[%s7200_s23 + $0x88] sm:$0xff] %v3683_v14 }
 0x37b   : > { %3714 = vst [vmem:[%s7200_s23 + $0x80] sm:$0xff] %v3682_v25 }
 0x37e   : > { %v4620_v24 = vpop.f32.mrb[56].mxu0 }
 0x37f   : > { %v3653_v22 = vadd.f32 %v4620_v24, %v7194_v52  ;;  %v3558_v53 = vpop.f32.mrb[57].mxu0 }
 0x380   : > { %v3652_v46 = vadd.f32 %v7194_v52, %v3558_v53 }
 0x381   : > { %v3685_v54 = vmax.f32 %v3653_v22, 0.0 }
 0x382   : > { %v3684_v2 = vmax.f32 %v3652_v46, 0.0 }
 0x383   : > { %3717 = vst [vmem:[%s7200_s23 + $0x98] sm:$0xff] %v3685_v54 }
 0x384   : > { %3716 = vst [vmem:[%s7200_s23 + $0x90] sm:$0xff] %v3684_v2 }
 0x386   : > { %v4623_v61 = vpop.f32.mrb[58].mxu0 }
 0x387   : > { %v3655_v45 = vadd.f32 %v4623_v61, %v7194_v52  ;;  %v3568_v4 = vpop.f32.mrb[59].mxu0 }
 0x388   : > { %v3654_v1 = vadd.f32 %v7194_v52, %v3568_v4 }
 0x389   : > { %v3687_v56 = vmax.f32 %v3655_v45, 0.0 }
 0x38a   : > { %v3686_v48 = vmax.f32 %v3654_v1, 0.0 }
 0x38b   : > { %3719 = vst [vmem:[%s7200_s23 + $0xa8] sm:$0xff] %v3687_v56 }
 0x38c   : > { %3718 = vst [vmem:[%s7200_s23 + $0xa0] sm:$0xff] %v3686_v48 }
 0x38d   : > { %v4626_v32 = vpop.f32.mrb[60].mxu0 }
 0x38e   : > { %v3657_v44 = vadd.f32 %v4626_v32, %v7194_v52  ;;  %v3578_v38 = vpop.f32.mrb[61].mxu0 }
 0x38f   : > { %v3656_v17 = vadd.f32 %v7194_v52, %v3578_v38 }
 0x390   : > { %v3689_v59 = vmax.f32 %v3657_v44, 0.0 }
 0x391   : > { %v3688_v6 = vmax.f32 %v3656_v17, 0.0 }
 0x392   : > { %3721 = vst [vmem:[%s7200_s23 + $0xb8] sm:$0xff] %v3689_v59 }
 0x393   : > { %3720 = vst [vmem:[%s7200_s23 + $0xb0] sm:$0xff] %v3688_v6 }
 0x395   : > { %v4629_v43 = vpop.f32.mrb[62].mxu0 }
 0x396   : > { %v3659_v28 = vadd.f32 %v4629_v43, %v7194_v52  ;;  %v3588_v0 = vpop.f32.mrb[63].mxu0 }
 0x397   : > { %v3658_v35 = vadd.f32 %v7194_v52, %v3588_v0 }
 0x398   : > { %v3691_v47 = vmax.f32 %v3659_v28, 0.0 }
 0x399   : > { %v3690_v29 = vmax.f32 %v3658_v35, 0.0 }
 0x39a   : > { %3723 = vst [vmem:[%s7200_s23 + $0xc8] sm:$0xff] %v3691_v47 }
 0x39b   : > { %3722 = vst [vmem:[%s7200_s23 + $0xc0] sm:$0xff] %v3690_v29 }
 0x39d   : > { %v4632_v60 = vpop.f32.mrb[64].mxu0 }
 0x39e   : > { %v3661_v33 = vadd.f32 %v4632_v60, %v7194_v52  ;;  %v3598_v41 = vpop.f32.mrb[65].mxu0 }
 0x39f   : > { %v3660_v49 = vadd.f32 %v7194_v52, %v3598_v41 }
 0x3a0   : > { %v3693_v18 = vmax.f32 %v3661_v33, 0.0 }
 0x3a1   : > { %v3692_v10 = vmax.f32 %v3660_v49, 0.0 }
 0x3a2   : > { %3725 = vst [vmem:[%s7200_s23 + $0xd8] sm:$0xff] %v3693_v18 }
 0x3a3   : > { %3724 = vst [vmem:[%s7200_s23 + $0xd0] sm:$0xff] %v3692_v10 }
 0x3a6   : > { %v4635_v51 = vpop.f32.mrb[66].mxu0 }
 0x3a7   : > { %v3663_v58 = vadd.f32 %v4635_v51, %v7194_v52  ;;  %v3608_v20 = vpop.f32.mrb[67].mxu0 }
 0x3a8   : > { %v3662_v34 = vadd.f32 %v7194_v52, %v3608_v20 }
 0x3a9   : > { %v3695_v62 = vmax.f32 %v3663_v58, 0.0 }
 0x3aa   : > { %v3694_v40 = vmax.f32 %v3662_v34, 0.0 }
 0x3ab   : > { %3727 = vst [vmem:[%s7200_s23 + $0xe8] sm:$0xff] %v3695_v62 }
 0x3ac   : > { %3726 = vst [vmem:[%s7200_s23 + $0xe0] sm:$0xff] %v3694_v40 }
 0x3ad   : > { %v4638_v23 = vpop.f32.mrb[68].mxu0 }
 0x3ae   : > { %v3665_v19 = vadd.f32 %v4638_v23, %v7194_v52  ;;  %v3618_v13 = vpop.f32.mrb[69].mxu0 }
 0x3af   : > { %v3664_v12 = vadd.f32 %v7194_v52, %v3618_v13 }
 0x3b0   : > { %v3697_v31 = vmax.f32 %v3665_v19, 0.0 }
 0x3b1   : > { %v3696_v39 = vmax.f32 %v3664_v12, 0.0 }
 0x3b2   : > { %3729 = vst [vmem:[%s7200_s23 + $0xf8] sm:$0xff] %v3697_v31 }
 0x3b3   : > { %3728 = vst [vmem:[%s7200_s23 + $0xf0] sm:$0xff] %v3696_v39 }
 0x3b4   : > { %5272 = shalt.err (!%p5269_p5)
}
 0x3b5   : > { %s5273_s25 = scalar_lea.hbm %s7267_s19, 4096  ;;  %s5277_s24 = scalar_lea.hbm %s7329_s8, 8192 }
 0x3b6   : > { %p5274_p6 = scmp.ne.s32.totalorder %s7267_s19, %s5273_s25  ;;  %p5278_p10 = scmp.lt.u32.totalorder %s7267_s19, %s7329_s8 }
 0x3b7   : > { %p5279_p11 = scmp.lt.u32.totalorder %s5277_s24, %s5273_s25  ;;  %p5281_p13 = scmp.lt.u32.totalorder %s5273_s25, %s7267_s19 }
 0x3b8   : > { %p5275_p7 = pnand %p5274_p6, %p5429_p4 }
 0x3b9   : > { %p5280_p12 = por %p5279_p11, %p5278_p10 }
 0x3ba   : > { %p5276_p9 = pneg %p5275_p7 }
 0x3bb   : > { %p5282_p0 = por %p5281_p13, %p5280_p12 }
 0x3bd   : > { %p5283_p1 = pnand %p5282_p0, %p5276_p9 }
 0x3bf   : > { %5286 = shalt.err (!%p5283_p1)
}
 0x3c0   : > { %s5342_s21 = smov 128   ;;  %s5343_s20 = smov 8  }
 0x3c1   : > { %4807 = dma.vmem_to_hbm [thread:$0]  (%p5429_p4), %s7269_s12, 4096, %s7267_s19, %s7275_s30, %s5342_s21, %s5342_s21, %s5343_s20  }
 0x3c2 PF: > { %p4813_p2 = scmp.ge.s32.totalorder %s5337_s10, 2  ;;  %s3761_s22 = sand.u32 1, %s5317_s27  }
 0x3c3   : > { %s3762_s26 = scalar_lea.sflag [#allocation3], %s3761_s22 }
 0x3c4   : > { %p4810_p3 = pnand %p4813_p2, %p5436_p8 }
 0x3c6   : > { %5312 = dma.done.wait (!%p4810_p3), %s3762_s26, 4096  }
 0x3c7   : > { %5314 = vsyncadd (!%p4810_p3), %s3762_s26, 4294963200  ;;  %s21_s10 = sadd.s32 1, %s5337_s10   ;;  %s7854_s27 = smov %s5321_s28 }
 0x3c8   : > { %p18_p5 = scmp.ge.s32.totalorder %s21_s10, 4   ;;  %s7855_s28 = smov %s5325_s29 }
 0x3c9   : > { %s7856_s29 = smov %s5442_s18  ;;  %s7857_s30 = smov %s5333_s9 }
 0x3ca   : > { %s7858_s9 = smov %s7860_s13  ;;  %20 = sbr.rel (!%p18_p5) target bundleno = 4 (0x4), region = 96 }
 0x3d1   :  { %3767 = vsyncpa [#allocation3], 1 }
 0x3d2   :  { %3769 = vsyncpa [#allocation3 + $0x1], 1 }

</bundles_post_ra>
